<compile_context>
chip_gen: v7x
topology: tpu7x:2x2x1
jax: 0.10.0
libtpu: 0.0.40
codegen_flags: <defaults>
</compile_context>

<pallas_src>
import functools
import math

import jax
import jax.numpy as jnp
from jax.experimental import pallas as pl
from jax.experimental.pallas import tpu as pltpu

NHEAD = 10
DIM_FF = 2048            # nn.TransformerEncoderLayer default dim_feedforward
FILTER_SIZES = (3, 5, 7)
N_CLASS = 2
LN_EPS = 1e-5
MAX_PAD = (max(FILTER_SIZES) - 1) // 2   # 3
N_TAPS = 2 * MAX_PAD + 1                 # 7


# ----------------------------- kernel helpers --------------------------------

def _layernorm(z, g, b):
    mu = jnp.mean(z, axis=-1, keepdims=True)
    var = jnp.mean((z - mu) ** 2, axis=-1, keepdims=True)
    return (z - mu) * jax.lax.rsqrt(var + LN_EPS) * g + b


def _leaky(x):
    return jnp.where(x >= 0.0, x, 0.1 * x)      # LeakyReLU(negative_slope=0.1)


# ----------------------------- fused Pallas kernel ----------------------------

def _tcnn_fused_kernel(x2d_ref, slab_ref, head_sum_ref,
                       wqkv_ref, bqkv_ref, wo_ref, bo_ref,
                       g1_ref, be1_ref, w1_ref, bb1_ref, w2_ref, bb2_ref,
                       g2_ref, be2_ref, wc_ref, bc_ref, wfc_ref, bfc_ref,
                       o_ref, *, B, L, D):
    S, N = B, L      # batch_first=False quirk: seq axis = B, "batch" axis = L
    x2d = x2d_ref[...]                                      # (S*N, D), row = s*N + n

    # ================= shared TransformerEncoderLayer =================
    # QKV projection: one bf16 MXU matmul (K=D, N=3D), f32 accumulation.
    qkv = (jnp.dot(x2d.astype(jnp.bfloat16), wqkv_ref[...],
                   preferred_element_type=jnp.float32) + bqkv_ref[...])
    q = qkv[:, :D].reshape(S, N, D)          # 1/sqrt(hd) pre-folded into wqkv/bqkv
    k = qkv[:, D:2 * D].reshape(S, N, D)
    v = qkv[:, 2 * D:3 * D].reshape(S, N, D)

    # Per-head QK^T via ONE dense matmul against the prebuilt block-diagonal
    # head-sum matrix; head scores are replicated across that head's lanes so
    # softmax and context weighting stay lane-parallel VPU/XLU work.
    prod = (q[None, :, :, :] * k[:, None, :, :]).reshape(S * S * N, D)   # key-major
    scores = jnp.dot(prod.astype(jnp.bfloat16), head_sum_ref[...],
                     preferred_element_type=jnp.float32).reshape(S, S * N, D)

    m = jnp.max(scores, axis=0, keepdims=True)
    e = jnp.exp(scores - m)
    denom = jnp.sum(e, axis=0, keepdims=True)
    p = e * pl.reciprocal(denom, approx=False)               # exact softmax denom
    ctx = jnp.sum(p.reshape(S, S, N, D) * v[:, None, :, :], axis=0)      # (S, N, D)

    attn = (jnp.dot(ctx.reshape(S * N, D).astype(jnp.bfloat16), wo_ref[...],
                    preferred_element_type=jnp.float32) + bo_ref[...])

    # residual + LayerNorm 1 (f32 elementwise)
    h1 = _layernorm(x2d + attn, g1_ref[...], be1_ref[...])

    # FFN: bf16 MXU inputs, f32 accumulation, f32 elementwise.
    ff = (jnp.dot(h1.astype(jnp.bfloat16), w1_ref[...],
                  preferred_element_type=jnp.float32) + bb1_ref[...])
    ff = jnp.maximum(ff, 0.0)
    ff = (jnp.dot(ff.astype(jnp.bfloat16), w2_ref[...],
                  preferred_element_type=jnp.float32) + bb2_ref[...])

    # residual + LayerNorm 2 -> transformer output, then LeakyReLU
    wmap = _leaky(_layernorm(h1 + ff, g2_ref[...], be2_ref[...]))        # (B*L, D)

    # ============ conv branches: one merged im2col matmul (bf16) ============
    conv = _leaky(jnp.dot(slab_ref[...], wc_ref[...],
                          preferred_element_type=jnp.float32)
                  + bc_ref[...])                             # (B*L, 3D): [fs3|fs5|fs7]

    # weighted product per branch, max-pool over time, tiny concat, final fc
    pooled = jnp.concatenate(
        [jnp.max((conv[:, i * D:(i + 1) * D] * wmap).reshape(B, L, D), axis=1)
         for i in range(len(FILTER_SIZES))], axis=-1)        # (B, 3D)

    o_ref[...] = (jnp.dot(pooled.astype(jnp.bfloat16), wfc_ref[...],
                          preferred_element_type=jnp.float32)
                  + bfc_ref[...])                            # (B, 2)


# ----------------------------- pallas_call glue -------------------------------

def _full_spec(shape):
    nd = len(shape)
    return pl.BlockSpec(shape, lambda i, _nd=nd: (0,) * _nd)


def _build_conv_params(params, D):
    """Merge the 3 Conv2d kernels into one (7*D, 3*D) matrix indexed by time
    offset delta in [-3, 3] (zero rows where a filter does not reach)."""
    blocks, biases = [], []
    for fs in FILTER_SIZES:
        p = (fs - 1) // 2
        w = jnp.transpose(params[f"conv{fs}_w"][:, 0], (1, 2, 0))      # (fs, Din, Dout)
        w = jnp.pad(w, ((MAX_PAD - p, MAX_PAD - p), (0, 0), (0, 0)))   # (7, Din, Dout)
        blocks.append(w.reshape(N_TAPS * D, D))
        biases.append(params[f"conv{fs}_b"])
    return (jnp.concatenate(blocks, axis=1).astype(jnp.bfloat16),
            jnp.concatenate(biases)[None, :].astype(jnp.float32))


def tcnn_p_forward(params, text, text_length):
    del text_length                       # unused by the torch forward as well
    D = params["embed"].shape[1]
    B, L = text.shape
    hd = D // NHEAD
    scale = 1.0 / math.sqrt(hd)

    # Embedding lookup (data-dependent gather) + lane-contiguous im2col slab
    # built OUTSIDE the kernel so the kernel only sees aligned operands.
    x = params["embed"][text].astype(jnp.float32)                      # (B, L, D)
    x2d = x.reshape(B * L, D)
    xpad = jnp.pad(x, ((0, 0), (MAX_PAD, MAX_PAD), (0, 0)))            # (B, L+6, D)
    slab = jnp.concatenate([xpad[:, t:t + L, :] for t in range(N_TAPS)],
                           axis=-1).reshape(B * L, N_TAPS * D).astype(jnp.bfloat16)

    # Fold the per-head 1/sqrt(hd) scale into the q rows of the in-projection.
    wqkv = params["in_proj_w"].T
    wqkv = wqkv.at[:, :D].multiply(scale)
    bqkv = params["in_proj_b"].at[:D].multiply(scale)

    # Block-diagonal head-sum matrix (0/1 -> exact in bf16), hoisted to wrapper.
    hidx = jnp.arange(D) // hd
    head_sum = (hidx[:, None] == hidx[None, :]).astype(jnp.bfloat16)

    wc, bc = _build_conv_params(params, D)

    args = (
        x2d, slab, head_sum,
        wqkv.astype(jnp.bfloat16), bqkv[None, :].astype(jnp.float32),
        params["out_proj_w"].T.astype(jnp.bfloat16), params["out_proj_b"][None, :],
        params["ln1_g"][None, :], params["ln1_b"][None, :],
        params["lin1_w"].T.astype(jnp.bfloat16), params["lin1_b"][None, :],
        params["lin2_w"].T.astype(jnp.bfloat16), params["lin2_b"][None, :],
        params["ln2_g"][None, :], params["ln2_b"][None, :],
        wc, bc,
        params["fc_w"].T.astype(jnp.bfloat16), params["fc_b"][None, :],
    )

    kernel = functools.partial(_tcnn_fused_kernel, B=B, L=L, D=D)
    return pl.pallas_call(
        kernel,
        grid=(1,),
        in_specs=[_full_spec(a.shape) for a in args],
        out_specs=_full_spec((B, N_CLASS)),
        out_shape=jax.ShapeDtypeStruct((B, N_CLASS), jnp.float32),
        compiler_params=pltpu.CompilerParams(dimension_semantics=("arbitrary",)),
    )(*args)


# ----------------------------- params init ------------------------------------

def init_params(key, V, D):
    ks = jax.random.split(key, 16)

    def nrm(k, shape, s=0.05):
        return (s * jax.random.normal(k, shape)).astype(jnp.float32)

    p = {}
    p["embed"] = nrm(ks[0], (V, D), 0.1)
    p["in_proj_w"] = nrm(ks[1], (3 * D, D))
    p["in_proj_b"] = nrm(ks[2], (3 * D,))
    p["out_proj_w"] = nrm(ks[3], (D, D))
    p["out_proj_b"] = nrm(ks[4], (D,))
    p["lin1_w"] = nrm(ks[5], (DIM_FF, D))
    p["lin1_b"] = nrm(ks[6], (DIM_FF,))
    p["lin2_w"] = nrm(ks[7], (D, DIM_FF))
    p["lin2_b"] = nrm(ks[8], (D,))
    p["ln1_g"] = jnp.ones((D,), jnp.float32)
    p["ln1_b"] = jnp.zeros((D,), jnp.float32)
    p["ln2_g"] = jnp.ones((D,), jnp.float32)
    p["ln2_b"] = jnp.zeros((D,), jnp.float32)
    for i, fs in enumerate(FILTER_SIZES):
        p[f"conv{fs}_w"] = nrm(ks[9 + i], (D, 1, fs, D))     # (out_ch, in_ch, fs, D)
        p[f"conv{fs}_b"] = nrm(ks[12 + i], (D,))
    p["fc_w"] = nrm(ks[15], (N_CLASS, len(FILTER_SIZES) * D))
    p["fc_b"] = jnp.zeros((N_CLASS,), jnp.float32)
    return p


# ----------------------------- main --------------------------------------------

if __name__ == "__main__":
    B, L = 4, 16           # batch, sequence length
    V, D = 50, 20          # embed_num, embed_dim (divisible by nhead=10)

    key = jax.random.PRNGKey(0)
    k_params, k_text = jax.random.split(key)
    params = init_params(k_params, V, D)
    text = jax.random.randint(k_text, (B, L), 0, V, dtype=jnp.int32)
    text_length = jnp.full((B,), L, dtype=jnp.int32)

    pred = jax.jit(tcnn_p_forward)(params, text, text_length)
    pred = jax.block_until_ready(pred)
    assert pred.shape == (B, N_CLASS) and pred.dtype == jnp.float32
    assert bool(jnp.all(jnp.isfinite(pred)))
    print("KERNEL_OK")
</pallas_src>

<mosaic_0001>
module attributes {stable_mosaic.version = 11 : i64} {
  func.func @_tcnn_fused_kernel(%arg0: i32, %arg1: memref<64x20xf32, #tpu.memory_space<vmem>>, %arg2: memref<64x140xbf16, #tpu.memory_space<vmem>>, %arg3: memref<20x20xbf16, #tpu.memory_space<vmem>>, %arg4: memref<20x60xbf16, #tpu.memory_space<vmem>>, %arg5: memref<1x60xf32, #tpu.memory_space<vmem>>, %arg6: memref<20x20xbf16, #tpu.memory_space<vmem>>, %arg7: memref<1x20xf32, #tpu.memory_space<vmem>>, %arg8: memref<1x20xf32, #tpu.memory_space<vmem>>, %arg9: memref<1x20xf32, #tpu.memory_space<vmem>>, %arg10: memref<20x2048xbf16, #tpu.memory_space<vmem>>, %arg11: memref<1x2048xf32, #tpu.memory_space<vmem>>, %arg12: memref<2048x20xbf16, #tpu.memory_space<vmem>>, %arg13: memref<1x20xf32, #tpu.memory_space<vmem>>, %arg14: memref<1x20xf32, #tpu.memory_space<vmem>>, %arg15: memref<1x20xf32, #tpu.memory_space<vmem>>, %arg16: memref<140x60xbf16, #tpu.memory_space<vmem>>, %arg17: memref<1x60xf32, #tpu.memory_space<vmem>>, %arg18: memref<60x2xbf16, #tpu.memory_space<vmem>>, %arg19: memref<1x2xf32, #tpu.memory_space<vmem>>, %arg20: memref<4x2xf32, #tpu.memory_space<vmem>>) attributes {dimension_semantics = [#tpu.dimension_semantics<arbitrary>], iteration_bounds = array<i64: 1>, scalar_prefetch = 0 : i64, scratch_operands = 0 : i64, tpu.core_type = #tpu.core_type<tc>, window_params = [{pipeline_mode = #tpu.pipeline_mode<synchronous>, transform_indices = @transform_0, window_bounds = array<i64: 64, 20>}, {pipeline_mode = #tpu.pipeline_mode<synchronous>, transform_indices = @transform_1, window_bounds = array<i64: 64, 140>}, {pipeline_mode = #tpu.pipeline_mode<synchronous>, transform_indices = @transform_2, window_bounds = array<i64: 20, 20>}, {pipeline_mode = #tpu.pipeline_mode<synchronous>, transform_indices = @transform_3, window_bounds = array<i64: 20, 60>}, {pipeline_mode = #tpu.pipeline_mode<synchronous>, transform_indices = @transform_4, window_bounds = array<i64: 1, 60>}, {pipeline_mode = #tpu.pipeline_mode<synchronous>, transform_indices = @transform_5, window_bounds = array<i64: 20, 20>}, {pipeline_mode = #tpu.pipeline_mode<synchronous>, transform_indices = @transform_6, window_bounds = array<i64: 1, 20>}, {pipeline_mode = #tpu.pipeline_mode<synchronous>, transform_indices = @transform_7, window_bounds = array<i64: 1, 20>}, {pipeline_mode = #tpu.pipeline_mode<synchronous>, transform_indices = @transform_8, window_bounds = array<i64: 1, 20>}, {pipeline_mode = #tpu.pipeline_mode<synchronous>, transform_indices = @transform_9, window_bounds = array<i64: 20, 2048>}, {pipeline_mode = #tpu.pipeline_mode<synchronous>, transform_indices = @transform_10, window_bounds = array<i64: 1, 2048>}, {pipeline_mode = #tpu.pipeline_mode<synchronous>, transform_indices = @transform_11, window_bounds = array<i64: 2048, 20>}, {pipeline_mode = #tpu.pipeline_mode<synchronous>, transform_indices = @transform_12, window_bounds = array<i64: 1, 20>}, {pipeline_mode = #tpu.pipeline_mode<synchronous>, transform_indices = @transform_13, window_bounds = array<i64: 1, 20>}, {pipeline_mode = #tpu.pipeline_mode<synchronous>, transform_indices = @transform_14, window_bounds = array<i64: 1, 20>}, {pipeline_mode = #tpu.pipeline_mode<synchronous>, transform_indices = @transform_15, window_bounds = array<i64: 140, 60>}, {pipeline_mode = #tpu.pipeline_mode<synchronous>, transform_indices = @transform_16, window_bounds = array<i64: 1, 60>}, {pipeline_mode = #tpu.pipeline_mode<synchronous>, transform_indices = @transform_17, window_bounds = array<i64: 60, 2>}, {pipeline_mode = #tpu.pipeline_mode<synchronous>, transform_indices = @transform_18, window_bounds = array<i64: 1, 2>}, {pipeline_mode = #tpu.pipeline_mode<synchronous>, transform_indices = @transform_19, window_bounds = array<i64: 4, 2>}]} {
    %c0 = arith.constant 0 : index
    %c0_0 = arith.constant 0 : index
    %0 = vector.load %arg1[%c0, %c0_0] : memref<64x20xf32, #tpu.memory_space<vmem>>, vector<64x20xf32>
    %1 = arith.truncf %0 : vector<64x20xf32> to vector<64x20xbf16>
    %c0_1 = arith.constant 0 : index
    %c0_2 = arith.constant 0 : index
    %2 = vector.load %arg4[%c0_1, %c0_2] : memref<20x60xbf16, #tpu.memory_space<vmem>>, vector<20x60xbf16>
    %cst = arith.constant dense<0.000000e+00> : vector<64x60xf32>
    %3 = tpu.matmul %1, %2, %cst {dimension_numbers = #tpu.dot_dimension_numbers<[1], [0], [0], [1], [0, 0, 1, 1], [], []>} : vector<64x20xbf16>, vector<20x60xbf16>, vector<64x60xf32> -> vector<64x60xf32>
    %c0_3 = arith.constant 0 : index
    %c0_4 = arith.constant 0 : index
    %4 = vector.load %arg5[%c0_3, %c0_4] : memref<1x60xf32, #tpu.memory_space<vmem>>, vector<1x60xf32>
    %5 = vector.broadcast %4 : vector<1x60xf32> to vector<64x60xf32>
    %6 = arith.addf %3, %5 : vector<64x60xf32>
    %7 = vector.extract_strided_slice %6 {offsets = [0, 0], sizes = [64, 20], strides = [1, 1]} : vector<64x60xf32> to vector<64x20xf32>
    %8 = vector.shape_cast %7 : vector<64x20xf32> to vector<4x16x20xf32>
    %9 = vector.extract_strided_slice %6 {offsets = [0, 20], sizes = [64, 20], strides = [1, 1]} : vector<64x60xf32> to vector<64x20xf32>
    %10 = vector.shape_cast %9 : vector<64x20xf32> to vector<4x16x20xf32>
    %11 = vector.extract_strided_slice %6 {offsets = [0, 40], sizes = [64, 20], strides = [1, 1]} : vector<64x60xf32> to vector<64x20xf32>
    %12 = vector.shape_cast %11 : vector<64x20xf32> to vector<4x16x20xf32>
    %13 = vector.shape_cast %8 : vector<4x16x20xf32> to vector<1x4x16x20xf32>
    %14 = vector.shape_cast %10 : vector<4x16x20xf32> to vector<4x1x16x20xf32>
    %15 = vector.broadcast %13 : vector<1x4x16x20xf32> to vector<4x4x16x20xf32>
    %16 = vector.broadcast %14 : vector<4x1x16x20xf32> to vector<4x4x16x20xf32>
    %17 = arith.mulf %15, %16 : vector<4x4x16x20xf32>
    %18 = vector.shape_cast %17 : vector<4x4x16x20xf32> to vector<256x20xf32>
    %19 = arith.truncf %18 : vector<256x20xf32> to vector<256x20xbf16>
    %c0_5 = arith.constant 0 : index
    %c0_6 = arith.constant 0 : index
    %20 = vector.load %arg3[%c0_5, %c0_6] : memref<20x20xbf16, #tpu.memory_space<vmem>>, vector<20x20xbf16>
    %cst_7 = arith.constant dense<0.000000e+00> : vector<256x20xf32>
    %21 = tpu.matmul %19, %20, %cst_7 {dimension_numbers = #tpu.dot_dimension_numbers<[1], [0], [0], [1], [0, 0, 1, 1], [], []>} : vector<256x20xbf16>, vector<20x20xbf16>, vector<256x20xf32> -> vector<256x20xf32>
    %22 = vector.shape_cast %21 : vector<256x20xf32> to vector<4x64x20xf32>
    %cst_8 = arith.constant dense<0xFF800000> : vector<64x20xf32>
    %23 = vector.multi_reduction <maximumf>, %22, %cst_8 [0] : vector<4x64x20xf32> to vector<64x20xf32>
    %24 = vector.shape_cast %23 : vector<64x20xf32> to vector<1x64x20xf32>
    %25 = vector.broadcast %24 : vector<1x64x20xf32> to vector<4x64x20xf32>
    %26 = arith.subf %22, %25 : vector<4x64x20xf32>
    %27 = math.exp %26 : vector<4x64x20xf32>
    %cst_9 = arith.constant dense<0.000000e+00> : vector<64x20xf32>
    %28 = vector.multi_reduction <add>, %27, %cst_9 [0] : vector<4x64x20xf32> to vector<64x20xf32>
    %29 = vector.shape_cast %28 : vector<64x20xf32> to vector<1x64x20xf32>
    %30 = tpu.reciprocal %29 : vector<1x64x20xf32> -> vector<1x64x20xf32>
    %31 = vector.broadcast %30 : vector<1x64x20xf32> to vector<4x64x20xf32>
    %32 = arith.mulf %27, %31 : vector<4x64x20xf32>
    %33 = vector.shape_cast %32 : vector<4x64x20xf32> to vector<4x4x16x20xf32>
    %34 = vector.shape_cast %12 : vector<4x16x20xf32> to vector<4x1x16x20xf32>
    %35 = vector.broadcast %34 : vector<4x1x16x20xf32> to vector<4x4x16x20xf32>
    %36 = arith.mulf %33, %35 : vector<4x4x16x20xf32>
    %cst_10 = arith.constant dense<0.000000e+00> : vector<4x16x20xf32>
    %37 = vector.multi_reduction <add>, %36, %cst_10 [0] : vector<4x4x16x20xf32> to vector<4x16x20xf32>
    %38 = vector.shape_cast %37 : vector<4x16x20xf32> to vector<64x20xf32>
    %39 = arith.truncf %38 : vector<64x20xf32> to vector<64x20xbf16>
    %c0_11 = arith.constant 0 : index
    %c0_12 = arith.constant 0 : index
    %40 = vector.load %arg6[%c0_11, %c0_12] : memref<20x20xbf16, #tpu.memory_space<vmem>>, vector<20x20xbf16>
    %cst_13 = arith.constant dense<0.000000e+00> : vector<64x20xf32>
    %41 = tpu.matmul %39, %40, %cst_13 {dimension_numbers = #tpu.dot_dimension_numbers<[1], [0], [0], [1], [0, 0, 1, 1], [], []>} : vector<64x20xbf16>, vector<20x20xbf16>, vector<64x20xf32> -> vector<64x20xf32>
    %c0_14 = arith.constant 0 : index
    %c0_15 = arith.constant 0 : index
    %42 = vector.load %arg7[%c0_14, %c0_15] : memref<1x20xf32, #tpu.memory_space<vmem>>, vector<1x20xf32>
    %43 = vector.broadcast %42 : vector<1x20xf32> to vector<64x20xf32>
    %44 = arith.addf %41, %43 : vector<64x20xf32>
    %45 = arith.addf %0, %44 : vector<64x20xf32>
    %c0_16 = arith.constant 0 : index
    %c0_17 = arith.constant 0 : index
    %46 = vector.load %arg8[%c0_16, %c0_17] : memref<1x20xf32, #tpu.memory_space<vmem>>, vector<1x20xf32>
    %c0_18 = arith.constant 0 : index
    %c0_19 = arith.constant 0 : index
    %47 = vector.load %arg9[%c0_18, %c0_19] : memref<1x20xf32, #tpu.memory_space<vmem>>, vector<1x20xf32>
    %cst_20 = arith.constant dense<0.000000e+00> : vector<64xf32>
    %48 = vector.multi_reduction <add>, %45, %cst_20 [1] : vector<64x20xf32> to vector<64xf32>
    %49 = vector.shape_cast %48 : vector<64xf32> to vector<64x1xf32>
    %cst_21 = arith.constant 2.000000e+01 : f32
    %50 = vector.broadcast %cst_21 : f32 to vector<64x1xf32>
    %51 = arith.divf %49, %50 : vector<64x1xf32>
    %52 = vector.broadcast %51 : vector<64x1xf32> to vector<64x20xf32>
    %53 = arith.subf %45, %52 : vector<64x20xf32>
    %54 = arith.mulf %53, %53 : vector<64x20xf32>
    %cst_22 = arith.constant dense<0.000000e+00> : vector<64xf32>
    %55 = vector.multi_reduction <add>, %54, %cst_22 [1] : vector<64x20xf32> to vector<64xf32>
    %56 = vector.shape_cast %55 : vector<64xf32> to vector<64x1xf32>
    %cst_23 = arith.constant 2.000000e+01 : f32
    %57 = vector.broadcast %cst_23 : f32 to vector<64x1xf32>
    %58 = arith.divf %56, %57 : vector<64x1xf32>
    %59 = vector.broadcast %51 : vector<64x1xf32> to vector<64x20xf32>
    %60 = arith.subf %45, %59 : vector<64x20xf32>
    %cst_24 = arith.constant 9.99999974E-6 : f32
    %61 = vector.broadcast %cst_24 : f32 to vector<64x1xf32>
    %62 = arith.addf %58, %61 : vector<64x1xf32>
    %63 = math.rsqrt %62 : vector<64x1xf32>
    %64 = vector.broadcast %63 : vector<64x1xf32> to vector<64x20xf32>
    %65 = arith.mulf %60, %64 : vector<64x20xf32>
    %66 = vector.broadcast %46 : vector<1x20xf32> to vector<64x20xf32>
    %67 = arith.mulf %65, %66 : vector<64x20xf32>
    %68 = vector.broadcast %47 : vector<1x20xf32> to vector<64x20xf32>
    %69 = arith.addf %67, %68 : vector<64x20xf32>
    %70 = arith.truncf %69 : vector<64x20xf32> to vector<64x20xbf16>
    %c0_25 = arith.constant 0 : index
    %c0_26 = arith.constant 0 : index
    %71 = vector.load %arg10[%c0_25, %c0_26] : memref<20x2048xbf16, #tpu.memory_space<vmem>>, vector<20x2048xbf16>
    %cst_27 = arith.constant dense<0.000000e+00> : vector<64x2048xf32>
    %72 = tpu.matmul %70, %71, %cst_27 {dimension_numbers = #tpu.dot_dimension_numbers<[1], [0], [0], [1], [0, 0, 1, 1], [], []>} : vector<64x20xbf16>, vector<20x2048xbf16>, vector<64x2048xf32> -> vector<64x2048xf32>
    %c0_28 = arith.constant 0 : index
    %c0_29 = arith.constant 0 : index
    %73 = vector.load %arg11[%c0_28, %c0_29] : memref<1x2048xf32, #tpu.memory_space<vmem>>, vector<1x2048xf32>
    %74 = vector.broadcast %73 : vector<1x2048xf32> to vector<64x2048xf32>
    %75 = arith.addf %72, %74 : vector<64x2048xf32>
    %cst_30 = arith.constant 0.000000e+00 : f32
    %76 = vector.broadcast %cst_30 : f32 to vector<64x2048xf32>
    %77 = arith.maximumf %75, %76 : vector<64x2048xf32>
    %78 = arith.truncf %77 : vector<64x2048xf32> to vector<64x2048xbf16>
    %c0_31 = arith.constant 0 : index
    %c0_32 = arith.constant 0 : index
    %79 = vector.load %arg12[%c0_31, %c0_32] : memref<2048x20xbf16, #tpu.memory_space<vmem>>, vector<2048x20xbf16>
    %cst_33 = arith.constant dense<0.000000e+00> : vector<64x20xf32>
    %80 = tpu.matmul %78, %79, %cst_33 {dimension_numbers = #tpu.dot_dimension_numbers<[1], [0], [0], [1], [0, 0, 1, 1], [], []>} : vector<64x2048xbf16>, vector<2048x20xbf16>, vector<64x20xf32> -> vector<64x20xf32>
    %c0_34 = arith.constant 0 : index
    %c0_35 = arith.constant 0 : index
    %81 = vector.load %arg13[%c0_34, %c0_35] : memref<1x20xf32, #tpu.memory_space<vmem>>, vector<1x20xf32>
    %82 = vector.broadcast %81 : vector<1x20xf32> to vector<64x20xf32>
    %83 = arith.addf %80, %82 : vector<64x20xf32>
    %84 = arith.addf %69, %83 : vector<64x20xf32>
    %c0_36 = arith.constant 0 : index
    %c0_37 = arith.constant 0 : index
    %85 = vector.load %arg14[%c0_36, %c0_37] : memref<1x20xf32, #tpu.memory_space<vmem>>, vector<1x20xf32>
    %c0_38 = arith.constant 0 : index
    %c0_39 = arith.constant 0 : index
    %86 = vector.load %arg15[%c0_38, %c0_39] : memref<1x20xf32, #tpu.memory_space<vmem>>, vector<1x20xf32>
    %cst_40 = arith.constant dense<0.000000e+00> : vector<64xf32>
    %87 = vector.multi_reduction <add>, %84, %cst_40 [1] : vector<64x20xf32> to vector<64xf32>
    %88 = vector.shape_cast %87 : vector<64xf32> to vector<64x1xf32>
    %cst_41 = arith.constant 2.000000e+01 : f32
    %89 = vector.broadcast %cst_41 : f32 to vector<64x1xf32>
    %90 = arith.divf %88, %89 : vector<64x1xf32>
    %91 = vector.broadcast %90 : vector<64x1xf32> to vector<64x20xf32>
    %92 = arith.subf %84, %91 : vector<64x20xf32>
    %93 = arith.mulf %92, %92 : vector<64x20xf32>
    %cst_42 = arith.constant dense<0.000000e+00> : vector<64xf32>
    %94 = vector.multi_reduction <add>, %93, %cst_42 [1] : vector<64x20xf32> to vector<64xf32>
    %95 = vector.shape_cast %94 : vector<64xf32> to vector<64x1xf32>
    %cst_43 = arith.constant 2.000000e+01 : f32
    %96 = vector.broadcast %cst_43 : f32 to vector<64x1xf32>
    %97 = arith.divf %95, %96 : vector<64x1xf32>
    %98 = vector.broadcast %90 : vector<64x1xf32> to vector<64x20xf32>
    %99 = arith.subf %84, %98 : vector<64x20xf32>
    %cst_44 = arith.constant 9.99999974E-6 : f32
    %100 = vector.broadcast %cst_44 : f32 to vector<64x1xf32>
    %101 = arith.addf %97, %100 : vector<64x1xf32>
    %102 = math.rsqrt %101 : vector<64x1xf32>
    %103 = vector.broadcast %102 : vector<64x1xf32> to vector<64x20xf32>
    %104 = arith.mulf %99, %103 : vector<64x20xf32>
    %105 = vector.broadcast %85 : vector<1x20xf32> to vector<64x20xf32>
    %106 = arith.mulf %104, %105 : vector<64x20xf32>
    %107 = vector.broadcast %86 : vector<1x20xf32> to vector<64x20xf32>
    %108 = arith.addf %106, %107 : vector<64x20xf32>
    %cst_45 = arith.constant 0.000000e+00 : f32
    %109 = vector.broadcast %cst_45 : f32 to vector<64x20xf32>
    %110 = arith.cmpf oge, %108, %109 : vector<64x20xf32>
    %cst_46 = arith.constant 1.000000e-01 : f32
    %111 = vector.broadcast %cst_46 : f32 to vector<64x20xf32>
    %112 = arith.mulf %111, %108 : vector<64x20xf32>
    %113 = arith.select %110, %108, %112 : vector<64x20xi1>, vector<64x20xf32>
    %c0_47 = arith.constant 0 : index
    %c0_48 = arith.constant 0 : index
    %114 = vector.load %arg2[%c0_47, %c0_48] : memref<64x140xbf16, #tpu.memory_space<vmem>>, vector<64x140xbf16>
    %c0_49 = arith.constant 0 : index
    %c0_50 = arith.constant 0 : index
    %115 = vector.load %arg16[%c0_49, %c0_50] : memref<140x60xbf16, #tpu.memory_space<vmem>>, vector<140x60xbf16>
    %cst_51 = arith.constant dense<0.000000e+00> : vector<64x60xf32>
    %116 = tpu.matmul %114, %115, %cst_51 {dimension_numbers = #tpu.dot_dimension_numbers<[1], [0], [0], [1], [0, 0, 1, 1], [], []>} : vector<64x140xbf16>, vector<140x60xbf16>, vector<64x60xf32> -> vector<64x60xf32>
    %c0_52 = arith.constant 0 : index
    %c0_53 = arith.constant 0 : index
    %117 = vector.load %arg17[%c0_52, %c0_53] : memref<1x60xf32, #tpu.memory_space<vmem>>, vector<1x60xf32>
    %118 = vector.broadcast %117 : vector<1x60xf32> to vector<64x60xf32>
    %119 = arith.addf %116, %118 : vector<64x60xf32>
    %cst_54 = arith.constant 0.000000e+00 : f32
    %120 = vector.broadcast %cst_54 : f32 to vector<64x60xf32>
    %121 = arith.cmpf oge, %119, %120 : vector<64x60xf32>
    %cst_55 = arith.constant 1.000000e-01 : f32
    %122 = vector.broadcast %cst_55 : f32 to vector<64x60xf32>
    %123 = arith.mulf %122, %119 : vector<64x60xf32>
    %124 = arith.select %121, %119, %123 : vector<64x60xi1>, vector<64x60xf32>
    %125 = vector.extract_strided_slice %124 {offsets = [0, 0], sizes = [64, 20], strides = [1, 1]} : vector<64x60xf32> to vector<64x20xf32>
    %126 = arith.mulf %125, %113 : vector<64x20xf32>
    %127 = vector.shape_cast %126 : vector<64x20xf32> to vector<4x16x20xf32>
    %cst_56 = arith.constant dense<0xFF800000> : vector<4x20xf32>
    %128 = vector.multi_reduction <maximumf>, %127, %cst_56 [1] : vector<4x16x20xf32> to vector<4x20xf32>
    %129 = vector.extract_strided_slice %124 {offsets = [0, 20], sizes = [64, 20], strides = [1, 1]} : vector<64x60xf32> to vector<64x20xf32>
    %130 = arith.mulf %129, %113 : vector<64x20xf32>
    %131 = vector.shape_cast %130 : vector<64x20xf32> to vector<4x16x20xf32>
    %cst_57 = arith.constant dense<0xFF800000> : vector<4x20xf32>
    %132 = vector.multi_reduction <maximumf>, %131, %cst_57 [1] : vector<4x16x20xf32> to vector<4x20xf32>
    %133 = vector.extract_strided_slice %124 {offsets = [0, 40], sizes = [64, 20], strides = [1, 1]} : vector<64x60xf32> to vector<64x20xf32>
    %134 = arith.mulf %133, %113 : vector<64x20xf32>
    %135 = vector.shape_cast %134 : vector<64x20xf32> to vector<4x16x20xf32>
    %cst_58 = arith.constant dense<0xFF800000> : vector<4x20xf32>
    %136 = vector.multi_reduction <maximumf>, %135, %cst_58 [1] : vector<4x16x20xf32> to vector<4x20xf32>
    %137 = tpu.concatenate %128, %132, %136 in 1 : vector<4x20xf32>, vector<4x20xf32>, vector<4x20xf32> -> vector<4x60xf32>
    %138 = arith.truncf %137 : vector<4x60xf32> to vector<4x60xbf16>
    %c0_59 = arith.constant 0 : index
    %c0_60 = arith.constant 0 : index
    %139 = vector.load %arg18[%c0_59, %c0_60] : memref<60x2xbf16, #tpu.memory_space<vmem>>, vector<60x2xbf16>
    %cst_61 = arith.constant dense<0.000000e+00> : vector<4x2xf32>
    %140 = tpu.matmul %138, %139, %cst_61 {dimension_numbers = #tpu.dot_dimension_numbers<[1], [0], [0], [1], [0, 0, 1, 1], [], []>} : vector<4x60xbf16>, vector<60x2xbf16>, vector<4x2xf32> -> vector<4x2xf32>
    %c0_62 = arith.constant 0 : index
    %c0_63 = arith.constant 0 : index
    %141 = vector.load %arg19[%c0_62, %c0_63] : memref<1x2xf32, #tpu.memory_space<vmem>>, vector<1x2xf32>
    %142 = vector.broadcast %141 : vector<1x2xf32> to vector<4x2xf32>
    %143 = arith.addf %140, %142 : vector<4x2xf32>
    %c0_64 = arith.constant 0 : index
    %c0_65 = arith.constant 0 : index
    %144 = vector.load %arg20[%c0_64, %c0_65] : memref<4x2xf32, #tpu.memory_space<vmem>>, vector<4x2xf32>
    tpu.vector_store %arg20[%c0_64, %c0_65], %143 {strides = array<i32>} : memref<4x2xf32, #tpu.memory_space<vmem>>, vector<4x2xf32>,
    return
  }
  func.func @transform_0(%arg0: i32) -> (i32, i32) {
    %c0_i32 = arith.constant 0 : i32
    %c0_i32_0 = arith.constant 0 : i32
    %c0_i32_1 = arith.constant 0 : i32
    return %c0_i32, %c0_i32_0 : i32, i32
  }
  func.func @transform_1(%arg0: i32) -> (i32, i32) {
    %c0_i32 = arith.constant 0 : i32
    %c0_i32_0 = arith.constant 0 : i32
    %c0_i32_1 = arith.constant 0 : i32
    return %c0_i32, %c0_i32_0 : i32, i32
  }
  func.func @transform_2(%arg0: i32) -> (i32, i32) {
    %c0_i32 = arith.constant 0 : i32
    %c0_i32_0 = arith.constant 0 : i32
    %c0_i32_1 = arith.constant 0 : i32
    return %c0_i32, %c0_i32_0 : i32, i32
  }
  func.func @transform_3(%arg0: i32) -> (i32, i32) {
    %c0_i32 = arith.constant 0 : i32
    %c0_i32_0 = arith.constant 0 : i32
    %c0_i32_1 = arith.constant 0 : i32
    return %c0_i32, %c0_i32_0 : i32, i32
  }
  func.func @transform_4(%arg0: i32) -> (i32, i32) {
    %c0_i32 = arith.constant 0 : i32
    %c0_i32_0 = arith.constant 0 : i32
    %c0_i32_1 = arith.constant 0 : i32
    return %c0_i32, %c0_i32_0 : i32, i32
  }
  func.func @transform_5(%arg0: i32) -> (i32, i32) {
    %c0_i32 = arith.constant 0 : i32
    %c0_i32_0 = arith.constant 0 : i32
    %c0_i32_1 = arith.constant 0 : i32
    return %c0_i32, %c0_i32_0 : i32, i32
  }
  func.func @transform_6(%arg0: i32) -> (i32, i32) {
    %c0_i32 = arith.constant 0 : i32
    %c0_i32_0 = arith.constant 0 : i32
    %c0_i32_1 = arith.constant 0 : i32
    return %c0_i32, %c0_i32_0 : i32, i32
  }
  func.func @transform_7(%arg0: i32) -> (i32, i32) {
    %c0_i32 = arith.constant 0 : i32
    %c0_i32_0 = arith.constant 0 : i32
    %c0_i32_1 = arith.constant 0 : i32
    return %c0_i32, %c0_i32_0 : i32, i32
  }
  func.func @transform_8(%arg0: i32) -> (i32, i32) {
    %c0_i32 = arith.constant 0 : i32
    %c0_i32_0 = arith.constant 0 : i32
    %c0_i32_1 = arith.constant 0 : i32
    return %c0_i32, %c0_i32_0 : i32, i32
  }
  func.func @transform_9(%arg0: i32) -> (i32, i32) {
    %c0_i32 = arith.constant 0 : i32
    %c0_i32_0 = arith.constant 0 : i32
    %c0_i32_1 = arith.constant 0 : i32
    return %c0_i32, %c0_i32_0 : i32, i32
  }
  func.func @transform_10(%arg0: i32) -> (i32, i32) {
    %c0_i32 = arith.constant 0 : i32
    %c0_i32_0 = arith.constant 0 : i32
    %c0_i32_1 = arith.constant 0 : i32
    return %c0_i32, %c0_i32_0 : i32, i32
  }
  func.func @transform_11(%arg0: i32) -> (i32, i32) {
    %c0_i32 = arith.constant 0 : i32
    %c0_i32_0 = arith.constant 0 : i32
    %c0_i32_1 = arith.constant 0 : i32
    return %c0_i32, %c0_i32_0 : i32, i32
  }
  func.func @transform_12(%arg0: i32) -> (i32, i32) {
    %c0_i32 = arith.constant 0 : i32
    %c0_i32_0 = arith.constant 0 : i32
    %c0_i32_1 = arith.constant 0 : i32
    return %c0_i32, %c0_i32_0 : i32, i32
  }
  func.func @transform_13(%arg0: i32) -> (i32, i32) {
    %c0_i32 = arith.constant 0 : i32
    %c0_i32_0 = arith.constant 0 : i32
    %c0_i32_1 = arith.constant 0 : i32
    return %c0_i32, %c0_i32_0 : i32, i32
  }
  func.func @transform_14(%arg0: i32) -> (i32, i32) {
    %c0_i32 = arith.constant 0 : i32
    %c0_i32_0 = arith.constant 0 : i32
    %c0_i32_1 = arith.constant 0 : i32
    return %c0_i32, %c0_i32_0 : i32, i32
  }
  func.func @transform_15(%arg0: i32) -> (i32, i32) {
    %c0_i32 = arith.constant 0 : i32
    %c0_i32_0 = arith.constant 0 : i32
    %c0_i32_1 = arith.constant 0 : i32
    return %c0_i32, %c0_i32_0 : i32, i32
  }
  func.func @transform_16(%arg0: i32) -> (i32, i32) {
    %c0_i32 = arith.constant 0 : i32
    %c0_i32_0 = arith.constant 0 : i32
    %c0_i32_1 = arith.constant 0 : i32
    return %c0_i32, %c0_i32_0 : i32, i32
  }
  func.func @transform_17(%arg0: i32) -> (i32, i32) {
    %c0_i32 = arith.constant 0 : i32
    %c0_i32_0 = arith.constant 0 : i32
    %c0_i32_1 = arith.constant 0 : i32
    return %c0_i32, %c0_i32_0 : i32, i32
  }
  func.func @transform_18(%arg0: i32) -> (i32, i32) {
    %c0_i32 = arith.constant 0 : i32
    %c0_i32_0 = arith.constant 0 : i32
    %c0_i32_1 = arith.constant 0 : i32
    return %c0_i32, %c0_i32_0 : i32, i32
  }
  func.func @transform_19(%arg0: i32) -> (i32, i32) {
    %c0_i32 = arith.constant 0 : i32
    %c0_i32_0 = arith.constant 0 : i32
    %c0_i32_1 = arith.constant 0 : i32
    return %c0_i32, %c0_i32_0 : i32, i32
  }
}

</mosaic_0001>

<bundles_post_ra>
// kernel: tcnn_p_forward.1
= control target key start
LH: loop header
LB: loop body
LE: loop exit
PB: predicated region body
PF: predicated region fallthrough
CT: control target
= control target key end

     0   :  { %vm107_vm0 = vcmask 1041408   ;;  %vm94_vm1 = vcmask 162816   ;;  %s5409_s30 = smov 108   ;;  %vm3993_vm2 = vcmask 97280   ;;  %vm4006_vm3 = vcmask 1045504   ;;  %s7465_s3 = inlined_call_operand.vmem [shape: bf16[20,60], index: 3, kind: input, shape index: {}]   ;;  %s7466_s0 = inlined_call_operand.vmem [shape: f32[64,20], index: 0, kind: input, shape index: {}]   ;;  %s7467_s2 = inlined_call_operand.vmem [shape: bf16[20,20], index: 2, kind: input, shape index: {}]   ;;  %s7468_s4 = inlined_call_operand.vmem [shape: f32[1,60], index: 4, kind: input, shape index: {}]   ;;  %s7469_s5 = inlined_call_operand.vmem [shape: bf16[20,20], index: 5, kind: input, shape index: {}]   ;;  %s7470_s6 = inlined_call_operand.vmem [shape: f32[1,20], index: 6, kind: input, shape index: {}]   ;;  %s7471_s9 = inlined_call_operand.vmem [shape: bf16[20,2048], index: 9, kind: input, shape index: {}]   ;;  %s7472_s7 = inlined_call_operand.vmem [shape: f32[1,20], index: 7, kind: input, shape index: {}]   ;;  %s7473_s8 = inlined_call_operand.vmem [shape: f32[1,20], index: 8, kind: input, shape index: {}]   ;;  %s7474_s11 = inlined_call_operand.vmem [shape: bf16[2048,20], index: 11, kind: input, shape index: {}]   ;;  %s7475_s10 = inlined_call_operand.vmem [shape: f32[1,2048], index: 10, kind: input, shape index: {}]   ;;  %s7476_s12 = inlined_call_operand.vmem [shape: f32[1,20], index: 12, kind: input, shape index: {}]   ;;  %s7477_s15 = inlined_call_operand.vmem [shape: bf16[140,60], index: 15, kind: input, shape index: {}]   ;;  %s7478_s1 = inlined_call_operand.vmem [shape: bf16[64,140], index: 1, kind: input, shape index: {}]   ;;  %s7479_s16 = inlined_call_operand.vmem [shape: f32[1,60], index: 16, kind: input, shape index: {}]   ;;  %s7480_s13 = inlined_call_operand.vmem [shape: f32[1,20], index: 13, kind: input, shape index: {}]   ;;  %s7481_s14 = inlined_call_operand.vmem [shape: f32[1,20], index: 14, kind: input, shape index: {}]   ;;  %s7482_s17 = inlined_call_operand.vmem [shape: bf16[60,2], index: 17, kind: input, shape index: {}]   ;;  %s7483_s18 = inlined_call_operand.vmem [shape: f32[1,2], index: 18, kind: input, shape index: {}]   ;;  %s7484_s19 = inlined_call_operand.vmem [shape: f32[4,2], index: 19, kind: output, shape index: {}]  }
   0x1   :  { %7488 = sst [smem:[#allocation2_spill]] %s7465_s3 }
   0x2   :  { %7489 = sst [smem:[#allocation3_spill]] %s7466_s0  ;;  %s7492_s20 = sld [smem:[#allocation2_spill]] }
   0x3   :  { %7490 = sst [smem:[#allocation4_spill]] %s7467_s2  ;;  %s7493_s23 = sld [smem:[#allocation3_spill]] }
   0x4   :  { %7491 = sst [smem:[#allocation5_spill]] %s7468_s4  ;;  %s7494_s4 = sld [smem:[#allocation4_spill]] }
   0x5   :  { %s7495_s3 = sld [smem:[#allocation5_spill]] }
   0x8   :  { %v5113_v0 = vld [vmem:[%s7492_s20] sm:$0xff]   ;;  %v5114_v1 = vld [vmem:[%s7492_s20 + $0x8] ss:$0 sps:$4 sm:$0x33]   ;;  %s5410_s20 = smov 88  }
   0x9   :  { %v63_v2 = vld [vmem:[%s7493_s23] sm:$0xff]  ;;  %v64_v3 = vld [vmem:[%s7493_s23 + $0x8] sm:$0xff]  ;;  %5031 = vmatprep.subr.bf16.mxu0 %v5113_v0  ;;  %v65_v5 = vld [vmem:[%s7493_s23 + $0x10] sm:$0xff]  ;;  %v109_v7 = vsel %vm107_vm0, %v5114_v1, 0 }
   0xa   :  { %v71_v4 = vpack.c.bf16 %v64_v3, %v63_v2  ;;  %5032 = vmatpush3.bf16.msra.mxu0 %v5113_v0  ;;  %v66_v6 = vld [vmem:[%s7493_s23 + $0x18] sm:$0xff]  ;;  %v67_v8 = vld [vmem:[%s7493_s23 + $0x20] sm:$0xff]  ;;  %v68_v9 = vld [vmem:[%s7493_s23 + $0x28] sm:$0xff] }
   0xb   :  { %5103 = vmatprep.subr.msk.bf16.mxu0 %vm107_vm0, %v5114_v1  ;;  %v72_v10 = vpack.c.bf16 %v66_v6, %v65_v5  ;;  %v73_v11 = vpack.c.bf16 %v68_v9, %v67_v8  ;;  %v69_v12 = vld [vmem:[%s7493_s23 + $0x30] sm:$0xff]  ;;  %v70_v13 = vld [vmem:[%s7493_s23 + $0x38] sm:$0xff]  ;;  %v5115_v15 = vld [vmem:[%s7494_s4] sm:$0xff]  }
   0xc   :  { %5035 = vmatprep.mubr.msk.bf16.mxu0 %vm94_vm1, %v71_v4  ;;  %v74_v14 = vpack.c.bf16 %v70_v13, %v69_v12  ;;  %v5116_v16 = vld [vmem:[%s7494_s4 + $0x8] ss:$0 sps:$4 sm:$0x33]   ;;  %5043 = vmatprep.subr.bf16.mxu1 %v5115_v15  ;;  %v4411_v18 = vld [vmem:[%s7495_s3] ss:$0 sm:$0xff] }
   0xd   :  { %5044 = vmatpush3.bf16.msra.mxu1 %v5115_v15  ;;  %v317_v17 = vsel %vm107_vm0, %v5116_v16, 0 }
   0xe   :  { %5034 = vmatpush3.bf16.msra.mxu0 %v109_v7  ;;  %5104 = vmatprep.subr.msk.bf16.mxu1 %vm107_vm0, %v5116_v16 }
  0x11   :  { %5036 = vmatmul.mubr.msk.bf16.vlgmr.msra.gmra.mrb[0].mxu0 %vm94_vm1, %v72_v10  ;;  %5046 = vmatpush3.bf16.msra.mxu1 %v317_v17 }
  0x12   :  { %5039 = vmatprep.mubr.msk.bf16.mxu0 %vm94_vm1, %v73_v11 }
  0x19   :  { %5040 = vmatmul.mubr.msk.bf16.gmra.mrb[4].mxu0 %vm94_vm1, %v74_v14 }
  0xe4   :  { %v5037_v19 = vpop.f32.mrb[0].mxu0 }
  0xe5   :  { %v5563_v20 = vadd.f32 %v5037_v19, %v4411_v18  ;;  %v145_v21 = vpop.f32.mrb[1].mxu0 }
  0xe6   :  { %v5565_v22 = vadd.f32 %v4411_v18, %v145_v21  ;;  %v5038_v23 = vpop.f32.mrb[2].mxu0 }
  0xe7   :  { %188 = vrot.lane.b32.xlu1 %v5563_v20, %s5409_s30  ;;  %v148_v24 = vpop.f32.mrb[3].mxu0  ;;  %v5569_v25 = vadd.f32 %v5038_v23, %v4411_v18 }
  0xe8   :  { %184 = vrot.lane.b32.xlu0 %v5565_v22, %s5409_s30  ;;  %v5571_v26 = vadd.f32 %v4411_v18, %v148_v24 }
  0xeb   :  { %190 = vrot.lane.b32.xlu1 %v5569_v25, %s5409_s30 }
  0xec   :  { %v5041_v27 = vpop.f32.mrb[4].mxu0  ;;  %186 = vrot.lane.b32.xlu0 %v5571_v26, %s5409_s30 }
  0xed   :  { %v161_v28 = vpop.f32.mrb[5].mxu0  ;;  %v5577_v32 = vadd.f32 %v5041_v27, %v4411_v18 }
  0xee   :  { %v5575_v29 = vadd.f32 %v4411_v18, %v161_v28  ;;  %v5042_v30 = vpop.f32.mrb[6].mxu0 }
  0xef   :  { %v164_v31 = vpop.f32.mrb[7].mxu0  ;;  %v5582_v34 = vadd.f32 %v5042_v30, %v4411_v18 }
  0xf0   :  { %v5579_v33 = vadd.f32 %v4411_v18, %v164_v31  ;;  %192 = vrot.lane.b32.xlu0 %v5575_v29, %s5409_s30 }
  0xf2   :  { %194 = vrot.lane.b32.xlu1 %v5579_v33, %s5409_s30 }
  0xf4   :  { %196 = vrot.lane.b32.xlu0 %v5577_v32, %s5409_s30 }
  0xf6   :  { %198 = vrot.lane.b32.xlu1 %v5582_v34, %s5409_s30 }
  0xf8   :  { %728 = vrot.lane.b32.xlu0 %v5565_v22, %s5410_s20 }
  0xfa   :  { %730 = vrot.lane.b32.xlu1 %v5571_v26, %s5410_s20 }
  0xfc   :  { %732 = vrot.lane.b32.xlu0 %v5563_v20, %s5410_s20 }
  0xfe   :  { %734 = vrot.lane.b32.xlu1 %v5569_v25, %s5410_s20 }
 0x100   :  { %736 = vrot.lane.b32.xlu0 %v5575_v29, %s5410_s20 }
 0x102   :  { %738 = vrot.lane.b32.xlu1 %v5579_v33, %s5410_s20 }
 0x104   :  { %740 = vrot.lane.b32.xlu0 %v5577_v32, %s5410_s20 }
 0x106   :  { %742 = vrot.lane.b32.xlu1 %v5582_v34, %s5410_s20 }
 0x159   :  { %v189_v36 = vpop.permute.xlu1 %188 }
 0x15a   :  { %v185_v35 = vpop.permute.xlu0 %184  ;;  %v216_v51 = vmul.f32 %v189_v36, %v5565_v22  ;;  %v218_v56 = vmul.f32 %v189_v36, %v5563_v20  ;;  %v220_v57 = vmul.f32 %v189_v36, %v5575_v29  ;;  %v222_v0 = vmul.f32 %v189_v36, %v5577_v32 }
 0x15b   :  { %v210_v37 = vmul.f32 %v185_v35, %v5563_v20  ;;  %v208_v41 = vmul.f32 %v185_v35, %v5565_v22  ;;  %v212_v43 = vmul.f32 %v185_v35, %v5575_v29  ;;  %v214_v50 = vmul.f32 %v185_v35, %v5577_v32 }
 0x15d   :  { %v191_v47 = vpop.permute.xlu1 %190 }
 0x15e   :  { %v187_v38 = vpop.permute.xlu0 %186  ;;  %v217_v49 = vmul.f32 %v191_v47, %v5571_v26  ;;  %v219_v54 = vmul.f32 %v191_v47, %v5569_v25  ;;  %v221_v55 = vmul.f32 %v191_v47, %v5579_v33  ;;  %v223_v61 = vmul.f32 %v191_v47, %v5582_v34 }
 0x15f   :  { %v211_v39 = vmul.f32 %v187_v38, %v5569_v25  ;;  %v213_v40 = vmul.f32 %v187_v38, %v5579_v33  ;;  %v209_v42 = vmul.f32 %v187_v38, %v5571_v26  ;;  %v215_v48 = vmul.f32 %v187_v38, %v5582_v34 }
 0x160   :  { %v244_v53 = vpack.c.bf16 %v217_v49, %v216_v51  ;;  %v245_v58 = vpack.c.bf16 %v219_v54, %v218_v56  ;;  %v246_v59 = vpack.c.bf16 %v221_v55, %v220_v57  ;;  %v247_v2 = vpack.c.bf16 %v223_v61, %v222_v0 }
 0x161   :  { %v240_v44 = vpack.c.bf16 %v209_v42, %v208_v41  ;;  %v241_v45 = vpack.c.bf16 %v211_v39, %v210_v37  ;;  %v242_v46 = vpack.c.bf16 %v213_v40, %v212_v43  ;;  %v243_v52 = vpack.c.bf16 %v215_v48, %v214_v50 }
 0x162   :  { %v193_v62 = vpop.permute.xlu0 %192 }
 0x163   :  { %5047 = vmatprep.mubr.msk.bf16.mxu1 %vm94_vm1, %v240_v44  ;;  %v224_v1 = vmul.f32 %v193_v62, %v5565_v22  ;;  %v226_v6 = vmul.f32 %v193_v62, %v5563_v20  ;;  %v228_v7 = vmul.f32 %v193_v62, %v5575_v29  ;;  %v230_v14 = vmul.f32 %v193_v62, %v5577_v32 }
 0x164   :  { %5048 = vmatmul.mubr.msk.bf16.vlgmr.msra.gmra.mrb[0].mxu1 %vm94_vm1, %v241_v45  ;;  %v195_v60 = vpop.permute.xlu1 %194 }
 0x165   :  { %5051 = vmatprep.mubr.msk.bf16.mxu1 %vm94_vm1, %v242_v46  ;;  %v225_v63 = vmul.f32 %v195_v60, %v5571_v26  ;;  %v227_v4 = vmul.f32 %v195_v60, %v5569_v25  ;;  %v229_v5 = vmul.f32 %v195_v60, %v5579_v33  ;;  %v231_v11 = vmul.f32 %v195_v60, %v5582_v34 }
 0x166   :  { %v197_v12 = vpop.permute.xlu0 %196 }
 0x167   :  { %v248_v3 = vpack.c.bf16 %v225_v63, %v224_v1  ;;  %v249_v8 = vpack.c.bf16 %v227_v4, %v226_v6  ;;  %v250_v9 = vpack.c.bf16 %v229_v5, %v228_v7  ;;  %v232_v15 = vmul.f32 %v197_v12, %v5565_v22 }
 0x168   :  { %v199_v10 = vpop.permute.xlu1 %198  ;;  %v251_v16 = vpack.c.bf16 %v231_v11, %v230_v14  ;;  %v234_v21 = vmul.f32 %v197_v12, %v5563_v20  ;;  %v236_v23 = vmul.f32 %v197_v12, %v5575_v29  ;;  %v238_v27 = vmul.f32 %v197_v12, %v5577_v32  ;;  %v5118_v20 = vld [vmem:[%s7469_s5 + $0x8] ss:$0 sps:$4 sm:$0x33]  }
 0x169   :  { %v233_v13 = vmul.f32 %v199_v10, %v5571_v26  ;;  %v235_v18 = vmul.f32 %v199_v10, %v5569_v25  ;;  %v237_v19 = vmul.f32 %v199_v10, %v5579_v33  ;;  %v239_v22 = vmul.f32 %v199_v10, %v5582_v34  ;;  %v5117_v25 = vld [vmem:[%s7469_s5] sm:$0xff]  }
 0x16a   :  { %5079 = vmatprep.subr.bf16.mxu0 %v5117_v25  ;;  %v876_v30 = vsel %vm107_vm0, %v5118_v20, 0 }
 0x16b   :  { %v252_v17 = vpack.c.bf16 %v233_v13, %v232_v15  ;;  %v253_v24 = vpack.c.bf16 %v235_v18, %v234_v21  ;;  %v254_v26 = vpack.c.bf16 %v237_v19, %v236_v23  ;;  %v255_v28 = vpack.c.bf16 %v239_v22, %v238_v27  ;;  %5080 = vmatpush3.bf16.msra.mxu0 %v5117_v25 }
 0x16c   :  { %5052 = vmatmul.mubr.msk.bf16.gmra.mrb[4].mxu1 %vm94_vm1, %v243_v52  ;;  %5105 = vmatprep.subr.msk.bf16.mxu0 %vm107_vm0, %v5118_v20 }
 0x16d   :  { %5055 = vmatprep.mubr.msk.bf16.mxu1 %vm94_vm1, %v244_v53 }
 0x16f   :  { %5082 = vmatpush3.bf16.msra.mxu0 %v876_v30 }
 0x174   :  { %5056 = vmatmul.mubr.msk.bf16.gmra.mrb[8].mxu1 %vm94_vm1, %v245_v58 }
 0x175   :  { %5059 = vmatprep.mubr.msk.bf16.mxu1 %vm94_vm1, %v246_v59 }
 0x17c   :  { %5060 = vmatmul.mubr.msk.bf16.gmra.mrb[12].mxu1 %vm94_vm1, %v247_v2 }
 0x17d   :  { %5063 = vmatprep.mubr.msk.bf16.mxu1 %vm94_vm1, %v248_v3 }
 0x184   :  { %5064 = vmatmul.mubr.msk.bf16.gmra.mrb[16].mxu1 %vm94_vm1, %v249_v8 }
 0x185   :  { %5067 = vmatprep.mubr.msk.bf16.mxu1 %vm94_vm1, %v250_v9 }
 0x18c   :  { %5068 = vmatmul.mubr.msk.bf16.gmra.mrb[20].mxu1 %vm94_vm1, %v251_v16 }
 0x18d   :  { %5071 = vmatprep.mubr.msk.bf16.mxu1 %vm94_vm1, %v252_v17 }
 0x194   :  { %5072 = vmatmul.mubr.msk.bf16.gmra.mrb[24].mxu1 %vm94_vm1, %v253_v24 }
 0x195   :  { %5075 = vmatprep.mubr.msk.bf16.mxu1 %vm94_vm1, %v254_v26 }
 0x19c   :  { %5076 = vmatmul.mubr.msk.bf16.gmra.mrb[28].mxu1 %vm94_vm1, %v255_v28 }
 0x237   :  { %v5649_v29 = vpop.f32.mrb[0].mxu1 }
 0x238   :  { %v5653_v31 = vpop.f32.mrb[1].mxu1  ;;  %v494_v39 = vsel %vm94_vm1, %v5649_v29, -inf }
 0x239   :  { %v5655_v32 = vpop.f32.mrb[2].mxu1  ;;  %v480_v42 = vsel %vm94_vm1, %v5653_v31, -inf }
 0x23a   :  { %v5657_v33 = vpop.f32.mrb[3].mxu1  ;;  %v501_v46 = vsel %vm94_vm1, %v5655_v32, -inf }
 0x23b   :  { %v487_v50 = vsel %vm94_vm1, %v5657_v33, -inf }
 0x23f   :  { %v5659_v34 = vpop.f32.mrb[4].mxu1 }
 0x240   :  { %v5661_v35 = vpop.f32.mrb[5].mxu1  ;;  %v522_v55 = vsel %vm94_vm1, %v5659_v34, -inf }
 0x241   :  { %v5663_v36 = vpop.f32.mrb[6].mxu1  ;;  %v508_v58 = vsel %vm94_vm1, %v5661_v35, -inf }
 0x242   :  { %v5665_v37 = vpop.f32.mrb[7].mxu1  ;;  %v529_v62 = vsel %vm94_vm1, %v5663_v36, -inf }
 0x243   :  { %v515_v2 = vsel %vm94_vm1, %v5665_v37, -inf }
 0x247   :  { %v5667_v38 = vpop.f32.mrb[8].mxu1 }
 0x248   :  { %v495_v40 = vsel %vm94_vm1, %v5667_v38, -inf  ;;  %v5673_v41 = vpop.f32.mrb[9].mxu1 }
 0x249   :  { %v496_v43 = vmax.f32 %v494_v39, %v495_v40  ;;  %v481_v44 = vsel %vm94_vm1, %v5673_v41, -inf  ;;  %v5679_v45 = vpop.f32.mrb[10].mxu1 }
 0x24a   :  { %v482_v47 = vmax.f32 %v480_v42, %v481_v44  ;;  %v502_v48 = vsel %vm94_vm1, %v5679_v45, -inf  ;;  %v5685_v49 = vpop.f32.mrb[11].mxu1 }
 0x24b   :  { %v503_v51 = vmax.f32 %v501_v46, %v502_v48  ;;  %v488_v52 = vsel %vm94_vm1, %v5685_v49, -inf }
 0x24c   :  { %v489_v53 = vmax.f32 %v487_v50, %v488_v52 }
 0x24f   :  { %v5691_v54 = vpop.f32.mrb[12].mxu1 }
 0x250   :  { %v523_v56 = vsel %vm94_vm1, %v5691_v54, -inf  ;;  %v5697_v57 = vpop.f32.mrb[13].mxu1 }
 0x251   :  { %v524_v59 = vmax.f32 %v522_v55, %v523_v56  ;;  %v509_v60 = vsel %vm94_vm1, %v5697_v57, -inf  ;;  %v5703_v61 = vpop.f32.mrb[14].mxu1 }
 0x252   :  { %v510_v63 = vmax.f32 %v508_v58, %v509_v60  ;;  %v530_v0 = vsel %vm94_vm1, %v5703_v61, -inf  ;;  %v5709_v1 = vpop.f32.mrb[15].mxu1 }
 0x253   :  { %v531_v3 = vmax.f32 %v529_v62, %v530_v0  ;;  %v516_v4 = vsel %vm94_vm1, %v5709_v1, -inf }
 0x254   :  { %v517_v5 = vmax.f32 %v515_v2, %v516_v4 }
 0x257   :  { %v5065_v6 = vpop.f32.mrb[16].mxu1 }
 0x258   :  { %v497_v7 = vsel %vm94_vm1, %v5065_v6, -inf  ;;  %v417_v8 = vpop.f32.mrb[17].mxu1 }
 0x259   :  { %v498_v9 = vmax.f32 %v496_v43, %v497_v7  ;;  %v483_v10 = vsel %vm94_vm1, %v417_v8, -inf  ;;  %v5066_v11 = vpop.f32.mrb[18].mxu1 }
 0x25a   :  { %v484_v12 = vmax.f32 %v482_v47, %v483_v10  ;;  %v504_v13 = vsel %vm94_vm1, %v5066_v11, -inf  ;;  %v5718_v14 = vpop.f32.mrb[19].mxu1 }
 0x25b   :  { %v505_v15 = vmax.f32 %v503_v51, %v504_v13  ;;  %v490_v16 = vsel %vm94_vm1, %v5718_v14, -inf }
 0x25c   :  { %v491_v17 = vmax.f32 %v489_v53, %v490_v16 }
 0x25f   :  { %v5722_v18 = vpop.f32.mrb[20].mxu1 }
 0x260   :  { %v525_v19 = vsel %vm94_vm1, %v5722_v18, -inf  ;;  %v5726_v21 = vpop.f32.mrb[21].mxu1 }
 0x261   :  { %v526_v23 = vmax.f32 %v524_v59, %v525_v19  ;;  %v511_v24 = vsel %vm94_vm1, %v5726_v21, -inf  ;;  %v5730_v26 = vpop.f32.mrb[22].mxu1 }
 0x262   :  { %v512_v22 = vmax.f32 %v510_v63, %v511_v24  ;;  %v532_v27 = vsel %vm94_vm1, %v5730_v26, -inf  ;;  %v5734_v28 = vpop.f32.mrb[23].mxu1 }
 0x263   :  { %v5736_v25 = vmax.f32 %v531_v3, %v532_v27  ;;  %v518_v20 = vsel %vm94_vm1, %v5734_v28, -inf }
 0x264   :  { %v5740_v30 = vmax.f32 %v517_v5, %v518_v20 }
 0x267   :  { %v5073_v39 = vpop.f32.mrb[24].mxu1 }
 0x268   :  { %v499_v40 = vsel %vm94_vm1, %v5073_v39, -inf  ;;  %v449_v42 = vpop.f32.mrb[25].mxu1 }
 0x269   :  { %v500_v43 = vmax.f32 %v498_v9, %v499_v40  ;;  %v485_v44 = vsel %vm94_vm1, %v449_v42, -inf  ;;  %v5074_v46 = vpop.f32.mrb[26].mxu1 }
 0x26a   :  { %v486_v47 = vmax.f32 %v484_v12, %v485_v44  ;;  %v506_v48 = vsel %vm94_vm1, %v5074_v46, -inf  ;;  %v452_v50 = vpop.f32.mrb[27].mxu1 }
 0x26b   :  { %v538_v51 = vsub.f32 %v5649_v29, %v500_v43  ;;  %v546_v52 = vsub.f32 %v5667_v38, %v500_v43  ;;  %v554_v53 = vsub.f32 %v5065_v6, %v500_v43  ;;  %v562_v55 = vsub.f32 %v5073_v39, %v500_v43 }
 0x26c   :  { %v536_v56 = vsub.f32 %v5653_v31, %v486_v47  ;;  %v544_v58 = vsub.f32 %v5673_v41, %v486_v47  ;;  %v552_v59 = vsub.f32 %v417_v8, %v486_v47  ;;  %v560_v60 = vsub.f32 %v449_v42, %v486_v47 }
 0x26d   :  { %v572_v62 = vmul.f32 1.442695, %v538_v51  ;;  %v588_v63 = vmul.f32 1.442695, %v546_v52  ;;  %v604_v0 = vmul.f32 1.442695, %v554_v53  ;;  %v507_v2 = vmax.f32 %v505_v15, %v506_v48 }
 0x26e   :  { %v620_v3 = vmul.f32 1.442695, %v562_v55  ;;  %v568_v4 = vmul.f32 1.442695, %v536_v56  ;;  %v584_v5 = vmul.f32 1.442695, %v544_v58 }
 0x26f   :  { %5288 = vpow2.f32 %v572_v62  ;;  %v600_v7 = vmul.f32 1.442695, %v552_v59  ;;  %v539_v29 = vsub.f32 %v5655_v32, %v507_v2  ;;  %v5077_v38 = vpop.f32.mrb[28].mxu1  ;;  %v547_v6 = vsub.f32 %v5679_v45, %v507_v2 }
 0x270   :  { %5290 = vpow2.f32 %v588_v63  ;;  %v555_v31 = vsub.f32 %v5066_v11, %v507_v2  ;;  %v563_v9 = vsub.f32 %v5074_v46, %v507_v2  ;;  %v5751_v41 = vpop.f32.mrb[29].mxu1  ;;  %v616_v8 = vmul.f32 1.442695, %v560_v60 }
 0x271   :  { %5292 = vpow2.f32 %v604_v0  ;;  %v492_v10 = vsel %vm94_vm1, %v452_v50, -inf  ;;  %v527_v12 = vsel %vm94_vm1, %v5077_v38, -inf  ;;  %v5755_v13 = vpop.f32.mrb[30].mxu1  ;;  %v574_v15 = vmul.f32 1.442695, %v539_v29 }
 0x272   :  { %5294 = vpow2.f32 %v620_v3  ;;  %v590_v16 = vmul.f32 1.442695, %v547_v6  ;;  %v606_v32 = vmul.f32 1.442695, %v555_v31  ;;  %v493_v19 = vmax.f32 %v491_v17, %v492_v10  ;;  %v5759_v11 = vpop.f32.mrb[31].mxu1 }
 0x273   :  { %5296 = vpow2.f32 %v568_v4  ;;  %v528_v24 = vmax.f32 %v526_v23, %v527_v12  ;;  %v513_v45 = vsel %vm94_vm1, %v5751_v41, -inf  ;;  %v622_v27 = vmul.f32 1.442695, %v563_v9 }
 0x274   :  { %5298 = vpow2.f32 %v584_v5  ;;  %v514_v20 = vmax.f32 %v512_v22, %v513_v45  ;;  %v534_v39 = vsel %vm94_vm1, %v5755_v13, -inf  ;;  %v537_v40 = vsub.f32 %v5657_v33, %v493_v19 }
 0x275   :  { %5300 = vpow2.f32 %v600_v7  ;;  %v545_v42 = vsub.f32 %v5685_v49, %v493_v19  ;;  %v553_v43 = vsub.f32 %v5718_v14, %v493_v19  ;;  %v561_v17 = vsub.f32 %v452_v50, %v493_v19 }
 0x276   :  { %5302 = vpow2.f32 %v616_v8  ;;  %v542_v23 = vsub.f32 %v5659_v34, %v528_v24  ;;  %v550_v44 = vsub.f32 %v5691_v54, %v528_v24  ;;  %v570_v46 = vmul.f32 1.442695, %v537_v40 }
 0x277   :  { %5304 = vpow2.f32 %v574_v15  ;;  %v586_v47 = vmul.f32 1.442695, %v545_v42  ;;  %v5770_v22 = vsel %vm94_vm1, %v5759_v11, -inf  ;;  %v602_v48 = vmul.f32 1.442695, %v553_v43 }
 0x278   :  { %5306 = vpow2.f32 %v590_v16  ;;  %v558_v33 = vsub.f32 %v5722_v18, %v528_v24  ;;  %v566_v49 = vsub.f32 %v5077_v38, %v528_v24  ;;  %v618_v14 = vmul.f32 1.442695, %v561_v17 }
 0x279   :  { %v5773_v51 = vpop.eup %5288  ;;  %5308 = vpow2.f32 %v606_v32  ;;  %v580_v50 = vmul.f32 1.442695, %v542_v23  ;;  %v540_v34 = vsub.f32 %v5661_v35, %v514_v20  ;;  %v596_v53 = vmul.f32 1.442695, %v550_v44 }
 0x27a   :  { %v5776_v54 = vpop.eup %5290  ;;  %v646_v52 = vsel %vm94_vm1, %v5773_v51, 0.0  ;;  %5310 = vpow2.f32 %v622_v27  ;;  %v612_v55 = vmul.f32 1.442695, %v558_v33  ;;  %v548_v58 = vsub.f32 %v5697_v57, %v514_v20 }
 0x27b   :  { %v5780_v56 = vpop.eup %5292  ;;  %v647_v18 = vsel %vm94_vm1, %v5776_v54, 0.0  ;;  %5312 = vpow2.f32 %v570_v46  ;;  %v556_v59 = vsub.f32 %v5726_v21, %v514_v20  ;;  %v628_v62 = vmul.f32 1.442695, %v566_v49  ;;  %v5797_v21 = vpop.permute.xlu0 %728 }
 0x27c   :  { %v5786_v60 = vpop.eup %5294  ;;  %v648_v35 = vadd.f32 %v647_v18, %v646_v52  ;;  %5314 = vpow2.f32 %v586_v47  ;;  %v564_v63 = vsub.f32 %v5751_v41, %v514_v20  ;;  %v649_v2 = vsel %vm94_vm1, %v5780_v56, 0.0 }
 0x27d   :  { %v5789_v0 = vpop.eup %5296  ;;  %v651_v3 = vsel %vm94_vm1, %v5786_v60, 0.0  ;;  %5316 = vpow2.f32 %v602_v48  ;;  %v576_v4 = vmul.f32 1.442695, %v540_v34  ;;  %v592_v29 = vmul.f32 1.442695, %v548_v58 }
 0x27e   :  { %v5795_v57 = vpop.eup %5298  ;;  %v650_v5 = vadd.f32 %v649_v2, %v648_v35  ;;  %v632_v7 = vsel %vm94_vm1, %v5789_v0, 0.0  ;;  %5318 = vpow2.f32 %v618_v14  ;;  %v608_v31 = vmul.f32 1.442695, %v556_v59 }
 0x27f   :  { %v5801_v38 = vpop.eup %5300  ;;  %v633_v6 = vsel %vm94_vm1, %v5795_v57, 0.0  ;;  %5320 = vpow2.f32 %v580_v50  ;;  %v535_v9 = vmax.f32 %v5736_v25, %v534_v39  ;;  %v624_v12 = vmul.f32 1.442695, %v564_v63  ;;  %v5828_v42 = vpop.permute.xlu0 %732 }
 0x280   :  { %v5806_v41 = vpop.eup %5302  ;;  %v652_v8 = vadd.f32 %v651_v3, %v650_v5  ;;  %v634_v10 = vadd.f32 %v633_v6, %v632_v7  ;;  %5322 = vpow2.f32 %v596_v53  ;;  %v635_v16 = vsel %vm94_vm1, %v5801_v38, 0.0 }
 0x281   :  { %v5808_v15 = vpop.eup %5304  ;;  %5324 = vpow2.f32 %v612_v55  ;;  %v543_v32 = vsub.f32 %v5663_v36, %v535_v9  ;;  %v551_v19 = vsub.f32 %v5703_v61, %v535_v9  ;;  %v559_v27 = vsub.f32 %v5730_v26, %v535_v9 }
 0x282   :  { %v5814_v24 = vpop.eup %5306  ;;  %5326 = vrcp.f32 %v652_v8  ;;  %v636_v25 = vadd.f32 %v635_v16, %v634_v10  ;;  %v653_v45 = vsel %vm94_vm1, %v5808_v15, 0.0  ;;  %v637_v39 = vsel %vm94_vm1, %v5806_v41, 0.0 }
 0x283   :  { %v5819_v20 = vpop.eup %5308  ;;  %v654_v40 = vsel %vm94_vm1, %v5814_v24, 0.0  ;;  %5328 = vpow2.f32 %v628_v62  ;;  %v567_v36 = vsub.f32 %v5755_v13, %v535_v9  ;;  %v582_v23 = vmul.f32 1.442695, %v543_v32  ;;  %v5838_v13 = vpop.permute.xlu1 %730 }
 0x284   :  { %v5826_v61 = vpop.eup %5310  ;;  %v638_v43 = vadd.f32 %v637_v39, %v636_v25  ;;  %v655_v17 = vadd.f32 %v654_v40, %v653_v45  ;;  %5330 = vpow2.f32 %v576_v4  ;;  %v656_v44 = vsel %vm94_vm1, %v5819_v20, 0.0  ;;  %v5852_v18 = vpop.permute.xlu0 %736 }
 0x285   :  { %v5830_v26 = vpop.eup %5312  ;;  %v658_v46 = vsel %vm94_vm1, %v5826_v61, 0.0  ;;  %5332 = vpow2.f32 %v592_v29  ;;  %v598_v47 = vmul.f32 1.442695, %v551_v19  ;;  %v614_v14 = vmul.f32 1.442695, %v559_v27 }
 0x286   :  { %v5836_v48 = vpop.eup %5314  ;;  %5334 = vrcp.f32 %v638_v43  ;;  %v657_v33 = vadd.f32 %v656_v44, %v655_v17  ;;  %v639_v49 = vsel %vm94_vm1, %v5830_v26, 0.0  ;;  %v630_v52 = vmul.f32 1.442695, %v567_v36 }
 0x287   :  { %v5842_v50 = vpop.eup %5316  ;;  %v640_v34 = vsel %vm94_vm1, %v5836_v48, 0.0  ;;  %5336 = vpow2.f32 %v608_v31  ;;  %v5848_v53 = vmax.f32 %v5740_v30, %v5770_v22  ;;  %v5876_v31 = vpop.permute.xlu1 %734 }
 0x288   :  { %v5850_v55 = vpop.eup %5318  ;;  %v659_v58 = vadd.f32 %v658_v46, %v657_v33  ;;  %v641_v59 = vadd.f32 %v640_v34, %v639_v49  ;;  %v642_v35 = vsel %vm94_vm1, %v5842_v50, 0.0  ;;  %5338 = vpow2.f32 %v624_v12  ;;  %v5888_v45 = vpop.permute.xlu0 %740 }
 0x289   :  { %v5856_v62 = vpop.eup %5320  ;;  %v644_v63 = vsel %vm94_vm1, %v5850_v55, 0.0  ;;  %5340 = vpow2.f32 %v582_v23  ;;  %v541_v30 = vsub.f32 %v5665_v37, %v5848_v53  ;;  %v549_v22 = vsub.f32 %v5709_v1, %v5848_v53 }
 0x28a   :  { %v5864_v2 = vpop.eup %5322  ;;  %5342 = vrcp.f32 %v659_v58  ;;  %v643_v3 = vadd.f32 %v642_v35, %v641_v59  ;;  %v674_v4 = vsel %vm94_vm1, %v5856_v62, 0.0  ;;  %v557_v5 = vsub.f32 %v5734_v28, %v5848_v53 }
 0x28b   :  { %v5870_v7 = vpop.eup %5324  ;;  %v675_v29 = vsel %vm94_vm1, %v5864_v2, 0.0  ;;  %5344 = vpow2.f32 %v598_v47  ;;  %v565_v37 = vsub.f32 %v5759_v11, %v5848_v53  ;;  %v578_v1 = vmul.f32 1.442695, %v541_v30  ;;  %v5900_v17 = vpop.permute.xlu1 %738 }
 0x28c   :  { %v5327_v6 = vpop.eup %5326  ;;  %v645_v9 = vadd.f32 %v644_v63, %v643_v3  ;;  %v676_v8 = vadd.f32 %v675_v29, %v674_v4  ;;  %v677_v10 = vsel %vm94_vm1, %v5870_v7, 0.0  ;;  %5346 = vpow2.f32 %v614_v14 }
 0x28d   :  { %v5880_v28 = vpop.eup %5328  ;;  %v698_v12 = vmul.f32 %v5327_v6, %v5773_v51  ;;  %v706_v16 = vmul.f32 %v5327_v6, %v5776_v54  ;;  %v714_v32 = vmul.f32 %v5327_v6, %v5780_v56  ;;  %v722_v19 = vmul.f32 %v5327_v6, %v5786_v60 }
 0x28e   :  { %v5886_v25 = vpop.eup %5330  ;;  %5348 = vrcp.f32 %v645_v9  ;;  %v678_v27 = vadd.f32 %v677_v10, %v676_v8  ;;  %v679_v39 = vsel %vm94_vm1, %v5880_v28, 0.0  ;;  %v594_v40 = vmul.f32 1.442695, %v549_v22 }
 0x28f   :  { %v5892_v36 = vpop.eup %5332  ;;  %v754_v51 = vmul.f32 %v5797_v21, %v698_v12  ;;  %v762_v54 = vmul.f32 %v5828_v42, %v706_v16  ;;  %v770_v56 = vmul.f32 %v5852_v18, %v714_v32  ;;  %v778_v60 = vmul.f32 %v5888_v45, %v722_v19 }
 0x290   :  { %v5898_v43 = vpop.eup %5334  ;;  %v680_v23 = vadd.f32 %v679_v39, %v678_v27  ;;  %v660_v44 = vsel %vm94_vm1, %v5886_v25, 0.0  ;;  %v661_v46 = vsel %vm94_vm1, %v5892_v36, 0.0  ;;  %5350 = vpow2.f32 %v630_v52 }
 0x291   :  { %v5906_v47 = vpop.eup %5336  ;;  %v798_v33 = vsel %vm94_vm1, %v754_v51, 0.0  ;;  %v799_v49 = vsel %vm94_vm1, %v762_v54, 0.0  ;;  %v801_v14 = vsel %vm94_vm1, %v770_v56, 0.0  ;;  %v803_v34 = vsel %vm94_vm1, %v778_v60, 0.0 }
 0x292   :  { %v5912_v58 = vpop.eup %5338  ;;  %v800_v59 = vadd.f32 %v799_v49, %v798_v33  ;;  %v5916_v35 = vmul.f32 %v5898_v43, %v5806_v41  ;;  %5352 = vrcp.f32 %v680_v23  ;;  %v662_v63 = vadd.f32 %v661_v46, %v660_v44 }
 0x293   :  { %v5918_v52 = vpop.eup %5340  ;;  %v663_v30 = vsel %vm94_vm1, %v5906_v47, 0.0  ;;  %v665_v22 = vsel %vm94_vm1, %v5912_v58, 0.0  ;;  %5354 = vpow2.f32 %v578_v1  ;;  %v610_v3 = vmul.f32 1.442695, %v557_v5  ;;  %v5934_v5 = vpop.permute.xlu1 %742 }
 0x294   :  { %v5343_v4 = vpop.eup %5342  ;;  %v802_v29 = vadd.f32 %v801_v14, %v800_v59  ;;  %v664_v6 = vadd.f32 %v663_v30, %v662_v63  ;;  %v681_v9 = vsel %vm94_vm1, %v5918_v52, 0.0  ;;  %5356 = vpow2.f32 %v594_v40 }
 0x295   :  { %v5926_v41 = vpop.eup %5344  ;;  %v699_v8 = vmul.f32 %v5343_v4, %v5808_v15  ;;  %v707_v10 = vmul.f32 %v5343_v4, %v5814_v24  ;;  %v715_v12 = vmul.f32 %v5343_v4, %v5819_v20  ;;  %v723_v16 = vmul.f32 %v5343_v4, %v5826_v61 }
 0x296   :  { %v5932_v32 = vpop.eup %5346  ;;  %v5936_v1 = vadd.f32 %v803_v34, %v802_v29  ;;  %v666_v19 = vadd.f32 %v665_v22, %v664_v6  ;;  %v682_v27 = vsel %vm94_vm1, %v5926_v41, 0.0  ;;  %5358 = vpow2.f32 %v610_v3 }
 0x297   :  { %v755_v39 = vmul.f32 %v5838_v13, %v699_v8  ;;  %v763_v15 = vmul.f32 %v5876_v31, %v707_v10  ;;  %v771_v24 = vmul.f32 %v5900_v17, %v715_v12  ;;  %v779_v20 = vmul.f32 %v5934_v5, %v723_v16 }
 0x298   :  { %v5349_v61 = vpop.eup %5348  ;;  %5360 = vrcp.f32 %v666_v19  ;;  %v683_v40 = vadd.f32 %v682_v27, %v681_v9  ;;  %v684_v51 = vsel %vm94_vm1, %v5932_v32, 0.0  ;;  %v626_v54 = vmul.f32 1.442695, %v565_v37 }
 0x299   :  { %v805_v56 = vsel %vm94_vm1, %v755_v39, 0.0  ;;  %v806_v60 = vsel %vm94_vm1, %v763_v15, 0.0  ;;  %v808_v23 = vsel %vm94_vm1, %v771_v24, 0.0  ;;  %v810_v44 = vsel %vm94_vm1, %v779_v20, 0.0 }
 0x29a   :  { %v5953_v46 = vpop.eup %5350  ;;  %v807_v33 = vadd.f32 %v806_v60, %v805_v56  ;;  %v721_v49 = vmul.f32 %v5349_v61, %v5850_v55  ;;  %v685_v14 = vadd.f32 %v684_v51, %v683_v40  ;;  %5362 = vpow2.f32 %v626_v54 }
 0x29b   :  { %v686_v34 = vsel %vm94_vm1, %v5953_v46, 0.0  ;;  %v696_v11 = vmul.f32 %v5898_v43, %v5789_v0  ;;  %v697_v53 = vmul.f32 %v5349_v61, %v5830_v26  ;;  %v704_v37 = vmul.f32 %v5898_v43, %v5795_v57 }
 0x29c   :  { %v5963_v59 = vpop.eup %5352  ;;  %v809_v63 = vadd.f32 %v808_v23, %v807_v33  ;;  %v687_v30 = vadd.f32 %v686_v34, %v685_v14  ;;  %v705_v22 = vmul.f32 %v5349_v61, %v5836_v48  ;;  %v712_v55 = vmul.f32 %v5898_v43, %v5801_v38 }
 0x29d   :  { %v5968_v3 = vpop.eup %5354  ;;  %v5972_v4 = vmul.f32 %v5963_v59, %v5880_v28  ;;  %v713_v0 = vmul.f32 %v5349_v61, %v5842_v50  ;;  %v752_v26 = vmul.f32 %v5797_v21, %v696_v11  ;;  %v753_v57 = vmul.f32 %v5838_v13, %v697_v53 }
 0x29e   :  { %v5977_v29 = vpop.eup %5356  ;;  %v811_v6 = vadd.f32 %v810_v44, %v809_v63  ;;  %5364 = vrcp.f32 %v687_v30  ;;  %v667_v48 = vsel %vm94_vm1, %v5968_v3, 0.0  ;;  %v760_v38 = vmul.f32 %v5828_v42, %v704_v37 }
 0x29f   :  { %v668_v43 = vsel %vm94_vm1, %v5977_v29, 0.0  ;;  %v761_v28 = vmul.f32 %v5876_v31, %v705_v22  ;;  %v768_v50 = vmul.f32 %v5852_v18, %v712_v55  ;;  %v769_v9 = vmul.f32 %v5900_v17, %v713_v0 }
 0x2a0   :  { %v5987_v8 = vpop.eup %5358  ;;  %v669_v10 = vadd.f32 %v668_v43, %v667_v48  ;;  %v776_v12 = vmul.f32 %v5888_v45, %v5916_v35  ;;  %v784_v16 = vsel %vm94_vm1, %v752_v26, 0.0  ;;  %v777_v27 = vmul.f32 %v5934_v5, %v721_v49 }
 0x2a1   :  { %v670_v19 = vsel %vm94_vm1, %v5987_v8, 0.0  ;;  %v785_v39 = vsel %vm94_vm1, %v760_v38, 0.0  ;;  %v791_v15 = vsel %vm94_vm1, %v753_v57, 0.0  ;;  %v787_v40 = vsel %vm94_vm1, %v768_v50, 0.0 }
 0x2a2   :  { %v5361_v24 = vpop.eup %5360  ;;  %v671_v20 = vadd.f32 %v670_v19, %v669_v10  ;;  %v786_v61 = vadd.f32 %v785_v39, %v784_v16  ;;  %v792_v51 = vsel %vm94_vm1, %v761_v28, 0.0  ;;  %v789_v54 = vsel %vm94_vm1, %v776_v12, 0.0 }
 0x2a3   :  { %v724_v35 = vmul.f32 %v5361_v24, %v5912_v58  ;;  %v793_v56 = vadd.f32 %v792_v51, %v791_v15  ;;  %v794_v60 = vsel %vm94_vm1, %v769_v9, 0.0  ;;  %v841_v33 = vpack.c.bf16 %v811_v6, %v5936_v1 }
 0x2a4   :  { %v5363_v23 = vpop.eup %5362  ;;  %v788_v44 = vadd.f32 %v787_v40, %v786_v61  ;;  %v700_v49 = vmul.f32 %v5361_v24, %v5886_v25  ;;  %v708_v14 = vmul.f32 %v5361_v24, %v5892_v36  ;;  %v796_v53 = vsel %vm94_vm1, %v777_v27, 0.0 }
 0x2a5   :  { %v672_v34 = vsel %vm94_vm1, %v5363_v23, 0.0  ;;  %v795_v11 = vadd.f32 %v794_v60, %v793_v56  ;;  %v716_v58 = vmul.f32 %v5361_v24, %v5906_v47  ;;  %v780_v25 = vmul.f32 %v5888_v45, %v724_v35 }
 0x2a6   :  { %v673_v37 = vadd.f32 %v672_v34, %v671_v20  ;;  %v790_v63 = vadd.f32 %v789_v54, %v788_v44  ;;  %v756_v30 = vmul.f32 %v5797_v21, %v700_v49  ;;  %v764_v22 = vmul.f32 %v5828_v42, %v708_v14 }
 0x2a7   :  { %v797_v55 = vadd.f32 %v796_v53, %v795_v11  ;;  %v772_v1 = vmul.f32 %v5852_v18, %v716_v58  ;;  %v702_v36 = vmul.f32 %v5963_v59, %v5856_v62  ;;  %v710_v57 = vmul.f32 %v5963_v59, %v5864_v2 }
 0x2a8   :  { %v5365_v0 = vpop.eup %5364  ;;  %5366 = vrcp.f32 %v673_v37  ;;  %v812_v26 = vsel %vm94_vm1, %v756_v30, 0.0  ;;  %v813_v47 = vsel %vm94_vm1, %v764_v22, 0.0  ;;  %v718_v62 = vmul.f32 %v5963_v59, %v5870_v7 }
 0x2a9   :  { %v727_v6 = vmul.f32 %v5365_v0, %v5953_v46  ;;  %v840_v48 = vpack.c.bf16 %v797_v55, %v790_v63  ;;  %v814_v38 = vadd.f32 %v813_v47, %v812_v26  ;;  %v815_v43 = vsel %vm94_vm1, %v772_v1, 0.0 }
 0x2aa   :  { %v703_v28 = vmul.f32 %v5365_v0, %v5918_v52  ;;  %v711_v50 = vmul.f32 %v5365_v0, %v5926_v41  ;;  %v719_v9 = vmul.f32 %v5365_v0, %v5932_v32  ;;  %v817_v2 = vsel %vm94_vm1, %v780_v25, 0.0 }
 0x2ab   :  { %5083 = vmatprep.mubr.msk.bf16.mxu0 %vm94_vm1, %v840_v48  ;;  %v816_v10 = vadd.f32 %v815_v43, %v814_v38  ;;  %v758_v46 = vmul.f32 %v5797_v21, %v702_v36  ;;  %v766_v12 = vmul.f32 %v5828_v42, %v710_v57  ;;  %v774_v16 = vmul.f32 %v5852_v18, %v718_v62  ;;  %v5400_v36 = vld [vmem:[%s7493_s23] sm:$0xff]  ;;  %v5401_v57 = vld [vmem:[%s7493_s23 + $0x8] sm:$0xff]  ;;  %v5402_v48 = vld [vmem:[%s7493_s23 + $0x10] sm:$0xff] }
 0x2ac   :  { %5084 = vmatmul.mubr.msk.bf16.vlgmr.msra.gmra.mrb[8].mxu0 %vm94_vm1, %v841_v33  ;;  %v759_v52 = vmul.f32 %v5838_v13, %v703_v28  ;;  %v767_v41 = vmul.f32 %v5876_v31, %v711_v50  ;;  %v782_v7 = vmul.f32 %v5888_v45, %v5972_v4  ;;  %v775_v59 = vmul.f32 %v5900_v17, %v719_v9  ;;  %v5403_v50 = vld [vmem:[%s7493_s23 + $0x18] sm:$0xff] }
 0x2ad   :  { %v818_v32 = vadd.f32 %v817_v2, %v816_v10  ;;  %v826_v19 = vsel %vm94_vm1, %v758_v46, 0.0  ;;  %v827_v21 = vsel %vm94_vm1, %v766_v12, 0.0  ;;  %v783_v42 = vmul.f32 %v5934_v5, %v727_v6 }
 0x2ae   :  { %v828_v27 = vadd.f32 %v827_v21, %v826_v19  ;;  %v833_v39 = vsel %vm94_vm1, %v759_v52, 0.0  ;;  %v829_v15 = vsel %vm94_vm1, %v774_v16, 0.0  ;;  %v834_v24 = vsel %vm94_vm1, %v767_v41, 0.0  ;;  %v5405_v21 = vld [vmem:[%s7493_s23 + $0x28] sm:$0xff] }
 0x2af   :  { %v835_v20 = vadd.f32 %v834_v24, %v833_v39  ;;  %v831_v45 = vsel %vm94_vm1, %v782_v7, 0.0  ;;  %v836_v4 = vsel %vm94_vm1, %v775_v59, 0.0  ;;  %v838_v35 = vsel %vm94_vm1, %v783_v42, 0.0  ;;  %v5407_v24 = vld [vmem:[%s7493_s23 + $0x38] sm:$0xff] }
 0x2b0   :  { %v830_v18 = vadd.f32 %v829_v15, %v828_v27  ;;  %v5406_v27 = vld [vmem:[%s7493_s23 + $0x30] sm:$0xff] }
 0x2b1   :  { %v837_v51 = vadd.f32 %v836_v4, %v835_v20 }
 0x2b2   :  { %v5367_v61 = vpop.eup %5366  ;;  %v832_v40 = vadd.f32 %v831_v45, %v830_v18 }
 0x2b3   :  { %v725_v54 = vmul.f32 %v5367_v61, %v5363_v23  ;;  %v701_v56 = vmul.f32 %v5367_v61, %v5968_v3  ;;  %v709_v60 = vmul.f32 %v5367_v61, %v5977_v29  ;;  %v717_v44 = vmul.f32 %v5367_v61, %v5987_v8 }
 0x2b4   :  { %v839_v33 = vadd.f32 %v838_v35, %v837_v51 }
 0x2b5   :  { %v757_v49 = vmul.f32 %v5838_v13, %v701_v56  ;;  %v765_v14 = vmul.f32 %v5876_v31, %v709_v60  ;;  %v773_v34 = vmul.f32 %v5900_v17, %v717_v44  ;;  %v781_v53 = vmul.f32 %v5934_v5, %v725_v54  ;;  %v4436_v13 = vld [vmem:[%s7470_s6] ss:$0 sm:$0xff] }
 0x2b6   :  { %v843_v11 = vpack.c.bf16 %v839_v33, %v832_v40 }
 0x2b7   :  { %v819_v58 = vsel %vm94_vm1, %v757_v49, 0.0  ;;  %v820_v23 = vsel %vm94_vm1, %v765_v14, 0.0  ;;  %v822_v3 = vsel %vm94_vm1, %v773_v34, 0.0  ;;  %v824_v8 = vsel %vm94_vm1, %v781_v53, 0.0 }
 0x2b8   :  { %v821_v37 = vadd.f32 %v820_v23, %v819_v58 }
 0x2ba   :  { %v823_v29 = vadd.f32 %v822_v3, %v821_v37 }
 0x2bc   :  { %v825_v63 = vadd.f32 %v824_v8, %v823_v29 }
 0x2be   :  { %v842_v30 = vpack.c.bf16 %v825_v63, %v818_v32  ;;  %v5404_v32 = vld [vmem:[%s7493_s23 + $0x20] sm:$0xff] }
 0x2c0   :  { %5087 = vmatprep.mubr.msk.bf16.mxu0 %vm94_vm1, %v842_v30 }
 0x2c1   :  { %5088 = vmatmul.mubr.msk.bf16.gmra.mrb[12].mxu0 %vm94_vm1, %v843_v11 }
 0x37f   :  { %v5085_v31 = vpop.f32.mrb[8].mxu0 }
 0x380   :  { %v912_v17 = vpop.f32.mrb[9].mxu0  ;;  %v921_v5 = vadd.f32 %v5085_v31, %v4436_v13 }
 0x381   :  { %v913_v22 = vadd.f32 %v4436_v13, %v912_v17  ;;  %v5086_v55 = vpop.f32.mrb[10].mxu0 }
 0x382   :  { %v915_v1 = vpop.f32.mrb[11].mxu0  ;;  %v924_v26 = vadd.f32 %v5086_v55, %v4436_v13  ;;  %v945_v38 = vadd.f32 %v5402_v48, %v921_v5 }
 0x383   :  { %v916_v25 = vadd.f32 %v4436_v13, %v915_v1  ;;  %v943_v0 = vadd.f32 %v5400_v36, %v913_v22 }
 0x384   :  { %v959_v28 = vsel %vm94_vm1, %v945_v38, 0.0  ;;  %v946_v62 = vadd.f32 %v5403_v50, %v924_v26  ;;  %v1098_v50 = vld [vmem:[%s7471_s9 + $0x40] sm:$0xff] }
 0x385   :  { %v953_v47 = vsel %vm94_vm1, %v943_v0, 0.0  ;;  %v944_v6 = vadd.f32 %v5401_v57, %v916_v25 }
 0x386   :  { %954 = vadd.xlane.f32.xlu0 %v953_v47  ;;  %v962_v9 = vsel %vm94_vm1, %v946_v62, 0.0 }
 0x387   :  { %v956_v43 = vsel %vm94_vm1, %v944_v6, 0.0 }
 0x388   :  { %957 = vadd.xlane.f32.xlu1 %v956_v43 }
 0x38a   :  { %960 = vadd.xlane.f32.xlu0 %v959_v28  ;;  %v1090_v28 = vld [vmem:[%s7471_s9] sm:$0xff] }
 0x38e   :  { %963 = vadd.xlane.f32.xlu0 %v962_v9  ;;  %v4446_v9 = vcombine.high %v1090_v28, %v1098_v50 }
 0x390   :  { %1378 = vmatprep.subr.bf16.mxu0 %v4446_v9 }
 0x394   :  { %v5089_v10 = vpop.f32.mrb[12].mxu0 }
 0x395   :  { %v928_v2 = vpop.f32.mrb[13].mxu0  ;;  %v937_v46 = vadd.f32 %v5089_v10, %v4436_v13  ;;  %v1100_v10 = vld [vmem:[%s7471_s9 + $0x50] sm:$0xff] }
 0x396   :  { %v929_v12 = vadd.f32 %v4436_v13, %v928_v2  ;;  %v5090_v52 = vpop.f32.mrb[14].mxu0  ;;  %v4445_v2 = vcombine.low %v1090_v28, %v1098_v50 }
 0x397   :  { %v931_v41 = vpop.f32.mrb[15].mxu0  ;;  %v940_v16 = vadd.f32 %v5090_v52, %v4436_v13  ;;  %v949_v39 = vadd.f32 %v5406_v27, %v937_v46  ;;  %v1106_v52 = vld [vmem:[%s7471_s9 + $0x80] sm:$0x33]  ;;  %v6160_v27 = vld [vmem:[%s7471_s9 + $0x8] sm:$0xff] }
 0x398   :  { %v932_v7 = vadd.f32 %v4436_v13, %v931_v41  ;;  %v947_v59 = vadd.f32 %v5404_v32, %v929_v12  ;;  %1379 = vmatpush1.bf16.msra.mxu0 %v4445_v2  ;;  %v1108_v41 = vld [vmem:[%s7471_s9 + $0x90] sm:$0x33]  ;;  %v6220_v2 = vld [vmem:[%s7471_s9 + $0x18] sm:$0xff] }
 0x399   :  { %v950_v18 = vadd.f32 %v5407_v24, %v940_v16  ;;  %v971_v20 = vsel %vm94_vm1, %v949_v39, 0.0  ;;  %v4462_v16 = vcombine.high %v1106_v52, %v1106_v52  ;;  %v4466_v32 = vcombine.high %v1108_v41, %v1108_v41 }
 0x39a   :  { %v965_v19 = vsel %vm94_vm1, %v947_v59, 0.0  ;;  %v948_v42 = vadd.f32 %v5405_v21, %v932_v7  ;;  %v4461_v7 = vcombine.low %v1106_v52, %v1106_v52 }
 0x39b   :  { %966 = vadd.xlane.f32.xlu1 %v965_v19  ;;  %v974_v45 = vsel %vm94_vm1, %v950_v18, 0.0  ;;  %4477 = vmatprep.subr.msk.bf16.mxu0 %vm107_vm0, %v4462_v16 }
 0x39c   :  { %v968_v15 = vsel %vm94_vm1, %v948_v42, 0.0  ;;  %v1331_v19 = vsel %vm107_vm0, %v4461_v7, 0 }
 0x39d   :  { %969 = vadd.xlane.f32.xlu0 %v968_v15  ;;  %1381 = vmatpush1.bf16.msra.mxu0 %v1331_v19 }
 0x39f   :  { %972 = vadd.xlane.f32.xlu1 %v971_v20  ;;  %v6179_v20 = vld [vmem:[%s7471_s9 + $0x60] sm:$0xff] }
 0x3a1   :  { %975 = vadd.xlane.f32.xlu0 %v974_v45 }
 0x413   :  { %v955_v4 = vpop.xlane.xlu0 %954 }
 0x414   :  { %v978_v61 = vmul.f32 0.05, %v955_v4 }
 0x415   :  { %v958_v40 = vpop.xlane.xlu1 %957 }
 0x416   :  { %v6093_v51 = vsub.f32 %v943_v0, %v978_v61  ;;  %v979_v35 = vmul.f32 0.05, %v958_v40 }
 0x417   :  { %v961_v54 = vpop.xlane.xlu0 %960 }
 0x418   :  { %v6095_v56 = vsub.f32 %v944_v6, %v979_v35  ;;  %v980_v60 = vmul.f32 0.05, %v961_v54  ;;  %v994_v44 = vmul.f32 %v6093_v51, %v6093_v51 }
 0x41a   :  { %v6099_v33 = vsub.f32 %v945_v38, %v980_v60  ;;  %v1002_v49 = vsel %vm94_vm1, %v994_v44, 0.0  ;;  %v995_v14 = vmul.f32 %v6095_v56, %v6095_v56 }
 0x41b   :  { %v964_v34 = vpop.xlane.xlu0 %963  ;;  %1003 = vadd.xlane.f32.xlu1 %v1002_v49 }
 0x41c   :  { %v981_v11 = vmul.f32 0.05, %v964_v34  ;;  %v1005_v53 = vsel %vm94_vm1, %v995_v14, 0.0  ;;  %v996_v58 = vmul.f32 %v6099_v33, %v6099_v33 }
 0x41d   :  { %1006 = vadd.xlane.f32.xlu0 %v1005_v53 }
 0x41e   :  { %v6107_v23 = vsub.f32 %v946_v62, %v981_v11  ;;  %v1008_v37 = vsel %vm94_vm1, %v996_v58, 0.0  ;;  %v1092_v62 = vld [vmem:[%s7471_s9 + $0x10] sm:$0xff] }
 0x41f   :  { %1009 = vadd.xlane.f32.xlu1 %v1008_v37  ;;  %v4449_v46 = vcombine.low %v1092_v62, %v1100_v10  ;;  %v4450_v12 = vcombine.high %v1092_v62, %v1100_v10 }
 0x420   :  { %v997_v3 = vmul.f32 %v6107_v23, %v6107_v23 }
 0x421   :  { %1524 = vmatprep.subr.bf16.mxu1 %v4450_v12 }
 0x422   :  { %v1011_v29 = vsel %vm94_vm1, %v997_v3, 0.0  ;;  %1525 = vmatpush1.bf16.msra.mxu1 %v4449_v46  ;;  %v6188_v3 = vld [vmem:[%s7472_s7] ss:$0 sm:$0xff]  ;;  %v6225_v46 = vld [vmem:[%s7471_s9 + $0x58] sm:$0xff] }
 0x423   :  { %1012 = vadd.xlane.f32.xlu0 %v1011_v29  ;;  %4487 = vmatprep.subr.msk.bf16.mxu1 %vm107_vm0, %v4466_v32 }
 0x428   :  { %v967_v8 = vpop.xlane.xlu1 %966 }
 0x429   :  { %v982_v63 = vmul.f32 0.05, %v967_v8 }
 0x42a   :  { %v970_v30 = vpop.xlane.xlu0 %969 }
 0x42b   :  { %v6113_v13 = vsub.f32 %v947_v59, %v982_v63  ;;  %v983_v31 = vmul.f32 0.05, %v970_v30  ;;  %v4465_v59 = vcombine.low %v1108_v41, %v1108_v41 }
 0x42c   :  { %v973_v17 = vpop.xlane.xlu1 %972 }
 0x42d   :  { %v6115_v5 = vsub.f32 %v948_v42, %v983_v31  ;;  %v984_v22 = vmul.f32 0.05, %v973_v17  ;;  %v998_v55 = vmul.f32 %v6113_v13, %v6113_v13  ;;  %v1343_v21 = vsel %vm107_vm0, %v4465_v59, 0  ;;  %v6196_v17 = vld [vmem:[%s7473_s8] ss:$0 sm:$0xff] }
 0x42e   :  { %v976_v1 = vpop.xlane.xlu0 %975  ;;  %1527 = vmatpush1.bf16.msra.mxu1 %v1343_v21  ;;  %v5411_v42 = vmov 0   ;;  %v4452_v21 = vcombine.high %v6220_v2, %v6225_v46 }
 0x42f   :  { %v6119_v25 = vsub.f32 %v949_v39, %v984_v22  ;;  %v985_v36 = vmul.f32 0.05, %v976_v1  ;;  %v1014_v0 = vsel %vm94_vm1, %v998_v55, 0.0  ;;  %v999_v26 = vmul.f32 %v6115_v5, %v6115_v5  ;;  %1410 = vmatprep.mubr.bf16.mxu0 %v5411_v42  ;;  %1556 = vmatprep.mubr.bf16.mxu1 %v5411_v42  ;;  %v6165_v39 = vld [vmem:[%s7471_s9 + $0x48] sm:$0xff] }
 0x430   :  { %1015 = vadd.xlane.f32.xlu1 %v1014_v0  ;;  %v4447_v15 = vcombine.low %v6160_v27, %v6165_v39  ;;  %v4448_v24 = vcombine.high %v6160_v27, %v6165_v39  ;;  %v1107_v55 = vld [vmem:[%s7471_s9 + $0x88] sm:$0x33]  ;;  %v6248_v27 = vld [vmem:[%s7471_s9 + $0x30] sm:$0xff] }
 0x431   :  { %v6124_v47 = vsub.f32 %v950_v18, %v985_v36  ;;  %v1017_v57 = vsel %vm94_vm1, %v999_v26, 0.0  ;;  %v1000_v6 = vmul.f32 %v6119_v25, %v6119_v25  ;;  %v6174_v18 = vld [vmem:[%s7471_s9 + $0x20] sm:$0xff]  ;;  %v4464_v50 = vcombine.high %v1107_v55, %v1107_v55  ;;  %v6253_v39 = vld [vmem:[%s7471_s9 + $0x70] sm:$0xff] }
 0x432   :  { %1018 = vadd.xlane.f32.xlu0 %v1017_v57  ;;  %1451 = vmatprep.subr.bf16.mxu0 %v4448_v24  ;;  %v4453_v45 = vcombine.low %v6174_v18, %v6179_v20  ;;  %v4454_v4 = vcombine.high %v6174_v18, %v6179_v20  ;;  %v1110_v26 = vld [vmem:[%s7471_s9 + $0xa0] sm:$0x33]  ;;  %v4458_v20 = vcombine.high %v6248_v27, %v6253_v39 }
 0x433   :  { %v1020_v48 = vsel %vm94_vm1, %v1000_v6, 0.0  ;;  %v1001_v38 = vmul.f32 %v6124_v47, %v6124_v47  ;;  %v4470_v10 = vcombine.high %v1110_v26, %v1110_v26 }
 0x434   :  { %1021 = vadd.xlane.f32.xlu1 %v1020_v48  ;;  %1670 = vmatprep.subr.bf16.mxu1 %v4454_v4  ;;  %v4463_v48 = vcombine.low %v1107_v55, %v1107_v55 }
 0x435   :  { %v1023_v43 = vsel %vm94_vm1, %v1001_v38, 0.0 }
 0x436   :  { %1024 = vadd.xlane.f32.xlu0 %v1023_v43  ;;  %v1337_v7 = vsel %vm107_vm0, %v4463_v48, 0 }
 0x4a8   :  { %v1004_v61 = vpop.xlane.xlu1 %1003 }
 0x4a9   :  { %v1026_v40 = vmul.f32 0.05, %v1004_v61 }
 0x4aa   :  { %v1007_v35 = vpop.xlane.xlu0 %1006 }
 0x4ab   :  { %v1034_v54 = vadd.f32 1e-05, %v1026_v40  ;;  %v1027_v60 = vmul.f32 0.05, %v1007_v35 }
 0x4ac   :  { %v1010_v44 = vpop.xlane.xlu1 %1009 }
 0x4ad   :  { %5368 = vrsqrt.f32 %v1034_v54  ;;  %v1035_v49 = vadd.f32 1e-05, %v1027_v60  ;;  %v1028_v14 = vmul.f32 0.05, %v1010_v44 }
 0x4af   :  { %5370 = vrsqrt.f32 %v1035_v49  ;;  %v1036_v34 = vadd.f32 1e-05, %v1028_v14 }
 0x4b0   :  { %v1013_v11 = vpop.xlane.xlu0 %1012 }
 0x4b1   :  { %5372 = vrsqrt.f32 %v1036_v34  ;;  %v1029_v53 = vmul.f32 0.05, %v1013_v11 }
 0x4b3   :  { %v1037_v58 = vadd.f32 1e-05, %v1029_v53 }
 0x4b5   :  { %5374 = vrsqrt.f32 %v1037_v58 }
 0x4b7   :  { %v5369_v37 = vpop.eup %5368 }
 0x4b8   :  { %v1050_v29 = vmul.f32 %v5369_v37, %v6093_v51 }
 0x4b9   :  { %v5371_v8 = vpop.eup %5370 }
 0x4ba   :  { %v1064_v63 = vmul.f32 %v6188_v3, %v1050_v29  ;;  %v1051_v30 = vmul.f32 %v5371_v8, %v6095_v56  ;;  %v1112_v29 = vld [vmem:[%s7471_s9 + $0xb0] sm:$0x33]  ;;  %v4451_v8 = vcombine.low %v6220_v2, %v6225_v46  ;;  %v5138_v2 = vld [vmem:[%s7474_s11 + $0x8] sm:$0xff]  }
 0x4bb   :  { %v5373_v31 = vpop.eup %5372  ;;  %v4473_v55 = vcombine.low %v1112_v29, %v1112_v29 }
 0x4bc   :  { %v1065_v22 = vmul.f32 %v6188_v3, %v1051_v30  ;;  %v6203_v51 = vadd.f32 %v6196_v17, %v1064_v63  ;;  %v1052_v56 = vmul.f32 %v5373_v31, %v6099_v33  ;;  %v4469_v33 = vcombine.low %v1110_v26, %v1110_v26  ;;  %v1111_v63 = vld [vmem:[%s7471_s9 + $0xa8] sm:$0x33] }
 0x4bd   :  { %v1016_v1 = vpop.xlane.xlu1 %1015 }
 0x4be   :  { %v6206_v36 = vadd.f32 %v6196_v17, %v1065_v22  ;;  %v1030_v0 = vmul.f32 0.05, %v1016_v1  ;;  %v1066_v12 = vmul.f32 %v6188_v3, %v1052_v56  ;;  %v1355_v4 = vsel %vm107_vm0, %v4469_v33, 0  ;;  %v1103_v1 = vld [vmem:[%s7471_s9 + $0x68] sm:$0xff] }
 0x4bf   :  { %v5375_v57 = vpop.eup %5374  ;;  %v1019_v6 = vpop.xlane.xlu0 %1018  ;;  %v4457_v22 = vcombine.low %v6248_v27, %v6253_v39  ;;  %v4474_v56 = vcombine.high %v1112_v29, %v1112_v29  ;;  %v5137_v33 = vld [vmem:[%s7474_s11 + $0x48] sm:$0xff]   ;;  %v5147_v27 = vld [vmem:[%s7474_s11 + $0x70] sm:$0xff]  }
 0x4c0   :  { %v6214_v38 = vpack.c.bf16 %v6206_v36, %v6203_v51  ;;  %v1053_v43 = vmul.f32 %v5375_v57, %v6107_v23  ;;  %v1038_v28 = vadd.f32 1e-05, %v1030_v0  ;;  %v1031_v62 = vmul.f32 0.05, %v1019_v6  ;;  %v5148_v39 = vld [vmem:[%s7474_s11 + $0x30] sm:$0xff]   ;;  %v5172_v29 = vld [vmem:[%s7474_s11 + $0xa8] sm:$0xff]  }
 0x4c1   :  { %v1022_v9 = vpop.xlane.xlu1 %1021  ;;  %v4471_v0 = vcombine.low %v1111_v63, %v1111_v63  ;;  %v1367_v6 = vsel %vm107_vm0, %v4473_v55, 0 }
 0x4c2   :  { %v1067_v23 = vmul.f32 %v6188_v3, %v1053_v43  ;;  %5376 = vrsqrt.f32 %v1038_v28  ;;  %v1032_v52 = vmul.f32 0.05, %v1022_v9  ;;  %4478 = vmatmul.mubr.msk.bf16.vlgmr.msra.gmra.mrb[16].mxu0 %vm94_vm1, %v6214_v38  ;;  %4488 = vmatmul.mubr.msk.bf16.vlgmr.msra.gmra.mrb[32].mxu1 %vm94_vm1, %v6214_v38  ;;  %v1039_v41 = vadd.f32 1e-05, %v1031_v62  ;;  %v5135_v43 = vld [vmem:[%s7474_s11 + $0x40] sm:$0xff]   ;;  %v1105_v62 = vld [vmem:[%s7471_s9 + $0x78] sm:$0xff] }
 0x4c3   :  { %v1025_v16 = vpop.xlane.xlu0 %1024  ;;  %1452 = vmatpush1.bf16.msra.mxu0 %v4447_v15  ;;  %1420 = vmatprep.mubr.bf16.mxu0 %v5411_v42  ;;  %v6256_v15 = vadd.f32 %v6196_v17, %v1066_v12  ;;  %v1361_v48 = vsel %vm107_vm0, %v4471_v0, 0  ;;  %v5136_v9 = vld [vmem:[%s7474_s11] sm:$0xff]   ;;  %v5139_v12 = vld [vmem:[%s7474_s11 + $0x50] sm:$0xff]  }
 0x4c4   :  { %v6236_v32 = vadd.f32 %v6196_v17, %v1067_v23  ;;  %v1040_v59 = vadd.f32 1e-05, %v1032_v52  ;;  %v1033_v19 = vmul.f32 0.05, %v1025_v16  ;;  %1566 = vmatprep.mubr.bf16.mxu1 %v5411_v42  ;;  %4482 = vmatprep.subr.msk.bf16.mxu0 %vm107_vm0, %v4464_v50  ;;  %5378 = vrsqrt.f32 %v1039_v41  ;;  %v1097_v50 = vld [vmem:[%s7471_s9 + $0x38] sm:$0xff]  ;;  %v5140_v23 = vld [vmem:[%s7474_s11 + $0x10] sm:$0xff]  }
 0x4c5   :  { %1671 = vmatpush1.bf16.msra.mxu1 %v4453_v45  ;;  %v4460_v46 = vcombine.high %v1097_v50, %v1105_v62  ;;  %v5141_v52 = vld [vmem:[%s7474_s11 + $0x58] sm:$0xff]   ;;  %v5143_v16 = vld [vmem:[%s7474_s11 + $0x60] sm:$0xff]  }
 0x4c6   :  { %v1041_v24 = vadd.f32 1e-05, %v1033_v19  ;;  %4497 = vmatprep.subr.msk.bf16.mxu1 %vm107_vm0, %v4470_v10  ;;  %5380 = vrsqrt.f32 %v1040_v59  ;;  %v6262_v18 = vpack.c.bf16 %v6236_v32, %v6256_v15  ;;  %v4472_v10 = vcombine.high %v1111_v63, %v1111_v63  ;;  %v5142_v41 = vld [vmem:[%s7474_s11 + $0x18] sm:$0xff]   ;;  %v5145_v59 = vld [vmem:[%s7474_s11 + $0x68] sm:$0xff]   ;;  %v5176_v63 = vld [vmem:[%s7474_s11 + $0xb0] sm:$0xff]  }
 0x4c7   :  { %1454 = vmatpush1.bf16.msra.mxu0 %v1337_v7  ;;  %v5144_v7 = vld [vmem:[%s7474_s11 + $0x20] sm:$0xff]   ;;  %v5146_v19 = vld [vmem:[%s7474_s11 + $0x28] sm:$0xff]  }
 0x4c8   :  { %5382 = vrsqrt.f32 %v1041_v24  ;;  %1597 = vmatprep.subr.bf16.mxu0 %v4452_v21  ;;  %v1113_v21 = vld [vmem:[%s7471_s9 + $0xb8] sm:$0x33] }
 0x4c9   :  { %1673 = vmatpush1.bf16.msra.mxu1 %v1355_v4  ;;  %v5149_v24 = vld [vmem:[%s7474_s11 + $0x78] sm:$0xff]  }
 0x4ca   :  { %4479 = vmatmul.mubr.msk.bf16.gmra.mrb[20].mxu0 %vm94_vm1, %v6262_v18  ;;  %4489 = vmatmul.mubr.msk.bf16.gmra.mrb[36].mxu1 %vm94_vm1, %v6262_v18  ;;  %v5150_v4 = vld [vmem:[%s7474_s11 + $0x38] sm:$0xff]  }
 0x4cb   :  { %1430 = vmatprep.mubr.bf16.mxu0 %v5411_v42  ;;  %1576 = vmatprep.mubr.bf16.mxu1 %v5411_v42 }
 0x4cc   :  { %v5377_v45 = vpop.eup %5376  ;;  %1816 = vmatprep.subr.bf16.mxu1 %v4458_v20  ;;  %v4475_v20 = vcombine.low %v1113_v21, %v1113_v21 }
 0x4cd   :  { %v1054_v61 = vmul.f32 %v5377_v45, %v6113_v13  ;;  %v4459_v45 = vcombine.low %v1097_v50, %v1105_v62 }
 0x4ce   :  { %v5379_v40 = vpop.eup %5378 }
 0x4cf   :  { %v1068_v35 = vmul.f32 %v6188_v3, %v1054_v61  ;;  %v1055_v54 = vmul.f32 %v5379_v40, %v6115_v5  ;;  %v5153_v61 = vld [vmem:[%s7474_s11 + $0x140] sm:$0xff]   ;;  %v4476_v40 = vcombine.high %v1113_v21, %v1113_v21 }
 0x4d0   :  { %v5381_v60 = vpop.eup %5380 }
 0x4d1   :  { %v1069_v49 = vmul.f32 %v6188_v3, %v1055_v54  ;;  %v6278_v34 = vadd.f32 %v6196_v17, %v1068_v35  ;;  %v1056_v53 = vmul.f32 %v5381_v60, %v6119_v25  ;;  %v1373_v35 = vsel %vm107_vm0, %v4475_v20, 0  ;;  %v5151_v54 = vld [vmem:[%s7474_s11 + $0xc0] sm:$0xff]  }
 0x4d2   :  { %v5383_v44 = vpop.eup %5382  ;;  %v5152_v60 = vld [vmem:[%s7474_s11 + $0x80] sm:$0xff]  }
 0x4d3   :  { %v1057_v14 = vmul.f32 %v5383_v44, %v6124_v47  ;;  %v6281_v11 = vadd.f32 %v6196_v17, %v1069_v49  ;;  %v1070_v58 = vmul.f32 %v6188_v3, %v1056_v53  ;;  %v5155_v44 = vld [vmem:[%s7474_s11 + $0xc8] sm:$0xff]   ;;  %v5160_v53 = vld [vmem:[%s7474_s11 + $0x90] sm:$0xff]  }
 0x4d4   :  { %v5156_v49 = vld [vmem:[%s7474_s11 + $0x88] sm:$0xff]  }
 0x4d5   :  { %v6286_v13 = vpack.c.bf16 %v6281_v11, %v6278_v34  ;;  %v1071_v5 = vmul.f32 %v6188_v3, %v1057_v14  ;;  %v6300_v47 = vadd.f32 %v6196_v17, %v1070_v58  ;;  %v1109_v3 = vld [vmem:[%s7471_s9 + $0x98] sm:$0x33]  ;;  %v5159_v14 = vld [vmem:[%s7474_s11 + $0xd0] sm:$0xff]   ;;  %v5167_v58 = vld [vmem:[%s7474_s11 + $0xe0] sm:$0xff]  }
 0x4d6   :  { %v4468_v30 = vcombine.high %v1109_v3, %v1109_v3  ;;  %v4467_v31 = vcombine.low %v1109_v3, %v1109_v3  ;;  %v5168_v3 = vld [vmem:[%s7474_s11 + $0xa0] sm:$0xff]  }
 0x4d7   :  { %4480 = vmatmul.mubr.msk.bf16.gmra.mrb[24].mxu0 %vm94_vm1, %v6286_v13  ;;  %4490 = vmatmul.mubr.msk.bf16.gmra.mrb[40].mxu1 %vm94_vm1, %v6286_v13  ;;  %v6297_v25 = vadd.f32 %v6196_v17, %v1071_v5  ;;  %v1095_v17 = vld [vmem:[%s7471_s9 + $0x28] sm:$0xff]  ;;  %v5164_v5 = vld [vmem:[%s7474_s11 + $0x98] sm:$0xff]  }
 0x4d8   :  { %1440 = vmatprep.mubr.bf16.mxu0 %v5411_v42  ;;  %1586 = vmatprep.mubr.bf16.mxu1 %v5411_v42  ;;  %v1349_v26 = vsel %vm107_vm0, %v4467_v31, 0  ;;  %v4456_v57 = vcombine.high %v1095_v17, %v1103_v1  ;;  %v4455_v28 = vcombine.low %v1095_v17, %v1103_v1  ;;  %v5183_v31 = vld [vmem:[%s7474_s11 + $0x1c0] sm:$0xff]   ;;  %v1118_v17 = vlaneseq }
 0x4d9   :  { %v6304_v37 = vpack.c.bf16 %v6297_v25, %v6300_v47 }
 0x4df   :  { %4481 = vmatmul.mubr.msk.bf16.gmra.mrb[28].mxu0 %vm94_vm1, %v6304_v37  ;;  %4491 = vmatmul.mubr.msk.bf16.gmra.mrb[44].mxu1 %vm94_vm1, %v6304_v37 }
 0x4e0   :  { %1483 = vmatprep.mubr.bf16.mxu0 %v5411_v42  ;;  %1702 = vmatprep.mubr.bf16.mxu1 %v5411_v42 }
 0x4e7   :  { %4483 = vmatmul.mubr.msk.bf16.vlgmr.msra.gmra.mrb[32].mxu0 %vm94_vm1, %v6214_v38  ;;  %4498 = vmatmul.mubr.msk.bf16.vlgmr.msra.gmra.mrb[48].mxu1 %vm94_vm1, %v6214_v38 }
 0x4e8   :  { %1598 = vmatpush1.bf16.msra.mxu0 %v4451_v8  ;;  %1493 = vmatprep.mubr.bf16.mxu0 %v5411_v42  ;;  %v5175_v8 = vld [vmem:[%s7474_s11 + $0xf0] sm:$0xff]  }
 0x4e9   :  { %1712 = vmatprep.mubr.bf16.mxu1 %v5411_v42  ;;  %4492 = vmatprep.subr.msk.bf16.mxu0 %vm107_vm0, %v4468_v30  ;;  %v5180_v30 = vld [vmem:[%s7474_s11 + $0xb8] sm:$0xff]  }
 0x4ea   :  { %1817 = vmatpush1.bf16.msra.mxu1 %v4457_v22  ;;  %v6520_v22 = vshrl.u32 %v1118_v17, 7 }
 0x4eb   :  { %4507 = vmatprep.subr.msk.bf16.mxu1 %vm107_vm0, %v4474_v56 }
 0x4ec   :  { %1600 = vmatpush1.bf16.msra.mxu0 %v1349_v26  ;;  %v1120_v55 = vsub.s32 0, %v6520_v22  ;;  %v1136_v1 = vsub.s32 4, %v6520_v22  ;;  %v1124_v56 = vsub.s32 1, %v6520_v22  ;;  %v1140_v0 = vsub.s32 5, %v6520_v22 }
 0x4ed   :  { %1743 = vmatprep.subr.bf16.mxu0 %v4456_v57 }
 0x4ee   :  { %1819 = vmatpush1.bf16.msra.mxu1 %v1367_v6 }
 0x4ef   :  { %4484 = vmatmul.mubr.msk.bf16.gmra.mrb[36].mxu0 %vm94_vm1, %v6262_v18  ;;  %4499 = vmatmul.mubr.msk.bf16.gmra.mrb[52].mxu1 %vm94_vm1, %v6262_v18 }
 0x4f0   :  { %1503 = vmatprep.mubr.bf16.mxu0 %v5411_v42  ;;  %1722 = vmatprep.mubr.bf16.mxu1 %v5411_v42 }
 0x4f1   :  { %4706 = vmatprep.subr.bf16.mxu1 %v5135_v43 }
 0x4f7   :  { %4485 = vmatmul.mubr.msk.bf16.gmra.mrb[40].mxu0 %vm94_vm1, %v6286_v13  ;;  %4500 = vmatmul.mubr.msk.bf16.gmra.mrb[56].mxu1 %vm94_vm1, %v6286_v13 }
 0x4f8   :  { %1513 = vmatprep.mubr.bf16.mxu0 %v5411_v42  ;;  %1732 = vmatprep.mubr.bf16.mxu1 %v5411_v42 }
 0x4ff   :  { %4486 = vmatmul.mubr.msk.bf16.gmra.mrb[44].mxu0 %vm94_vm1, %v6304_v37  ;;  %4501 = vmatmul.mubr.msk.bf16.gmra.mrb[60].mxu1 %vm94_vm1, %v6304_v37 }
 0x500   :  { %1629 = vmatprep.mubr.bf16.mxu0 %v5411_v42  ;;  %1848 = vmatprep.mubr.bf16.mxu1 %v5411_v42 }
 0x507   :  { %4493 = vmatmul.mubr.msk.bf16.vlgmr.msra.gmra.mrb[48].mxu0 %vm94_vm1, %v6214_v38  ;;  %4508 = vmatmul.mubr.msk.bf16.vlgmr.msra.gmra.mrb[64].mxu1 %vm94_vm1, %v6214_v38 }
 0x508   :  { %1744 = vmatpush1.bf16.msra.mxu0 %v4455_v28  ;;  %1639 = vmatprep.mubr.bf16.mxu0 %v5411_v42 }
 0x509   :  { %1858 = vmatprep.mubr.bf16.mxu1 %v5411_v42  ;;  %4502 = vmatprep.subr.msk.bf16.mxu0 %vm107_vm0, %v4472_v10 }
 0x50a   :  { %4707 = vmatpush3.bf16.msra.mxu1 %v5136_v9 }
 0x50b   :  { %4708 = vmatprep.subr.bf16.mxu1 %v5137_v33 }
 0x50c   :  { %1746 = vmatpush1.bf16.msra.mxu0 %v1361_v48 }
 0x50d   :  { %1889 = vmatprep.subr.bf16.mxu0 %v4460_v46 }
 0x50e   :  { %4709 = vmatpush3.bf16.msra.mxu1 %v5138_v2 }
 0x50f   :  { %4494 = vmatmul.mubr.msk.bf16.gmra.mrb[52].mxu0 %vm94_vm1, %v6262_v18  ;;  %4509 = vmatmul.mubr.msk.bf16.gmra.mrb[68].mxu1 %vm94_vm1, %v6262_v18 }
 0x510   :  { %1649 = vmatprep.mubr.bf16.mxu0 %v5411_v42  ;;  %1868 = vmatprep.mubr.bf16.mxu1 %v5411_v42 }
 0x511   :  { %4710 = vmatprep.subr.bf16.mxu1 %v5139_v12 }
 0x512   :  { %4711 = vmatpush3.bf16.msra.mxu1 %v5140_v23 }
 0x513   :  { %4712 = vmatprep.subr.bf16.mxu1 %v5141_v52 }
 0x516   :  { %4713 = vmatpush3.bf16.msra.mxu1 %v5142_v41 }
 0x517   :  { %4495 = vmatmul.mubr.msk.bf16.gmra.mrb[56].mxu0 %vm94_vm1, %v6286_v13  ;;  %4510 = vmatmul.mubr.msk.bf16.gmra.mrb[72].mxu1 %vm94_vm1, %v6286_v13 }
 0x518   :  { %1659 = vmatprep.mubr.bf16.mxu0 %v5411_v42  ;;  %1878 = vmatprep.mubr.bf16.mxu1 %v5411_v42 }
 0x519   :  { %4714 = vmatprep.subr.bf16.mxu1 %v5143_v16 }
 0x51a   :  { %4715 = vmatpush3.bf16.msra.mxu1 %v5144_v7 }
 0x51b   :  { %4716 = vmatprep.subr.bf16.mxu1 %v5145_v59 }
 0x51e   :  { %4717 = vmatpush3.bf16.msra.mxu1 %v5146_v19 }
 0x51f   :  { %4496 = vmatmul.mubr.msk.bf16.gmra.mrb[60].mxu0 %vm94_vm1, %v6304_v37  ;;  %4511 = vmatmul.mubr.msk.bf16.gmra.mrb[76].mxu1 %vm94_vm1, %v6304_v37 }
 0x520   :  { %1775 = vmatprep.mubr.bf16.mxu0 %v5411_v42  ;;  %4718 = vmatprep.subr.bf16.mxu1 %v5147_v27 }
 0x522   :  { %4719 = vmatpush3.bf16.msra.mxu1 %v5148_v39 }
 0x523   :  { %4720 = vmatprep.subr.bf16.mxu1 %v5149_v24 }
 0x526   :  { %4721 = vmatpush3.bf16.msra.mxu1 %v5150_v4 }
 0x527   :  { %4503 = vmatmul.mubr.msk.bf16.vlgmr.msra.gmra.mrb[64].mxu0 %vm94_vm1, %v6214_v38  ;;  %4786 = vmatprep.subr.bf16.mxu1 %v5153_v61 }
 0x528   :  { %1890 = vmatpush1.bf16.msra.mxu0 %v4459_v45  ;;  %1785 = vmatprep.mubr.bf16.mxu0 %v5411_v42 }
 0x529   :  { %4512 = vmatprep.subr.msk.bf16.mxu0 %vm107_vm0, %v4476_v40 }
 0x52c   :  { %1892 = vmatpush1.bf16.msra.mxu0 %v1373_v35 }
 0x52d   :  { %4746 = vmatprep.subr.bf16.mxu0 %v5151_v54 }
 0x52f   :  { %4504 = vmatmul.mubr.msk.bf16.gmra.mrb[68].mxu0 %vm94_vm1, %v6262_v18 }
 0x530   :  { %1795 = vmatprep.mubr.bf16.mxu0 %v5411_v42 }
 0x537   :  { %4505 = vmatmul.mubr.msk.bf16.gmra.mrb[72].mxu0 %vm94_vm1, %v6286_v13 }
 0x538   :  { %1805 = vmatprep.mubr.bf16.mxu0 %v5411_v42 }
 0x53f   :  { %4506 = vmatmul.mubr.msk.bf16.gmra.mrb[76].mxu0 %vm94_vm1, %v6304_v37 }
 0x540   :  { %1921 = vmatprep.mubr.bf16.mxu0 %v5411_v42 }
 0x547   :  { %4513 = vmatmul.mubr.msk.bf16.vlgmr.msra.gmra.mrb[80].mxu0 %vm94_vm1, %v6214_v38  ;;  %v5163_v38 = vld [vmem:[%s7474_s11 + $0xd8] sm:$0xff]  }
 0x548   :  { %1931 = vmatprep.mubr.bf16.mxu0 %v5411_v42  ;;  %4747 = vmatpush3.bf16.msra.mxu0 %v5152_v60 }
 0x549   :  { %4748 = vmatprep.subr.bf16.mxu0 %v5155_v44 }
 0x54c   :  { %4749 = vmatpush3.bf16.msra.mxu0 %v5156_v49  ;;  %v5154_v49 = vld [vmem:[%s7474_s11 + $0x100] sm:$0xff]  }
 0x54d   :  { %4750 = vmatprep.subr.bf16.mxu0 %v5159_v14 }
 0x54f   :  { %4514 = vmatmul.mubr.msk.bf16.gmra.mrb[84].mxu0 %vm94_vm1, %v6262_v18  ;;  %v5171_v18 = vld [vmem:[%s7474_s11 + $0xe8] sm:$0xff]  }
 0x550   :  { %1941 = vmatprep.mubr.bf16.mxu0 %v5411_v42  ;;  %4751 = vmatpush3.bf16.msra.mxu0 %v5160_v53 }
 0x551   :  { %4752 = vmatprep.subr.bf16.mxu0 %v5163_v38 }
 0x554   :  { %4753 = vmatpush3.bf16.msra.mxu0 %v5164_v5 }
 0x555   :  { %4754 = vmatprep.subr.bf16.mxu0 %v5167_v58  ;;  %v5157_v58 = vld [vmem:[%s7474_s11 + $0x148] sm:$0xff]  }
 0x557   :  { %4515 = vmatmul.mubr.msk.bf16.gmra.mrb[88].mxu0 %vm94_vm1, %v6286_v13  ;;  %v5179_v13 = vld [vmem:[%s7474_s11 + $0xf8] sm:$0xff]  }
 0x558   :  { %1951 = vmatprep.mubr.bf16.mxu0 %v5411_v42  ;;  %4755 = vmatpush3.bf16.msra.mxu0 %v5168_v3 }
 0x559   :  { %4756 = vmatprep.subr.bf16.mxu0 %v5171_v18 }
 0x55c   :  { %4757 = vmatpush3.bf16.msra.mxu0 %v5172_v29 }
 0x55d   :  { %4758 = vmatprep.subr.bf16.mxu0 %v5175_v8 }
 0x55f   :  { %4516 = vmatmul.mubr.msk.bf16.gmra.mrb[92].mxu0 %vm94_vm1, %v6304_v37  ;;  %v6527_v37 = vld [vmem:[%s7475_s10] sm:$0xff] }
 0x560   :  { %4759 = vmatpush3.bf16.msra.mxu0 %v5176_v63  ;;  %v6534_v26 = vrot.slane %v6527_v37, %v1120_v55  ;;  %v6539_v57 = vrot.slane %v6527_v37, %v1136_v1  ;;  %v6544_v6 = vrot.slane %v6527_v37, %v1124_v56  ;;  %v6549_v48 = vrot.slane %v6527_v37, %v1140_v0 }
 0x561   :  { %4760 = vmatprep.subr.bf16.mxu0 %v5179_v13 }
 0x564   :  { %4761 = vmatpush3.bf16.msra.mxu0 %v5180_v30 }
 0x565   :  { %4826 = vmatprep.subr.bf16.mxu0 %v5183_v31 }
 0x595   :  { %v1412_v43 = vpop.f32.mrb[16].mxu0  ;;  %v1558_v28 = vpop.f32.mrb[32].mxu1 }
 0x596   :  { %v1413_v50 = vadd.f32 %v1412_v43, %v6534_v26  ;;  %v1559_v62 = vadd.f32 %v1558_v28, %v6539_v57  ;;  %v1414_v9 = vpop.f32.mrb[17].mxu0  ;;  %v1560_v10 = vpop.f32.mrb[33].mxu1  ;;  %v5158_v28 = vld [vmem:[%s7474_s11 + $0x108] sm:$0xff]  }
 0x597   :  { %v1415_v33 = vadd.f32 %v1414_v9, %v6544_v6  ;;  %v1561_v2 = vadd.f32 %v1560_v10, %v6549_v48  ;;  %v1416_v46 = vpop.f32.mrb[18].mxu0  ;;  %v1562_v12 = vpop.f32.mrb[34].mxu1 }
 0x598   :  { %v1417_v23 = vadd.f32 %v1416_v46, %v6534_v26  ;;  %v1563_v52 = vadd.f32 %v1562_v12, %v6539_v57  ;;  %v1418_v41 = vpop.f32.mrb[19].mxu0  ;;  %v1564_v16 = vpop.f32.mrb[35].mxu1  ;;  %v1962_v19 = vmax.f32 %v1413_v50, 0.0  ;;  %v1966_v21 = vmax.f32 %v1559_v62, 0.0 }
 0x599   :  { %v1419_v7 = vadd.f32 %v1418_v41, %v6544_v6  ;;  %v1565_v59 = vadd.f32 %v1564_v16, %v6549_v48  ;;  %v1963_v24 = vmax.f32 %v1415_v33, 0.0  ;;  %v1967_v4 = vmax.f32 %v1561_v2, 0.0  ;;  %v5161_v33 = vld [vmem:[%s7474_s11 + $0x150] sm:$0xff]  }
 0x59a   :  { %v1978_v27 = vmax.f32 %v1417_v23, 0.0  ;;  %v1982_v39 = vmax.f32 %v1563_v52, 0.0 }
 0x59b   :  { %v1979_v20 = vmax.f32 %v1419_v7, 0.0  ;;  %v1983_v45 = vmax.f32 %v1565_v59, 0.0  ;;  %v5162_v59 = vld [vmem:[%s7474_s11 + $0x110] sm:$0xff]  }
 0x59c   :  { %v2090_v61 = vpack.c.bf16 %v1978_v27, %v1962_v19  ;;  %v6559_v40 = vpack.c.bf16 %v1982_v39, %v1966_v21  ;;  %v5165_v19 = vld [vmem:[%s7474_s11 + $0x158] sm:$0xff]   ;;  %v5169_v27 = vld [vmem:[%s7474_s11 + $0x160] sm:$0xff]  }
 0x59d   :  { %v2091_v35 = vpack.c.bf16 %v1979_v20, %v1963_v24  ;;  %v6561_v54 = vpack.c.bf16 %v1983_v45, %v1967_v4  ;;  %v1422_v60 = vpop.f32.mrb[20].mxu0  ;;  %v1568_v44 = vpop.f32.mrb[36].mxu1  ;;  %v5166_v21 = vld [vmem:[%s7474_s11 + $0x118] sm:$0xff]  }
 0x59e   :  { %v1423_v14 = vadd.f32 %v1422_v60, %v6534_v26  ;;  %v1569_v53 = vadd.f32 %v1568_v44, %v6539_v57  ;;  %v1424_v38 = vpop.f32.mrb[21].mxu0  ;;  %v1570_v5 = vpop.f32.mrb[37].mxu1 }
 0x59f   :  { %v1425_v3 = vadd.f32 %v1424_v38, %v6544_v6  ;;  %v1571_v18 = vadd.f32 %v1570_v5, %v6549_v48  ;;  %v1426_v29 = vpop.f32.mrb[22].mxu0  ;;  %v1572_v8 = vpop.f32.mrb[38].mxu1  ;;  %3217 = vmatprep.mubr.bf16.mxu1 %v2091_v35 }
 0x5a0   :  { %v1427_v63 = vadd.f32 %v1426_v29, %v6534_v26  ;;  %v1573_v13 = vadd.f32 %v1572_v8, %v6539_v57  ;;  %v1428_v30 = vpop.f32.mrb[23].mxu0  ;;  %v1574_v31 = vpop.f32.mrb[39].mxu1  ;;  %3218 = vmatmul.mubr.bf16.vlgmr.msra.gmra.mrb[80].mxu1 %v2090_v61  ;;  %v1994_v50 = vmax.f32 %v1423_v14, 0.0  ;;  %v1998_v62 = vmax.f32 %v1569_v53, 0.0  ;;  %v5170_v14 = vld [vmem:[%s7474_s11 + $0x120] sm:$0xff]  }
 0x5a1   :  { %v1429_v17 = vadd.f32 %v1428_v30, %v6544_v6  ;;  %v1575_v43 = vadd.f32 %v1574_v31, %v6549_v48  ;;  %4787 = vmatpush3.bf16.msra.mxu1 %v5154_v49  ;;  %v1995_v2 = vmax.f32 %v1425_v3, 0.0  ;;  %v1999_v46 = vmax.f32 %v1571_v18, 0.0  ;;  %v5173_v3 = vld [vmem:[%s7474_s11 + $0x168] sm:$0xff]  }
 0x5a2   :  { %v2010_v9 = vmax.f32 %v1427_v63, 0.0  ;;  %v2014_v10 = vmax.f32 %v1573_v13, 0.0  ;;  %4788 = vmatprep.subr.bf16.mxu1 %v5157_v58  ;;  %v1128_v8 = vsub.s32 2, %v6520_v22 }
 0x5a3   :  { %v2011_v12 = vmax.f32 %v1429_v17, 0.0  ;;  %v2015_v23 = vmax.f32 %v1575_v43, 0.0 }
 0x5a4   :  { %v2106_v52 = vpack.c.bf16 %v2010_v9, %v1994_v50  ;;  %v6583_v41 = vpack.c.bf16 %v2014_v10, %v1998_v62  ;;  %v5174_v62 = vld [vmem:[%s7474_s11 + $0x128] sm:$0xff]  }
 0x5a5   :  { %v2107_v16 = vpack.c.bf16 %v2011_v12, %v1995_v2  ;;  %v6585_v7 = vpack.c.bf16 %v2015_v23, %v1999_v46  ;;  %4789 = vmatpush3.bf16.msra.mxu1 %v5158_v28 }
 0x5a6   :  { %4790 = vmatprep.subr.bf16.mxu1 %v5161_v33  ;;  %v5177_v33 = vld [vmem:[%s7474_s11 + $0x170] sm:$0xff]  }
 0x5a7   :  { %3225 = vmatprep.mubr.bf16.mxu1 %v2107_v16  ;;  %v1132_v16 = vsub.s32 3, %v6520_v22 }
 0x5a8   :  { %3226 = vmatmul.mubr.bf16.gmra.mrb[84].mxu1 %v2106_v52  ;;  %v6627_v52 = vld [vmem:[%s7475_s10 + $0x8] sm:$0xff] }
 0x5a9   :  { %4791 = vmatpush3.bf16.msra.mxu1 %v5162_v59 }
 0x5aa   :  { %4792 = vmatprep.subr.bf16.mxu1 %v5165_v19  ;;  %v1432_v39 = vpop.f32.mrb[24].mxu0  ;;  %v1578_v24 = vpop.f32.mrb[40].mxu1 }
 0x5ab   :  { %v1433_v4 = vadd.f32 %v1432_v39, %v6534_v26  ;;  %v1579_v20 = vadd.f32 %v1578_v24, %v6539_v57  ;;  %v1434_v45 = vpop.f32.mrb[25].mxu0  ;;  %v1580_v61 = vpop.f32.mrb[41].mxu1 }
 0x5ac   :  { %v1435_v35 = vadd.f32 %v1434_v45, %v6544_v6  ;;  %v1581_v60 = vadd.f32 %v1580_v61, %v6549_v48  ;;  %v1436_v44 = vpop.f32.mrb[26].mxu0  ;;  %v1582_v49 = vpop.f32.mrb[42].mxu1  ;;  %v6637_v45 = vrot.slane %v6527_v37, %v1128_v8  ;;  %v5178_v61 = vld [vmem:[%s7474_s11 + $0x130] sm:$0xff]  }
 0x5ad   :  { %4793 = vmatpush3.bf16.msra.mxu1 %v5166_v21  ;;  %v1437_v53 = vadd.f32 %v1436_v44, %v6534_v26  ;;  %v1583_v38 = vadd.f32 %v1582_v49, %v6539_v57  ;;  %v1438_v5 = vpop.f32.mrb[27].mxu0  ;;  %v1584_v58 = vpop.f32.mrb[43].mxu1  ;;  %v2026_v63 = vmax.f32 %v1433_v4, 0.0  ;;  %v2030_v13 = vmax.f32 %v1579_v20, 0.0 }
 0x5ae   :  { %4794 = vmatprep.subr.bf16.mxu1 %v5169_v27  ;;  %v1439_v18 = vadd.f32 %v1438_v5, %v6544_v6  ;;  %v1585_v29 = vadd.f32 %v1584_v58, %v6549_v48  ;;  %v2027_v17 = vmax.f32 %v1435_v35, 0.0  ;;  %v2031_v43 = vmax.f32 %v1581_v60, 0.0 }
 0x5af   :  { %v2042_v30 = vmax.f32 %v1437_v53, 0.0  ;;  %v2046_v31 = vmax.f32 %v1583_v38, 0.0  ;;  %v5181_v53 = vld [vmem:[%s7474_s11 + $0x178] sm:$0xff]  }
 0x5b0   :  { %v2043_v28 = vmax.f32 %v1439_v18, 0.0  ;;  %v2047_v50 = vmax.f32 %v1585_v29, 0.0 }
 0x5b1   :  { %4795 = vmatpush3.bf16.msra.mxu1 %v5170_v14  ;;  %v2122_v9 = vpack.c.bf16 %v2042_v30, %v2026_v63  ;;  %v6617_v10 = vpack.c.bf16 %v2046_v31, %v2030_v13  ;;  %v6647_v14 = vrot.slane %v6627_v52, %v1120_v55 }
 0x5b2   :  { %4796 = vmatprep.subr.bf16.mxu1 %v5173_v3  ;;  %v2123_v2 = vpack.c.bf16 %v2043_v28, %v2027_v17  ;;  %v6622_v46 = vpack.c.bf16 %v2047_v50, %v2031_v43  ;;  %v1442_v12 = vpop.f32.mrb[28].mxu0  ;;  %v1588_v23 = vpop.f32.mrb[44].mxu1 }
 0x5b3   :  { %v1443_v59 = vadd.f32 %v1442_v12, %v6534_v26  ;;  %v1589_v19 = vadd.f32 %v1588_v23, %v6539_v57  ;;  %v1444_v21 = vpop.f32.mrb[29].mxu0  ;;  %v1590_v27 = vpop.f32.mrb[45].mxu1 }
 0x5b4   :  { %v1445_v39 = vadd.f32 %v1444_v21, %v6544_v6  ;;  %v1591_v24 = vadd.f32 %v1590_v27, %v6549_v48  ;;  %v1446_v4 = vpop.f32.mrb[30].mxu0  ;;  %v1592_v20 = vpop.f32.mrb[46].mxu1  ;;  %3233 = vmatprep.mubr.bf16.mxu1 %v2123_v2 }
 0x5b5   :  { %4797 = vmatpush3.bf16.msra.mxu1 %v5174_v62  ;;  %v1447_v35 = vadd.f32 %v1446_v4, %v6534_v26  ;;  %v1593_v60 = vadd.f32 %v1592_v20, %v6539_v57  ;;  %v1448_v44 = vpop.f32.mrb[31].mxu0  ;;  %v1594_v49 = vpop.f32.mrb[47].mxu1  ;;  %v6657_v26 = vrot.slane %v6527_v37, %v1132_v16  ;;  %v6662_v57 = vrot.slane %v6627_v52, %v1124_v56  ;;  %v5185_v56 = vld [vmem:[%s7474_s11 + $0x240] sm:$0xff]  }
 0x5b6   :  { %3234 = vmatmul.mubr.bf16.gmra.mrb[88].mxu1 %v2122_v9  ;;  %4798 = vmatprep.subr.bf16.mxu1 %v5177_v33  ;;  %v1449_v38 = vadd.f32 %v1448_v44, %v6544_v6  ;;  %v1595_v5 = vadd.f32 %v1594_v49, %v6549_v48  ;;  %v2058_v55 = vmax.f32 %v1443_v59, 0.0  ;;  %v2062_v58 = vmax.f32 %v1589_v19, 0.0  ;;  %v5182_v48 = vld [vmem:[%s7474_s11 + $0x138] sm:$0xff]  }
 0x5b7   :  { %v2074_v3 = vmax.f32 %v1447_v35, 0.0  ;;  %v2078_v18 = vmax.f32 %v1593_v60, 0.0  ;;  %v2059_v29 = vmax.f32 %v1445_v39, 0.0  ;;  %v2063_v63 = vmax.f32 %v1591_v24, 0.0 }
 0x5b8   :  { %v2075_v13 = vmax.f32 %v1449_v38, 0.0  ;;  %v2079_v6 = vmax.f32 %v1595_v5, 0.0 }
 0x5b9   :  { %4799 = vmatpush3.bf16.msra.mxu1 %v5178_v61  ;;  %v2138_v30 = vpack.c.bf16 %v2074_v3, %v2058_v55  ;;  %v6667_v31 = vpack.c.bf16 %v2078_v18, %v2062_v58 }
 0x5ba   :  { %4800 = vmatprep.subr.bf16.mxu1 %v5181_v53  ;;  %v2139_v17 = vpack.c.bf16 %v2075_v13, %v2059_v29  ;;  %v6672_v43 = vpack.c.bf16 %v2079_v6, %v2063_v63  ;;  %v1485_v28 = vpop.f32.mrb[32].mxu0  ;;  %v1704_v50 = vpop.f32.mrb[48].mxu1 }
 0x5bb   :  { %v1486_v62 = vadd.f32 %v1485_v28, %v6637_v45  ;;  %v1705_v9 = vadd.f32 %v1704_v50, %v6647_v14  ;;  %v1487_v33 = vpop.f32.mrb[33].mxu0  ;;  %v1706_v2 = vpop.f32.mrb[49].mxu1 }
 0x5bc   :  { %v1488_v12 = vadd.f32 %v1487_v33, %v6657_v26  ;;  %v1707_v23 = vadd.f32 %v1706_v2, %v6662_v57  ;;  %v1489_v59 = vpop.f32.mrb[34].mxu0  ;;  %v1708_v19 = vpop.f32.mrb[50].mxu1  ;;  %3241 = vmatprep.mubr.bf16.mxu1 %v2139_v17  ;;  %v5187_v17 = vld [vmem:[%s7474_s11 + $0x1c8] sm:$0xff]  }
 0x5bd   :  { %4801 = vmatpush3.bf16.msra.mxu1 %v5182_v48  ;;  %v1490_v21 = vadd.f32 %v1489_v59, %v6637_v45  ;;  %v1709_v27 = vadd.f32 %v1708_v19, %v6647_v14  ;;  %v1491_v39 = vpop.f32.mrb[35].mxu0  ;;  %v1710_v24 = vpop.f32.mrb[51].mxu1  ;;  %v1964_v61 = vmax.f32 %v1486_v62, 0.0  ;;  %v1970_v35 = vmax.f32 %v1705_v9, 0.0  ;;  %v5189_v33 = vld [vmem:[%s7474_s11 + $0x248] sm:$0xff]  }
 0x5be   :  { %3242 = vmatmul.mubr.bf16.gmra.mrb[92].mxu1 %v2138_v30  ;;  %4866 = vmatprep.subr.bf16.mxu1 %v5185_v56  ;;  %v1492_v4 = vadd.f32 %v1491_v39, %v6657_v26  ;;  %v1711_v20 = vadd.f32 %v1710_v24, %v6662_v57  ;;  %v1965_v49 = vmax.f32 %v1488_v12, 0.0  ;;  %v1971_v53 = vmax.f32 %v1707_v23, 0.0  ;;  %v5186_v56 = vld [vmem:[%s7474_s11 + $0x200] sm:$0xff]  }
 0x5bf   :  { %3347 = vmatprep.mubr.bf16.mxu1 %v6561_v54  ;;  %v1980_v60 = vmax.f32 %v1490_v21, 0.0  ;;  %v1986_v44 = vmax.f32 %v1709_v27, 0.0  ;;  %v5184_v54 = vld [vmem:[%s7474_s11 + $0x180] sm:$0xff]   ;;  %v5188_v27 = vld [vmem:[%s7474_s11 + $0x188] sm:$0xff]  }
 0x5c0   :  { %v1981_v38 = vmax.f32 %v1492_v4, 0.0  ;;  %v1987_v5 = vmax.f32 %v1711_v20, 0.0 }
 0x5c1   :  { %v2092_v55 = vpack.c.bf16 %v1980_v60, %v1964_v61  ;;  %v6683_v58 = vpack.c.bf16 %v1986_v44, %v1970_v35  ;;  %v5191_v61 = vld [vmem:[%s7474_s11 + $0x1d0] sm:$0xff]  }
 0x5c2   :  { %v2093_v3 = vpack.c.bf16 %v1981_v38, %v1965_v49  ;;  %v6685_v18 = vpack.c.bf16 %v1987_v5, %v1971_v53  ;;  %v1495_v29 = vpop.f32.mrb[36].mxu0  ;;  %v1714_v63 = vpop.f32.mrb[52].mxu1  ;;  %v5193_v49 = vld [vmem:[%s7474_s11 + $0x250] sm:$0xff]  }
 0x5c3   :  { %v1496_v13 = vadd.f32 %v1495_v29, %v6637_v45  ;;  %v1715_v6 = vadd.f32 %v1714_v63, %v6647_v14  ;;  %v1497_v48 = vpop.f32.mrb[37].mxu0  ;;  %v1716_v30 = vpop.f32.mrb[53].mxu1  ;;  %v5192_v63 = vld [vmem:[%s7474_s11 + $0x190] sm:$0xff]  }
 0x5c4   :  { %v1498_v28 = vadd.f32 %v1497_v48, %v6657_v26  ;;  %v1717_v50 = vadd.f32 %v1716_v30, %v6662_v57  ;;  %v1499_v62 = vpop.f32.mrb[38].mxu0  ;;  %v1718_v9 = vpop.f32.mrb[54].mxu1  ;;  %3282 = vmatprep.mubr.bf16.mxu0 %v2093_v3  ;;  %v5194_v30 = vld [vmem:[%s7474_s11 + $0x210] sm:$0xff]  }
 0x5c5   :  { %v1500_v2 = vadd.f32 %v1499_v62, %v6637_v45  ;;  %v1719_v12 = vadd.f32 %v1718_v9, %v6647_v14  ;;  %v1501_v23 = vpop.f32.mrb[39].mxu0  ;;  %v1720_v59 = vpop.f32.mrb[55].mxu1  ;;  %3283 = vmatmul.mubr.bf16.vlgmr.msra.gmra.mrb[96].mxu0 %v2092_v55  ;;  %v1996_v39 = vmax.f32 %v1496_v13, 0.0  ;;  %v2002_v24 = vmax.f32 %v1715_v6, 0.0  ;;  %v5197_v9 = vld [vmem:[%s7474_s11 + $0x258] sm:$0xff]  }
 0x5c6   :  { %3348 = vmatmul.mubr.bf16.vlgmr.msra.gmra.mrb[96].mxu1 %v6559_v40  ;;  %v1502_v19 = vadd.f32 %v1501_v23, %v6657_v26  ;;  %v1721_v21 = vadd.f32 %v1720_v59, %v6662_v57  ;;  %4827 = vmatpush3.bf16.msra.mxu0 %v5184_v54  ;;  %v5190_v40 = vld [vmem:[%s7474_s11 + $0x208] sm:$0xff]   ;;  %v1997_v35 = vmax.f32 %v1498_v28, 0.0 }
 0x5c7   :  { %3355 = vmatprep.mubr.bf16.mxu1 %v6585_v7  ;;  %v2012_v4 = vmax.f32 %v1500_v2, 0.0  ;;  %v2018_v20 = vmax.f32 %v1719_v12, 0.0  ;;  %4867 = vmatpush3.bf16.msra.mxu1 %v5186_v56  ;;  %v2003_v7 = vmax.f32 %v1717_v50, 0.0  ;;  %v5195_v56 = vld [vmem:[%s7474_s11 + $0x1d8] sm:$0xff]  }
 0x5c8   :  { %4828 = vmatprep.subr.bf16.mxu0 %v5187_v17  ;;  %v2013_v60 = vmax.f32 %v1502_v19, 0.0  ;;  %v2019_v44 = vmax.f32 %v1721_v21, 0.0  ;;  %4868 = vmatprep.subr.bf16.mxu1 %v5189_v33  ;;  %v5196_v21 = vld [vmem:[%s7474_s11 + $0x198] sm:$0xff]  }
 0x5c9   :  { %v2108_v53 = vpack.c.bf16 %v2012_v4, %v1996_v39  ;;  %v6721_v38 = vpack.c.bf16 %v2018_v20, %v2002_v24 }
 0x5ca   :  { %v2109_v5 = vpack.c.bf16 %v2013_v60, %v1997_v35  ;;  %v6723_v55 = vpack.c.bf16 %v2019_v44, %v2003_v7  ;;  %4829 = vmatpush3.bf16.msra.mxu0 %v5188_v27  ;;  %v1505_v3 = vpop.f32.mrb[40].mxu0  ;;  %v1724_v29 = vpop.f32.mrb[56].mxu1  ;;  %v1144_v27 = vsub.s32 6, %v6520_v22  ;;  %v5201_v60 = vld [vmem:[%s7474_s11 + $0x260] sm:$0xff]  }
 0x5cb   :  { %v1506_v54 = vadd.f32 %v1505_v3, %v6637_v45  ;;  %v1725_v13 = vadd.f32 %v1724_v29, %v6647_v14  ;;  %4869 = vmatpush3.bf16.msra.mxu1 %v5190_v40  ;;  %v1507_v6 = vpop.f32.mrb[41].mxu0  ;;  %v1726_v48 = vpop.f32.mrb[57].mxu1  ;;  %4830 = vmatprep.subr.bf16.mxu0 %v5191_v61 }
 0x5cc   :  { %v1508_v17 = vadd.f32 %v1507_v6, %v6657_v26  ;;  %v1727_v28 = vadd.f32 %v1726_v48, %v6662_v57  ;;  %v1509_v50 = vpop.f32.mrb[42].mxu0  ;;  %v1728_v62 = vpop.f32.mrb[58].mxu1  ;;  %3290 = vmatprep.mubr.bf16.mxu0 %v2109_v5  ;;  %4870 = vmatprep.subr.bf16.mxu1 %v5193_v49 }
 0x5cd   :  { %v1510_v33 = vadd.f32 %v1509_v50, %v6637_v45  ;;  %v1729_v2 = vadd.f32 %v1728_v62, %v6647_v14  ;;  %v1511_v12 = vpop.f32.mrb[43].mxu0  ;;  %v1730_v23 = vpop.f32.mrb[59].mxu1  ;;  %3291 = vmatmul.mubr.bf16.gmra.mrb[100].mxu0 %v2108_v53  ;;  %v2028_v39 = vmax.f32 %v1506_v54, 0.0  ;;  %v2034_v24 = vmax.f32 %v1725_v13, 0.0 }
 0x5ce   :  { %3356 = vmatmul.mubr.bf16.gmra.mrb[100].mxu1 %v6583_v41  ;;  %v1512_v59 = vadd.f32 %v1511_v12, %v6657_v26  ;;  %v1731_v19 = vadd.f32 %v1730_v23, %v6662_v57  ;;  %4831 = vmatpush3.bf16.msra.mxu0 %v5192_v63  ;;  %v5198_v41 = vld [vmem:[%s7474_s11 + $0x218] sm:$0xff]   ;;  %v2029_v40 = vmax.f32 %v1508_v17, 0.0  ;;  %v2035_v61 = vmax.f32 %v1727_v28, 0.0  ;;  %v5200_v63 = vld [vmem:[%s7474_s11 + $0x1a0] sm:$0xff]   ;;  %v5203_v17 = vld [vmem:[%s7474_s11 + $0x1e8] sm:$0xff]  }
 0x5cf   :  { %3363 = vmatprep.mubr.bf16.mxu1 %v6622_v46  ;;  %v2044_v4 = vmax.f32 %v1510_v33, 0.0  ;;  %v2050_v20 = vmax.f32 %v1729_v2, 0.0  ;;  %4871 = vmatpush3.bf16.msra.mxu1 %v5194_v30  ;;  %v5199_v46 = vld [vmem:[%s7474_s11 + $0x1e0] sm:$0xff]   ;;  %v1148_v54 = vsub.s32 7, %v6520_v22  ;;  %v6779_v28 = vrot.slane %v6527_v37, %v1144_v27  ;;  %v5205_v2 = vld [vmem:[%s7474_s11 + $0x268] sm:$0xff]  }
 0x5d0   :  { %4832 = vmatprep.subr.bf16.mxu0 %v5195_v56  ;;  %v2045_v35 = vmax.f32 %v1512_v59, 0.0  ;;  %v2051_v7 = vmax.f32 %v1731_v19, 0.0  ;;  %4872 = vmatprep.subr.bf16.mxu1 %v5197_v9  ;;  %v5202_v56 = vld [vmem:[%s7474_s11 + $0x220] sm:$0xff]   ;;  %v6789_v12 = vrot.slane %v6627_v52, %v1136_v1  ;;  %v5204_v1 = vld [vmem:[%s7474_s11 + $0x1a8] sm:$0xff]  }
 0x5d1   :  { %v2124_v44 = vpack.c.bf16 %v2044_v4, %v2028_v39  ;;  %v6760_v49 = vpack.c.bf16 %v2050_v20, %v2034_v24  ;;  %v6797_v39 = vrot.slane %v6627_v52, %v1140_v0 }
 0x5d2   :  { %v2125_v53 = vpack.c.bf16 %v2045_v35, %v2029_v40  ;;  %v6762_v5 = vpack.c.bf16 %v2051_v7, %v2035_v61  ;;  %4833 = vmatpush3.bf16.msra.mxu0 %v5196_v21  ;;  %v1515_v3 = vpop.f32.mrb[44].mxu0  ;;  %v1734_v29 = vpop.f32.mrb[60].mxu1 }
 0x5d3   :  { %v1516_v13 = vadd.f32 %v1515_v3, %v6637_v45  ;;  %v1735_v6 = vadd.f32 %v1734_v29, %v6647_v14  ;;  %4873 = vmatpush3.bf16.msra.mxu1 %v5198_v41  ;;  %v1517_v48 = vpop.f32.mrb[45].mxu0  ;;  %v1736_v30 = vpop.f32.mrb[61].mxu1  ;;  %4834 = vmatprep.subr.bf16.mxu0 %v5199_v46  ;;  %v5208_v3 = vld [vmem:[%s7474_s11 + $0x1b0] sm:$0xff]  }
 0x5d4   :  { %v1518_v50 = vadd.f32 %v1517_v48, %v6657_v26  ;;  %v1737_v62 = vadd.f32 %v1736_v30, %v6662_v57  ;;  %v1519_v9 = vpop.f32.mrb[46].mxu0  ;;  %v1738_v33 = vpop.f32.mrb[62].mxu1  ;;  %3298 = vmatprep.mubr.bf16.mxu0 %v2125_v53  ;;  %4874 = vmatprep.subr.bf16.mxu1 %v5201_v60  ;;  %v5210_v48 = vld [vmem:[%s7474_s11 + $0x230] sm:$0xff]   ;;  %v5211_v30 = vld [vmem:[%s7474_s11 + $0x1f8] sm:$0xff]  }
 0x5d5   :  { %v1520_v23 = vadd.f32 %v1519_v9, %v6637_v45  ;;  %v1739_v59 = vadd.f32 %v1738_v33, %v6647_v14  ;;  %v1521_v19 = vpop.f32.mrb[47].mxu0  ;;  %v1740_v21 = vpop.f32.mrb[63].mxu1  ;;  %3299 = vmatmul.mubr.bf16.gmra.mrb[104].mxu0 %v2124_v44  ;;  %v2060_v45 = vmax.f32 %v1516_v13, 0.0  ;;  %v2066_v14 = vmax.f32 %v1735_v6, 0.0  ;;  %v5213_v9 = vld [vmem:[%s7474_s11 + $0x278] sm:$0xff]  }
 0x5d6   :  { %3364 = vmatmul.mubr.bf16.gmra.mrb[104].mxu1 %v6617_v10  ;;  %v1522_v24 = vadd.f32 %v1521_v19, %v6657_v26  ;;  %v1741_v4 = vadd.f32 %v1740_v21, %v6662_v57  ;;  %4835 = vmatpush3.bf16.msra.mxu0 %v5200_v63  ;;  %v6808_v10 = vrot.slane %v6527_v37, %v1148_v54  ;;  %v5206_v26 = vld [vmem:[%s7474_s11 + $0x228] sm:$0xff]   ;;  %v5207_v57 = vld [vmem:[%s7474_s11 + $0x1f0] sm:$0xff]   ;;  %v2067_v41 = vmax.f32 %v1737_v62, 0.0 }
 0x5d7   :  { %3371 = vmatprep.mubr.bf16.mxu1 %v6672_v43  ;;  %v2076_v0 = vmax.f32 %v1520_v23, 0.0  ;;  %v2082_v20 = vmax.f32 %v1739_v59, 0.0  ;;  %4875 = vmatpush3.bf16.msra.mxu1 %v5202_v56  ;;  %v2061_v43 = vmax.f32 %v1518_v50, 0.0  ;;  %v5209_v37 = vld [vmem:[%s7474_s11 + $0x270] sm:$0xff]  }
 0x5d8   :  { %4836 = vmatprep.subr.bf16.mxu0 %v5203_v17  ;;  %v2077_v46 = vmax.f32 %v1522_v24, 0.0  ;;  %v2083_v40 = vmax.f32 %v1741_v4, 0.0  ;;  %4876 = vmatprep.subr.bf16.mxu1 %v5205_v2  ;;  %v5212_v24 = vld [vmem:[%s7474_s11 + $0x1b8] sm:$0xff]  }
 0x5d9   :  { %v2140_v61 = vpack.c.bf16 %v2076_v0, %v2060_v45  ;;  %v6819_v35 = vpack.c.bf16 %v2082_v20, %v2066_v14  ;;  %v5215_v0 = vld [vmem:[%s7474_s11 + $0x2c0] sm:$0xff]  }
 0x5da   :  { %v2141_v7 = vpack.c.bf16 %v2077_v46, %v2061_v43  ;;  %v6821_v60 = vpack.c.bf16 %v2083_v40, %v2067_v41  ;;  %4837 = vmatpush3.bf16.msra.mxu0 %v5204_v1  ;;  %v1631_v44 = vpop.f32.mrb[48].mxu0  ;;  %v1850_v53 = vpop.f32.mrb[64].mxu1  ;;  %v5217_v43 = vld [vmem:[%s7474_s11 + $0x340] sm:$0xff]  }
 0x5db   :  { %v1632_v29 = vadd.f32 %v1631_v44, %v6779_v28  ;;  %v1851_v63 = vadd.f32 %v1850_v53, %v6789_v12  ;;  %4877 = vmatpush3.bf16.msra.mxu1 %v5206_v26  ;;  %v1633_v13 = vpop.f32.mrb[49].mxu0  ;;  %v1852_v6 = vpop.f32.mrb[65].mxu1  ;;  %4838 = vmatprep.subr.bf16.mxu0 %v5207_v57  ;;  %v5216_v44 = vld [vmem:[%s7474_s11 + $0x280] sm:$0xff]  }
 0x5dc   :  { %v1634_v56 = vadd.f32 %v1633_v13, %v6808_v10  ;;  %v1853_v17 = vadd.f32 %v1852_v6, %v6797_v39  ;;  %v1635_v50 = vpop.f32.mrb[50].mxu0  ;;  %v1854_v62 = vpop.f32.mrb[66].mxu1  ;;  %3306 = vmatprep.mubr.bf16.mxu0 %v2141_v7  ;;  %4878 = vmatprep.subr.bf16.mxu1 %v5209_v37  ;;  %v5218_v13 = vld [vmem:[%s7474_s11 + $0x300] sm:$0xff]  }
 0x5dd   :  { %v1636_v33 = vadd.f32 %v1635_v50, %v6779_v28  ;;  %v1855_v2 = vadd.f32 %v1854_v62, %v6789_v12  ;;  %v1637_v23 = vpop.f32.mrb[51].mxu0  ;;  %v1856_v59 = vpop.f32.mrb[67].mxu1  ;;  %3307 = vmatmul.mubr.bf16.gmra.mrb[108].mxu0 %v2140_v61  ;;  %v1968_v4 = vmax.f32 %v1632_v29, 0.0  ;;  %v1974_v1 = vmax.f32 %v1851_v63, 0.0  ;;  %v5221_v50 = vld [vmem:[%s7474_s11 + $0x348] sm:$0xff]  }
 0x5de   :  { %3372 = vmatmul.mubr.bf16.gmra.mrb[108].mxu1 %v6667_v31  ;;  %v1638_v19 = vadd.f32 %v1637_v23, %v6808_v10  ;;  %v1857_v21 = vadd.f32 %v1856_v59, %v6797_v39  ;;  %4839 = vmatpush3.bf16.msra.mxu0 %v5208_v3  ;;  %v5214_v31 = vld [vmem:[%s7474_s11 + $0x238] sm:$0xff]   ;;  %v1969_v20 = vmax.f32 %v1634_v56, 0.0 }
 0x5df   :  { %3477 = vmatprep.mubr.bf16.mxu1 %v6685_v18  ;;  %v1984_v45 = vmax.f32 %v1636_v33, 0.0  ;;  %v1990_v14 = vmax.f32 %v1855_v2, 0.0  ;;  %4879 = vmatpush3.bf16.msra.mxu1 %v5210_v48  ;;  %v1975_v18 = vmax.f32 %v1853_v17, 0.0  ;;  %v5219_v17 = vld [vmem:[%s7474_s11 + $0x2c8] sm:$0xff]  }
 0x5e0   :  { %4840 = vmatprep.subr.bf16.mxu0 %v5211_v30  ;;  %v1985_v26 = vmax.f32 %v1638_v19, 0.0  ;;  %v1991_v57 = vmax.f32 %v1857_v21, 0.0  ;;  %4880 = vmatprep.subr.bf16.mxu1 %v5213_v9  ;;  %v5220_v19 = vld [vmem:[%s7474_s11 + $0x288] sm:$0xff]  }
 0x5e1   :  { %v2096_v41 = vpack.c.bf16 %v1984_v45, %v1968_v4  ;;  %v6857_v46 = vpack.c.bf16 %v1990_v14, %v1974_v1  ;;  %v5222_v45 = vld [vmem:[%s7474_s11 + $0x308] sm:$0xff]  }
 0x5e2   :  { %v2097_v40 = vpack.c.bf16 %v1985_v26, %v1969_v20  ;;  %v6859_v37 = vpack.c.bf16 %v1991_v57, %v1975_v18  ;;  %4841 = vmatpush3.bf16.msra.mxu0 %v5212_v24  ;;  %v1641_v61 = vpop.f32.mrb[52].mxu0  ;;  %v1860_v7 = vpop.f32.mrb[68].mxu1  ;;  %v5225_v18 = vld [vmem:[%s7474_s11 + $0x350] sm:$0xff]  }
 0x5e3   :  { %v1642_v53 = vadd.f32 %v1641_v61, %v6779_v28  ;;  %v1861_v3 = vadd.f32 %v1860_v7, %v6789_v12  ;;  %4881 = vmatpush3.bf16.msra.mxu1 %v5214_v31  ;;  %v1643_v29 = vpop.f32.mrb[53].mxu0  ;;  %v1862_v63 = vpop.f32.mrb[69].mxu1  ;;  %4906 = vmatprep.subr.bf16.mxu0 %v5215_v0  ;;  %v5224_v61 = vld [vmem:[%s7474_s11 + $0x290] sm:$0xff]  }
 0x5e4   :  { %v1644_v6 = vadd.f32 %v1643_v29, %v6808_v10  ;;  %v1863_v48 = vadd.f32 %v1862_v63, %v6797_v39  ;;  %v1645_v30 = vpop.f32.mrb[54].mxu0  ;;  %v1864_v56 = vpop.f32.mrb[70].mxu1  ;;  %3412 = vmatprep.mubr.bf16.mxu0 %v2097_v40  ;;  %4946 = vmatprep.subr.bf16.mxu1 %v5217_v43  ;;  %v5226_v29 = vld [vmem:[%s7474_s11 + $0x310] sm:$0xff]  }
 0x5e5   :  { %v1646_v62 = vadd.f32 %v1645_v30, %v6779_v28  ;;  %v1865_v9 = vadd.f32 %v1864_v56, %v6789_v12  ;;  %v1647_v33 = vpop.f32.mrb[55].mxu0  ;;  %v1866_v2 = vpop.f32.mrb[71].mxu1  ;;  %3413 = vmatmul.mubr.bf16.vlgmr.msra.gmra.mrb[112].mxu0 %v2096_v41  ;;  %v2000_v21 = vmax.f32 %v1642_v53, 0.0  ;;  %v2006_v24 = vmax.f32 %v1861_v3, 0.0  ;;  %v5227_v30 = vld [vmem:[%s7474_s11 + $0x2d8] sm:$0xff]  }
 0x5e6   :  { %v1648_v23 = vadd.f32 %v1647_v33, %v6808_v10  ;;  %v1867_v59 = vadd.f32 %v1866_v2, %v6797_v39  ;;  %3478 = vmatmul.mubr.bf16.vlgmr.msra.gmra.mrb[112].mxu1 %v6683_v58  ;;  %4907 = vmatpush3.bf16.msra.mxu0 %v5216_v44  ;;  %v5223_v58 = vld [vmem:[%s7474_s11 + $0x2d0] sm:$0xff]   ;;  %v2001_v14 = vmax.f32 %v1644_v6, 0.0  ;;  %v2007_v31 = vmax.f32 %v1863_v48, 0.0  ;;  %v5229_v56 = vld [vmem:[%s7474_s11 + $0x358] sm:$0xff]  }
 0x5e7   :  { %v2016_v4 = vmax.f32 %v1646_v62, 0.0  ;;  %v2022_v1 = vmax.f32 %v1865_v9, 0.0  ;;  %3485 = vmatprep.mubr.bf16.mxu1 %v6723_v55  ;;  %4947 = vmatpush3.bf16.msra.mxu1 %v5218_v13 }
 0x5e8   :  { %v2017_v0 = vmax.f32 %v1648_v23, 0.0  ;;  %v2023_v20 = vmax.f32 %v1867_v59, 0.0  ;;  %4908 = vmatprep.subr.bf16.mxu0 %v5219_v17  ;;  %4948 = vmatprep.subr.bf16.mxu1 %v5221_v50  ;;  %v5228_v23 = vld [vmem:[%s7474_s11 + $0x298] sm:$0xff]  }
 0x5e9   :  { %v2112_v55 = vpack.c.bf16 %v2016_v4, %v2000_v21  ;;  %v6895_v26 = vpack.c.bf16 %v2022_v1, %v2006_v24  ;;  %v5230_v4 = vld [vmem:[%s7474_s11 + $0x318] sm:$0xff]  }
 0x5ea   :  { %v2113_v57 = vpack.c.bf16 %v2017_v0, %v2001_v14  ;;  %v6897_v43 = vpack.c.bf16 %v2023_v20, %v2007_v31  ;;  %4909 = vmatpush3.bf16.msra.mxu0 %v5220_v19  ;;  %v1651_v41 = vpop.f32.mrb[56].mxu0  ;;  %v1870_v40 = vpop.f32.mrb[72].mxu1  ;;  %v5233_v31 = vld [vmem:[%s7474_s11 + $0x360] sm:$0xff]  }
 0x5eb   :  { %v1652_v7 = vadd.f32 %v1651_v41, %v6779_v28  ;;  %v1871_v44 = vadd.f32 %v1870_v40, %v6789_v12  ;;  %4949 = vmatpush3.bf16.msra.mxu1 %v5222_v45  ;;  %v1653_v53 = vpop.f32.mrb[57].mxu0  ;;  %v1872_v3 = vpop.f32.mrb[73].mxu1  ;;  %4910 = vmatprep.subr.bf16.mxu0 %v5223_v58  ;;  %v5232_v41 = vld [vmem:[%s7474_s11 + $0x2a0] sm:$0xff]  }
 0x5ec   :  { %v1654_v63 = vadd.f32 %v1653_v53, %v6808_v10  ;;  %v1873_v13 = vadd.f32 %v1872_v3, %v6797_v39  ;;  %v1655_v6 = vpop.f32.mrb[58].mxu0  ;;  %v1874_v48 = vpop.f32.mrb[74].mxu1  ;;  %3420 = vmatprep.mubr.bf16.mxu0 %v2113_v57  ;;  %4950 = vmatprep.subr.bf16.mxu1 %v5225_v18  ;;  %v5234_v53 = vld [vmem:[%s7474_s11 + $0x320] sm:$0xff]  }
 0x5ed   :  { %v1656_v17 = vadd.f32 %v1655_v6, %v6779_v28  ;;  %v1875_v50 = vadd.f32 %v1874_v48, %v6789_v12  ;;  %v1657_v62 = vpop.f32.mrb[59].mxu0  ;;  %v1876_v9 = vpop.f32.mrb[75].mxu1  ;;  %3421 = vmatmul.mubr.bf16.gmra.mrb[116].mxu0 %v2112_v55  ;;  %v2032_v59 = vmax.f32 %v1652_v7, 0.0  ;;  %v2038_v19 = vmax.f32 %v1871_v44, 0.0  ;;  %v5235_v6 = vld [vmem:[%s7474_s11 + $0x2e8] sm:$0xff]  }
 0x5ee   :  { %v1658_v33 = vadd.f32 %v1657_v62, %v6808_v10  ;;  %v1877_v2 = vadd.f32 %v1876_v9, %v6797_v39  ;;  %3486 = vmatmul.mubr.bf16.gmra.mrb[116].mxu1 %v6721_v38  ;;  %4911 = vmatpush3.bf16.msra.mxu0 %v5224_v61  ;;  %v5231_v38 = vld [vmem:[%s7474_s11 + $0x2e0] sm:$0xff]   ;;  %v2033_v1 = vmax.f32 %v1654_v63, 0.0  ;;  %v2039_v45 = vmax.f32 %v1873_v13, 0.0  ;;  %v5237_v48 = vld [vmem:[%s7474_s11 + $0x368] sm:$0xff]  }
 0x5ef   :  { %v2048_v21 = vmax.f32 %v1656_v17, 0.0  ;;  %v2054_v24 = vmax.f32 %v1875_v50, 0.0  ;;  %3493 = vmatprep.mubr.bf16.mxu1 %v6762_v5  ;;  %4951 = vmatpush3.bf16.msra.mxu1 %v5226_v29  ;;  %v6958_v62 = vrot.slane %v6627_v52, %v1128_v8 }
 0x5f0   :  { %v2049_v58 = vmax.f32 %v1658_v33, 0.0  ;;  %v2055_v14 = vmax.f32 %v1877_v2, 0.0  ;;  %4912 = vmatprep.subr.bf16.mxu0 %v5227_v30  ;;  %4952 = vmatprep.subr.bf16.mxu1 %v5229_v56 }
 0x5f1   :  { %v2128_v5 = vpack.c.bf16 %v2048_v21, %v2032_v59  ;;  %v6933_v0 = vpack.c.bf16 %v2054_v24, %v2038_v19 }
 0x5f2   :  { %v2129_v20 = vpack.c.bf16 %v2049_v58, %v2033_v1  ;;  %v6935_v18 = vpack.c.bf16 %v2055_v14, %v2039_v45  ;;  %4913 = vmatpush3.bf16.msra.mxu0 %v5228_v23  ;;  %v1661_v55 = vpop.f32.mrb[60].mxu0  ;;  %v1880_v57 = vpop.f32.mrb[76].mxu1  ;;  %v5240_v45 = vld [vmem:[%s7474_s11 + $0x2b0] sm:$0xff]  }
 0x5f3   :  { %v1662_v40 = vadd.f32 %v1661_v55, %v6779_v28  ;;  %v1881_v61 = vadd.f32 %v1880_v57, %v6789_v12  ;;  %4953 = vmatpush3.bf16.msra.mxu1 %v5230_v4  ;;  %v1663_v7 = vpop.f32.mrb[61].mxu0  ;;  %v1882_v44 = vpop.f32.mrb[77].mxu1  ;;  %4914 = vmatprep.subr.bf16.mxu0 %v5231_v38  ;;  %v5243_v55 = vld [vmem:[%s7474_s11 + $0x2f8] sm:$0xff]  }
 0x5f4   :  { %v1664_v3 = vadd.f32 %v1663_v7, %v6808_v10  ;;  %v1883_v29 = vadd.f32 %v1882_v44, %v6797_v39  ;;  %v1665_v63 = vpop.f32.mrb[62].mxu0  ;;  %v1884_v13 = vpop.f32.mrb[78].mxu1  ;;  %3428 = vmatprep.mubr.bf16.mxu0 %v2129_v20  ;;  %4954 = vmatprep.subr.bf16.mxu1 %v5233_v31  ;;  %v5242_v31 = vld [vmem:[%s7474_s11 + $0x330] sm:$0xff]   ;;  %v5245_v57 = vld [vmem:[%s7474_s11 + $0x378] sm:$0xff]  }
 0x5f5   :  { %v1666_v30 = vadd.f32 %v1665_v63, %v6779_v28  ;;  %v1885_v56 = vadd.f32 %v1884_v13, %v6789_v12  ;;  %v1667_v17 = vpop.f32.mrb[63].mxu0  ;;  %v1886_v50 = vpop.f32.mrb[79].mxu1  ;;  %3429 = vmatmul.mubr.bf16.gmra.mrb[120].mxu0 %v2128_v5  ;;  %v5236_v28 = vld [vmem:[%s7474_s11 + $0x2a8] sm:$0xff]   ;;  %v6969_v12 = vrot.slane %v6627_v52, %v1132_v16  ;;  %v2064_v2 = vmax.f32 %v1662_v40, 0.0  ;;  %v5241_v16 = vld [vmem:[%s7474_s11 + $0x370] sm:$0xff]   ;;  %v5244_v7 = vld [vmem:[%s7474_s11 + $0x2b8] sm:$0xff]  }
 0x5f6   :  { %v1668_v9 = vadd.f32 %v1667_v17, %v6808_v10  ;;  %v1887_v33 = vadd.f32 %v1886_v50, %v6797_v39  ;;  %3494 = vmatmul.mubr.bf16.gmra.mrb[120].mxu1 %v6760_v49  ;;  %4915 = vmatpush3.bf16.msra.mxu0 %v5232_v41  ;;  %v2070_v23 = vmax.f32 %v1881_v61, 0.0  ;;  %v5238_v49 = vld [vmem:[%s7474_s11 + $0x328] sm:$0xff]   ;;  %v5239_v39 = vld [vmem:[%s7474_s11 + $0x2f0] sm:$0xff]   ;;  %v2065_v10 = vmax.f32 %v1664_v3, 0.0  ;;  %v5246_v3 = vld [vmem:[%s7474_s11 + $0x338] sm:$0xff]  }
 0x5f7   :  { %v2080_v8 = vmax.f32 %v1666_v30, 0.0  ;;  %v2086_v59 = vmax.f32 %v1885_v56, 0.0  ;;  %3501 = vmatprep.mubr.bf16.mxu1 %v6821_v60  ;;  %4955 = vmatpush3.bf16.msra.mxu1 %v5234_v53  ;;  %v2071_v19 = vmax.f32 %v1883_v29, 0.0  ;;  %v5247_v29 = vld [vmem:[%s7474_s11 + $0x3c0] sm:$0xff]   ;;  %v5249_v17 = vld [vmem:[%s7474_s11 + $0x3c8] sm:$0xff]  }
 0x5f8   :  { %v2081_v21 = vmax.f32 %v1668_v9, 0.0  ;;  %v2087_v52 = vmax.f32 %v1887_v33, 0.0  ;;  %4916 = vmatprep.subr.bf16.mxu0 %v5235_v6  ;;  %4956 = vmatprep.subr.bf16.mxu1 %v5237_v48 }
 0x5f9   :  { %v2144_v60 = vpack.c.bf16 %v2080_v8, %v2064_v2  ;;  %v6981_v24 = vpack.c.bf16 %v2086_v59, %v2070_v23  ;;  %v5250_v23 = vld [vmem:[%s7474_s11 + $0x388] sm:$0xff]  }
 0x5fa   :  { %v2145_v4 = vpack.c.bf16 %v2081_v21, %v2065_v10  ;;  %v6983_v38 = vpack.c.bf16 %v2087_v52, %v2071_v19  ;;  %4917 = vmatpush3.bf16.msra.mxu0 %v5236_v28  ;;  %v1777_v1 = vpop.f32.mrb[64].mxu0  ;;  %v5252_v52 = vld [vmem:[%s7474_s11 + $0x390] sm:$0xff]  }
 0x5fb   :  { %v1778_v58 = vadd.f32 %v1777_v1, %v6958_v62  ;;  %4957 = vmatpush3.bf16.msra.mxu1 %v5238_v49  ;;  %v1779_v14 = vpop.f32.mrb[65].mxu0  ;;  %4918 = vmatprep.subr.bf16.mxu0 %v5239_v39  ;;  %v5251_v49 = vld [vmem:[%s7474_s11 + $0x3d0] sm:$0xff]  }
 0x5fc   :  { %v1780_v5 = vadd.f32 %v1779_v14, %v6969_v12  ;;  %v1781_v20 = vpop.f32.mrb[66].mxu0  ;;  %3436 = vmatprep.mubr.bf16.mxu0 %v2145_v4  ;;  %4958 = vmatprep.subr.bf16.mxu1 %v5241_v16 }
 0x5fd   :  { %v1782_v41 = vadd.f32 %v1781_v20, %v6958_v62  ;;  %v1783_v40 = vpop.f32.mrb[67].mxu0  ;;  %3437 = vmatmul.mubr.bf16.gmra.mrb[124].mxu0 %v2144_v60  ;;  %v1972_v44 = vmax.f32 %v1778_v58, 0.0 }
 0x5fe   :  { %v1784_v61 = vadd.f32 %v1783_v40, %v6969_v12  ;;  %3502 = vmatmul.mubr.bf16.gmra.mrb[124].mxu1 %v6819_v35  ;;  %4919 = vmatpush3.bf16.msra.mxu0 %v5240_v45  ;;  %v1973_v63 = vmax.f32 %v1780_v5, 0.0 }
 0x5ff   :  { %v1988_v53 = vmax.f32 %v1782_v41, 0.0  ;;  %4959 = vmatpush3.bf16.msra.mxu1 %v5242_v31  ;;  %3607 = vmatprep.mubr.bf16.mxu1 %v6859_v37  ;;  %v5248_v37 = vld [vmem:[%s7474_s11 + $0x380] sm:$0xff]   ;;  %v5254_v31 = vld [vmem:[%s7474_s11 + $0x398] sm:$0xff]  }
 0x600   :  { %v1989_v35 = vmax.f32 %v1784_v61, 0.0  ;;  %4920 = vmatprep.subr.bf16.mxu0 %v5243_v55  ;;  %4960 = vmatprep.subr.bf16.mxu1 %v5245_v57  ;;  %v5255_v55 = vld [vmem:[%s7474_s11 + $0x3e0] sm:$0xff]  }
 0x601   :  { %v2100_v13 = vpack.c.bf16 %v1988_v53, %v1972_v44 }
 0x602   :  { %v2101_v6 = vpack.c.bf16 %v1989_v35, %v1973_v63  ;;  %4921 = vmatpush3.bf16.msra.mxu0 %v5244_v7  ;;  %v1787_v48 = vpop.f32.mrb[68].mxu0  ;;  %v5256_v7 = vld [vmem:[%s7474_s11 + $0x3a0] sm:$0xff]  }
 0x603   :  { %v1788_v30 = vadd.f32 %v1787_v48, %v6958_v62  ;;  %4961 = vmatpush3.bf16.msra.mxu1 %v5246_v3  ;;  %v1789_v56 = vpop.f32.mrb[69].mxu0  ;;  %4986 = vmatprep.subr.bf16.mxu0 %v5247_v29 }
 0x604   :  { %v1790_v50 = vadd.f32 %v1789_v56, %v6969_v12  ;;  %v1791_v9 = vpop.f32.mrb[70].mxu0  ;;  %3542 = vmatprep.mubr.bf16.mxu0 %v2101_v6  ;;  %4010 = vmatprep.subr.bf16.mxu1 %v5411_v42  ;;  %v5258_v6 = vld [vmem:[%s7474_s11 + $0x3a8] sm:$0xff]  }
 0x605   :  { %v1792_v33 = vadd.f32 %v1791_v9, %v6958_v62  ;;  %v1793_v28 = vpop.f32.mrb[71].mxu0  ;;  %3543 = vmatmul.mubr.bf16.vlgmr.msra.gmra.mrb[128].mxu0 %v2100_v13  ;;  %v2004_v8 = vmax.f32 %v1788_v30, 0.0 }
 0x606   :  { %v1794_v2 = vadd.f32 %v1793_v28, %v6969_v12  ;;  %3608 = vmatmul.mubr.bf16.vlgmr.msra.gmra.mrb[128].mxu1 %v6857_v46  ;;  %4987 = vmatpush3.bf16.msra.mxu0 %v5248_v37  ;;  %v2005_v39 = vmax.f32 %v1790_v50, 0.0 }
 0x607   :  { %v2020_v59 = vmax.f32 %v1792_v33, 0.0  ;;  %3615 = vmatprep.mubr.bf16.mxu1 %v6897_v43  ;;  %4988 = vmatprep.subr.bf16.mxu0 %v5249_v17  ;;  %v5253_v43 = vld [vmem:[%s7474_s11 + $0x3d8] sm:$0xff]   ;;  %v5260_v33 = vld [vmem:[%s7474_s11 + $0x3b0] sm:$0xff]  }
 0x608   :  { %v2021_v10 = vmax.f32 %v1794_v2, 0.0  ;;  %v5261_v2 = vld [vmem:[%s7474_s11 + $0x3f8] sm:$0xff]  }
 0x609   :  { %v2116_v19 = vpack.c.bf16 %v2020_v59, %v2004_v8 }
 0x60a   :  { %v2117_v21 = vpack.c.bf16 %v2021_v10, %v2005_v39  ;;  %4989 = vmatpush3.bf16.msra.mxu0 %v5250_v23  ;;  %v1797_v46 = vpop.f32.mrb[72].mxu0 }
 0x60b   :  { %v1798_v16 = vadd.f32 %v1797_v46, %v6958_v62  ;;  %v1799_v60 = vpop.f32.mrb[73].mxu0  ;;  %4990 = vmatprep.subr.bf16.mxu0 %v5251_v49  ;;  %v5262_v49 = vld [vmem:[%s7474_s11 + $0x3b8] sm:$0xff]  }
 0x60c   :  { %v1800_v4 = vadd.f32 %v1799_v60, %v6969_v12  ;;  %v1801_v1 = vpop.f32.mrb[74].mxu0  ;;  %3550 = vmatprep.mubr.bf16.mxu0 %v2117_v21 }
 0x60d   :  { %v1802_v45 = vadd.f32 %v1801_v1, %v6958_v62  ;;  %v1803_v58 = vpop.f32.mrb[75].mxu0  ;;  %3551 = vmatmul.mubr.bf16.gmra.mrb[132].mxu0 %v2116_v19  ;;  %v2036_v5 = vmax.f32 %v1798_v16, 0.0 }
 0x60e   :  { %v1804_v14 = vadd.f32 %v1803_v58, %v6969_v12  ;;  %3616 = vmatmul.mubr.bf16.gmra.mrb[132].mxu1 %v6895_v26  ;;  %4991 = vmatpush3.bf16.msra.mxu0 %v5252_v52  ;;  %v2037_v57 = vmax.f32 %v1800_v4, 0.0 }
 0x60f   :  { %v2052_v20 = vmax.f32 %v1802_v45, 0.0  ;;  %3623 = vmatprep.mubr.bf16.mxu1 %v6935_v18  ;;  %4992 = vmatprep.subr.bf16.mxu0 %v5253_v43  ;;  %v5257_v18 = vld [vmem:[%s7474_s11 + $0x3e8] sm:$0xff]  }
 0x610   :  { %v2053_v41 = vmax.f32 %v1804_v14, 0.0 }
 0x611   :  { %v2132_v40 = vpack.c.bf16 %v2052_v20, %v2036_v5 }
 0x612   :  { %v2133_v61 = vpack.c.bf16 %v2053_v41, %v2037_v57  ;;  %4993 = vmatpush3.bf16.msra.mxu0 %v5254_v31  ;;  %v1807_v26 = vpop.f32.mrb[76].mxu0 }
 0x613   :  { %v1808_v44 = vadd.f32 %v1807_v26, %v6958_v62  ;;  %v1809_v53 = vpop.f32.mrb[77].mxu0  ;;  %4994 = vmatprep.subr.bf16.mxu0 %v5255_v55 }
 0x614   :  { %v1810_v3 = vadd.f32 %v1809_v53, %v6969_v12  ;;  %v1811_v29 = vpop.f32.mrb[78].mxu0  ;;  %3558 = vmatprep.mubr.bf16.mxu0 %v2133_v61 }
 0x615   :  { %v1812_v63 = vadd.f32 %v1811_v29, %v6958_v62  ;;  %v1813_v35 = vpop.f32.mrb[79].mxu0  ;;  %3559 = vmatmul.mubr.bf16.gmra.mrb[136].mxu0 %v2132_v40  ;;  %v2068_v48 = vmax.f32 %v1808_v44, 0.0  ;;  %v5408_v62 = vld [vmem:[%s7475_s10 + $0x8] sm:$0xff] }
 0x616   :  { %v1814_v13 = vadd.f32 %v1813_v35, %v6969_v12  ;;  %3624 = vmatmul.mubr.bf16.gmra.mrb[136].mxu1 %v6933_v0  ;;  %4995 = vmatpush3.bf16.msra.mxu0 %v5256_v7  ;;  %v7069_v30 = vrot.slane %v5408_v62, %v1144_v27  ;;  %v5259_v0 = vld [vmem:[%s7474_s11 + $0x3f0] sm:$0xff]   ;;  %v2069_v12 = vmax.f32 %v1810_v3, 0.0  ;;  %v7076_v17 = vrot.slane %v5408_v62, %v1148_v54 }
 0x617   :  { %v2084_v37 = vmax.f32 %v1812_v63, 0.0  ;;  %3631 = vmatprep.mubr.bf16.mxu1 %v6983_v38  ;;  %4996 = vmatprep.subr.bf16.mxu0 %v5257_v18 }
 0x618   :  { %v2085_v56 = vmax.f32 %v1814_v13, 0.0 }
 0x619   :  { %v2148_v38 = vpack.c.bf16 %v2084_v37, %v2068_v48 }
 0x61a   :  { %v2149_v50 = vpack.c.bf16 %v2085_v56, %v2069_v12  ;;  %4997 = vmatpush3.bf16.msra.mxu0 %v5258_v6  ;;  %v1923_v9 = vpop.f32.mrb[80].mxu0 }
 0x61b   :  { %v1924_v27 = vadd.f32 %v1923_v9, %v7069_v30  ;;  %v1925_v28 = vpop.f32.mrb[81].mxu0  ;;  %4998 = vmatprep.subr.bf16.mxu0 %v5259_v0 }
 0x61c   :  { %v1926_v22 = vadd.f32 %v1925_v28, %v7076_v17  ;;  %v1927_v54 = vpop.f32.mrb[82].mxu0  ;;  %3566 = vmatprep.mubr.bf16.mxu0 %v2149_v50 }
 0x61d   :  { %v1928_v23 = vadd.f32 %v1927_v54, %v7069_v30  ;;  %v1929_v8 = vpop.f32.mrb[83].mxu0  ;;  %3567 = vmatmul.mubr.bf16.gmra.mrb[140].mxu0 %v2148_v38  ;;  %v1976_v39 = vmax.f32 %v1924_v27, 0.0 }
 0x61e   :  { %v1930_v59 = vadd.f32 %v1929_v8, %v7076_v17  ;;  %3632 = vmatmul.mubr.bf16.gmra.mrb[140].mxu1 %v6981_v24  ;;  %4999 = vmatpush3.bf16.msra.mxu0 %v5260_v33  ;;  %v1977_v19 = vmax.f32 %v1926_v22, 0.0 }
 0x61f   :  { %v1992_v10 = vmax.f32 %v1928_v23, 0.0  ;;  %5000 = vmatprep.subr.bf16.mxu0 %v5261_v2 }
 0x620   :  { %v1993_v21 = vmax.f32 %v1930_v59, 0.0 }
 0x621   :  { %v2104_v46 = vpack.c.bf16 %v1992_v10, %v1976_v39 }
 0x622   :  { %v2105_v52 = vpack.c.bf16 %v1993_v21, %v1977_v19  ;;  %5001 = vmatpush3.bf16.msra.mxu0 %v5262_v49  ;;  %v1933_v16 = vpop.f32.mrb[84].mxu0 }
 0x623   :  { %v1934_v60 = vadd.f32 %v1933_v16, %v7069_v30  ;;  %v1935_v43 = vpop.f32.mrb[85].mxu0 }
 0x624   :  { %v1936_v4 = vadd.f32 %v1935_v43, %v7076_v17  ;;  %v1937_v24 = vpop.f32.mrb[86].mxu0  ;;  %3672 = vmatprep.mubr.bf16.mxu0 %v2105_v52 }
 0x625   :  { %v1938_v1 = vadd.f32 %v1937_v24, %v7069_v30  ;;  %v1939_v45 = vpop.f32.mrb[87].mxu0  ;;  %3673 = vmatmul.mubr.bf16.vlgmr.msra.gmra.mrb[144].mxu0 %v2104_v46  ;;  %v2008_v14 = vmax.f32 %v1934_v60, 0.0 }
 0x626   :  { %v1940_v58 = vadd.f32 %v1939_v45, %v7076_v17  ;;  %v2009_v5 = vmax.f32 %v1936_v4, 0.0 }
 0x627   :  { %v2024_v31 = vmax.f32 %v1938_v1, 0.0 }
 0x628   :  { %v2025_v20 = vmax.f32 %v1940_v58, 0.0 }
 0x629   :  { %v2120_v55 = vpack.c.bf16 %v2024_v31, %v2008_v14 }
 0x62a   :  { %v2121_v57 = vpack.c.bf16 %v2025_v20, %v2009_v5  ;;  %v1943_v41 = vpop.f32.mrb[88].mxu0  ;;  %v7115_v20 = vld [vmem:[%s7476_s12] ss:$0 sm:$0xff] }
 0x62b   :  { %v1944_v40 = vadd.f32 %v1943_v41, %v7069_v30  ;;  %v1945_v61 = vpop.f32.mrb[89].mxu0 }
 0x62c   :  { %v1946_v26 = vadd.f32 %v1945_v61, %v7076_v17  ;;  %v1947_v7 = vpop.f32.mrb[90].mxu0  ;;  %3680 = vmatprep.mubr.bf16.mxu0 %v2121_v57 }
 0x62d   :  { %v1948_v44 = vadd.f32 %v1947_v7, %v7069_v30  ;;  %v1949_v53 = vpop.f32.mrb[91].mxu0  ;;  %3681 = vmatmul.mubr.bf16.gmra.mrb[148].mxu0 %v2120_v55  ;;  %v2040_v3 = vmax.f32 %v1944_v40, 0.0 }
 0x62e   :  { %v1950_v18 = vadd.f32 %v1949_v53, %v7076_v17  ;;  %v2041_v63 = vmax.f32 %v1946_v26, 0.0 }
 0x62f   :  { %v2056_v29 = vmax.f32 %v1948_v44, 0.0 }
 0x630   :  { %v2057_v35 = vmax.f32 %v1950_v18, 0.0 }
 0x631   :  { %v2136_v13 = vpack.c.bf16 %v2056_v29, %v2040_v3 }
 0x632   :  { %v2137_v6 = vpack.c.bf16 %v2057_v35, %v2041_v63  ;;  %v1953_v48 = vpop.f32.mrb[92].mxu0 }
 0x633   :  { %v1954_v37 = vadd.f32 %v1953_v48, %v7069_v30  ;;  %v1955_v62 = vpop.f32.mrb[93].mxu0 }
 0x634   :  { %v1956_v0 = vadd.f32 %v1955_v62, %v7076_v17  ;;  %v1957_v12 = vpop.f32.mrb[94].mxu0  ;;  %3688 = vmatprep.mubr.bf16.mxu0 %v2137_v6  ;;  %v5263_v6 = vld [vmem:[%s7477_s15] sm:$0xff]   ;;  %v5264_v62 = vld [vmem:[%s7477_s15 + $0x8] sm:$0xff]  }
 0x635   :  { %v1958_v56 = vadd.f32 %v1957_v12, %v7069_v30  ;;  %v1959_v38 = vpop.f32.mrb[95].mxu0  ;;  %3689 = vmatmul.mubr.bf16.gmra.mrb[152].mxu0 %v2136_v13  ;;  %v2072_v9 = vmax.f32 %v1954_v37, 0.0  ;;  %4011 = vmatpush1.bf16.msra.mxu1 %v5263_v6 }
 0x636   :  { %v1960_v50 = vadd.f32 %v1959_v38, %v7076_v17  ;;  %v2073_v27 = vmax.f32 %v1956_v0, 0.0  ;;  %4012 = vmatprep.subr.bf16.mxu1 %v5411_v42 }
 0x637   :  { %v2088_v33 = vmax.f32 %v1958_v56, 0.0 }
 0x638   :  { %v2089_v28 = vmax.f32 %v1960_v50, 0.0 }
 0x639   :  { %v2152_v2 = vpack.c.bf16 %v2088_v33, %v2072_v9  ;;  %v5265_v9 = vld [vmem:[%s7477_s15 + $0x10] sm:$0xff]   ;;  %4013 = vmatpush1.bf16.msra.mxu1 %v5264_v62 }
 0x63a   :  { %v2153_v22 = vpack.c.bf16 %v2089_v28, %v2073_v27  ;;  %4014 = vmatprep.subr.bf16.mxu1 %v5411_v42 }
 0x63c   :  { %3696 = vmatprep.mubr.bf16.mxu0 %v2153_v22 }
 0x63d   :  { %3697 = vmatmul.mubr.bf16.gmra.mrb[156].mxu0 %v2152_v2  ;;  %4015 = vmatpush1.bf16.msra.mxu1 %v5265_v9 }
 0x63e   :  { %4016 = vmatprep.subr.bf16.mxu1 %v5411_v42 }
 0x673   :  { %v4722_v54 = vpop.f32.mrb[80].mxu1 }
 0x674   :  { %v4723_v23 = vpop.f32.mrb[81].mxu1 }
 0x675   :  { %v4724_v8 = vadd.f32 %v4723_v23, %v4722_v54  ;;  %v4725_v59 = vpop.f32.mrb[82].mxu1 }
 0x676   :  { %v4726_v49 = vpop.f32.mrb[83].mxu1 }
 0x677   :  { %v4727_v39 = vadd.f32 %v4726_v49, %v4725_v59  ;;  %v3220_v61 = vadd.f32 %v4724_v8, %v7115_v20 }
 0x679   :  { %v3223_v29 = vadd.f32 %v4727_v39, %v7115_v20 }
 0x67b   :  { %v4728_v10 = vpop.f32.mrb[84].mxu1 }
 0x67c   :  { %v4729_v30 = vpop.f32.mrb[85].mxu1 }
 0x67d   :  { %v4730_v19 = vadd.f32 %v4729_v30, %v4728_v10  ;;  %v4731_v21 = vpop.f32.mrb[86].mxu1 }
 0x67e   :  { %v4732_v46 = vpop.f32.mrb[87].mxu1 }
 0x67f   :  { %v4733_v17 = vadd.f32 %v4732_v46, %v4731_v21  ;;  %v3228_v33 = vadd.f32 %v4730_v19, %v7115_v20  ;;  %v5266_v19 = vld [vmem:[%s7477_s15 + $0x18] sm:$0xff]   ;;  %v5274_v21 = vld [vmem:[%s7478_s1 + $0x4] ss:$8 sps:$4 sm:$0xff]  }
 0x680   :  { %4666 = vmatprep.mubr.msk.bf16.mxu1 %vm3993_vm2, %v5274_v21  ;;  %4017 = vmatpush1.bf16.msra.mxu1 %v5266_v19 }
 0x681   :  { %v3231_v8 = vadd.f32 %v4733_v17, %v7115_v20  ;;  %4018 = vmatprep.subr.bf16.mxu1 %v5411_v42 }
 0x689   :  { %v4734_v52 = vpop.f32.mrb[88].mxu1 }
 0x68a   :  { %v4735_v16 = vpop.f32.mrb[89].mxu1 }
 0x68b   :  { %v7104_v60 = vadd.f32 %v4735_v16, %v4734_v52  ;;  %v4737_v43 = vpop.f32.mrb[90].mxu1 }
 0x68c   :  { %v4738_v4 = vpop.f32.mrb[91].mxu1 }
 0x68d   :  { %v7106_v24 = vadd.f32 %v4738_v4, %v4737_v43  ;;  %v3236_v4 = vadd.f32 %v7104_v60, %v7115_v20 }
 0x691   :  { %v4740_v1 = vpop.f32.mrb[92].mxu1 }
 0x692   :  { %v4741_v45 = vpop.f32.mrb[93].mxu1 }
 0x693   :  { %v7108_v58 = vadd.f32 %v4741_v45, %v4740_v1  ;;  %v4743_v14 = vpop.f32.mrb[94].mxu1 }
 0x694   :  { %v4744_v31 = vpop.f32.mrb[95].mxu1 }
 0x695   :  { %v7110_v5 = vadd.f32 %v4744_v31, %v4743_v14 }
 0x698   :  { %v4762_v55 = vpop.f32.mrb[96].mxu0 }
 0x699   :  { %v4802_v57 = vpop.f32.mrb[96].mxu1  ;;  %v4763_v41 = vpop.f32.mrb[97].mxu0 }
 0x69a   :  { %v4803_v40 = vpop.f32.mrb[97].mxu1  ;;  %v4764_v26 = vadd.f32 %v4763_v41, %v4762_v55  ;;  %v4765_v44 = vpop.f32.mrb[98].mxu0  ;;  %v5267_v55 = vld [vmem:[%s7477_s15 + $0x20] sm:$0xff]  }
 0x69b   :  { %v4804_v7 = vadd.f32 %v4803_v40, %v4802_v57  ;;  %v4805_v53 = vpop.f32.mrb[98].mxu1  ;;  %v4766_v18 = vpop.f32.mrb[99].mxu0  ;;  %v3239_v40 = vadd.f32 %v7106_v24, %v7115_v20  ;;  %4019 = vmatpush1.bf16.msra.mxu1 %v5267_v55  ;;  %v3244_v24 = vadd.f32 %v7108_v58, %v7115_v20 }
 0x69c   :  { %v4806_v3 = vpop.f32.mrb[99].mxu1  ;;  %v3285_v63 = vadd.f32 %v4764_v26, %v3220_v61  ;;  %v4767_v35 = vadd.f32 %v4766_v18, %v4765_v44  ;;  %4020 = vmatprep.subr.bf16.mxu1 %v5411_v42 }
 0x69d   :  { %v4807_v13 = vadd.f32 %v4806_v3, %v4805_v53  ;;  %v5268_v53 = vld [vmem:[%s7477_s15 + $0x28] sm:$0xff]  }
 0x69e   :  { %v7122_v48 = vadd.f32 %v4804_v7, %v3285_v63  ;;  %v3288_v37 = vadd.f32 %v4767_v35, %v3223_v29 }
 0x69f   :  { %4021 = vmatpush1.bf16.msra.mxu1 %v5268_v53 }
 0x6a0   :  { %v7128_v0 = vadd.f32 %v4807_v13, %v3288_v37  ;;  %v4768_v12 = vpop.f32.mrb[100].mxu0  ;;  %4022 = vmatprep.subr.bf16.mxu1 %v5411_v42 }
 0x6a1   :  { %v4808_v56 = vpop.f32.mrb[100].mxu1  ;;  %v4769_v38 = vpop.f32.mrb[101].mxu0 }
 0x6a2   :  { %v4809_v50 = vpop.f32.mrb[101].mxu1  ;;  %v4770_v27 = vadd.f32 %v4769_v38, %v4768_v12  ;;  %v4771_v2 = vpop.f32.mrb[102].mxu0  ;;  %v5269_v12 = vld [vmem:[%s7477_s15 + $0x30] sm:$0xff]  }
 0x6a3   :  { %v4810_v28 = vadd.f32 %v4809_v50, %v4808_v56  ;;  %v4811_v22 = vpop.f32.mrb[102].mxu1  ;;  %v4772_v54 = vpop.f32.mrb[103].mxu0  ;;  %v3247_v50 = vadd.f32 %v7110_v5, %v7115_v20  ;;  %4023 = vmatpush1.bf16.msra.mxu1 %v5269_v12 }
 0x6a4   :  { %v4812_v23 = vpop.f32.mrb[103].mxu1  ;;  %v3293_v59 = vadd.f32 %v4770_v27, %v3228_v33  ;;  %v4773_v49 = vadd.f32 %v4772_v54, %v4771_v2  ;;  %v5270_v2 = vld [vmem:[%s7477_s15 + $0x38] sm:$0xff]   ;;  %4024 = vmatprep.subr.bf16.mxu1 %v5411_v42 }
 0x6a5   :  { %v4813_v39 = vadd.f32 %v4812_v23, %v4811_v22  ;;  %v5271_v22 = vld [vmem:[%s7477_s15 + $0x40] sm:$0x3f]  }
 0x6a6   :  { %v7136_v10 = vadd.f32 %v4810_v28, %v3293_v59  ;;  %v3296_v30 = vadd.f32 %v4773_v49, %v3231_v8  ;;  %v4008_v21 = vsel %vm4006_vm3, %v5271_v22, 0 }
 0x6a7   :  { %4025 = vmatpush1.bf16.msra.mxu1 %v5270_v2  ;;  %v5280_v2 = vld [vmem:[%s7478_s1 + $0x20] ss:$8 sps:$4 sm:$0xff]  }
 0x6a8   :  { %v7145_v46 = vadd.f32 %v4813_v39, %v3296_v30  ;;  %v4774_v17 = vpop.f32.mrb[104].mxu0  ;;  %4026 = vmatprep.subr.bf16.mxu1 %v5411_v42  ;;  %v5275_v42 = vld [vmem:[%s7478_s1 + $0x14] ss:$8 sps:$4 sm:$0xff]  }
 0x6a9   :  { %v4814_v52 = vpop.f32.mrb[104].mxu1  ;;  %v4775_v16 = vpop.f32.mrb[105].mxu0 }
 0x6aa   :  { %v4815_v43 = vpop.f32.mrb[105].mxu1  ;;  %v4776_v1 = vadd.f32 %v4775_v16, %v4774_v17  ;;  %v4777_v14 = vpop.f32.mrb[106].mxu0 }
 0x6ab   :  { %v4816_v45 = vadd.f32 %v4815_v43, %v4814_v52  ;;  %v4817_v31 = vpop.f32.mrb[106].mxu1  ;;  %v4778_v57 = vpop.f32.mrb[107].mxu0  ;;  %4027 = vmatpush1.bf16.msra.mxu1 %v4008_v21 }
 0x6ac   :  { %v4818_v41 = vpop.f32.mrb[107].mxu1  ;;  %v3301_v61 = vadd.f32 %v4776_v1, %v3236_v4  ;;  %v4779_v26 = vadd.f32 %v4778_v57, %v4777_v14  ;;  %v5272_v4 = vld [vmem:[%s7478_s1] ss:$8 sps:$4 sm:$0xff]  }
 0x6ad   :  { %v4819_v7 = vadd.f32 %v4818_v41, %v4817_v31 }
 0x6ae   :  { %v7156_v60 = vadd.f32 %v4816_v45, %v3301_v61  ;;  %v3304_v44 = vadd.f32 %v4779_v26, %v3239_v40  ;;  %4043 = vmatmul.mubr.bf16.vlgmr.msra.gmra.mrb[144].mxu1 %v5272_v4  ;;  %v5283_v4 = vld [vmem:[%s7478_s1 + $0x30] ss:$8 sps:$4 sm:$0xff]  }
 0x6af   :  { %4667 = vmatprep.mubr.msk.bf16.mxu1 %vm3993_vm2, %v5275_v42 }
 0x6b0   :  { %v7162_v18 = vadd.f32 %v4819_v7, %v3304_v44  ;;  %v4780_v3 = vpop.f32.mrb[108].mxu0 }
 0x6b1   :  { %v4820_v29 = vpop.f32.mrb[108].mxu1  ;;  %v4781_v63 = vpop.f32.mrb[109].mxu0 }
 0x6b2   :  { %v4821_v35 = vpop.f32.mrb[109].mxu1  ;;  %v4782_v13 = vadd.f32 %v4781_v63, %v4780_v3  ;;  %v4783_v37 = vpop.f32.mrb[110].mxu0 }
 0x6b3   :  { %v4822_v6 = vadd.f32 %v4821_v35, %v4820_v29  ;;  %v4823_v62 = vpop.f32.mrb[110].mxu1  ;;  %v4784_v56 = vpop.f32.mrb[111].mxu0  ;;  %v5277_v29 = vld [vmem:[%s7478_s1 + $0x10] ss:$8 sps:$4 sm:$0xff]  }
 0x6b4   :  { %v4824_v38 = vpop.f32.mrb[111].mxu1  ;;  %v3309_v9 = vadd.f32 %v4782_v13, %v3244_v24  ;;  %v4785_v33 = vadd.f32 %v4784_v56, %v4783_v37  ;;  %v5278_v24 = vld [vmem:[%s7478_s1 + $0x24] ss:$8 sps:$4 sm:$0xff]  }
 0x6b5   :  { %v4825_v27 = vadd.f32 %v4824_v38, %v4823_v62 }
 0x6b6   :  { %v7172_v58 = vadd.f32 %v4822_v6, %v3309_v9  ;;  %v3312_v28 = vadd.f32 %v4785_v33, %v3247_v50  ;;  %4051 = vmatmul.mubr.bf16.gmra.mrb[148].mxu1 %v5277_v29 }
 0x6b7   :  { %4668 = vmatprep.mubr.msk.bf16.mxu1 %vm3993_vm2, %v5278_v24 }
 0x6b8   :  { %v7181_v54 = vadd.f32 %v4825_v27, %v3312_v28  ;;  %v4842_v5 = vpop.f32.mrb[112].mxu0 }
 0x6b9   :  { %v4882_v20 = vpop.f32.mrb[112].mxu1  ;;  %v4843_v23 = vpop.f32.mrb[113].mxu0 }
 0x6ba   :  { %v4844_v8 = vadd.f32 %v4843_v23, %v4842_v5  ;;  %v4883_v59 = vpop.f32.mrb[113].mxu1  ;;  %v4845_v49 = vpop.f32.mrb[114].mxu0 }
 0x6bb   :  { %v4884_v39 = vadd.f32 %v4883_v59, %v4882_v20  ;;  %v4885_v30 = vpop.f32.mrb[114].mxu1  ;;  %v4846_v19 = vpop.f32.mrb[115].mxu0  ;;  %v5281_v20 = vld [vmem:[%s7478_s1 + $0x34] ss:$8 sps:$4 sm:$0xff]  }
 0x6bc   :  { %v3415_v17 = vadd.f32 %v4844_v8, %v7122_v48  ;;  %v4847_v52 = vadd.f32 %v4846_v19, %v4845_v49  ;;  %v4886_v16 = vpop.f32.mrb[115].mxu1 }
 0x6bd   :  { %v4887_v43 = vadd.f32 %v4886_v16, %v4885_v30 }
 0x6be   :  { %v7189_v1 = vadd.f32 %v4884_v39, %v3415_v17  ;;  %v3418_v45 = vadd.f32 %v4847_v52, %v7128_v0  ;;  %4059 = vmatmul.mubr.bf16.gmra.mrb[152].mxu1 %v5280_v2 }
 0x6bf   :  { %4669 = vmatprep.mubr.msk.bf16.mxu1 %vm3993_vm2, %v5281_v20 }
 0x6c0   :  { %v7195_v14 = vadd.f32 %v4887_v43, %v3418_v45  ;;  %v4848_v31 = vpop.f32.mrb[116].mxu0 }
 0x6c1   :  { %v4888_v48 = vpop.f32.mrb[116].mxu1  ;;  %v4849_v55 = vpop.f32.mrb[117].mxu0 }
 0x6c2   :  { %v4850_v57 = vadd.f32 %v4849_v55, %v4848_v31  ;;  %v4889_v41 = vpop.f32.mrb[117].mxu1  ;;  %v4851_v40 = vpop.f32.mrb[118].mxu0 }
 0x6c3   :  { %v4890_v61 = vadd.f32 %v4889_v41, %v4888_v48  ;;  %v4891_v26 = vpop.f32.mrb[118].mxu1  ;;  %v4852_v7 = vpop.f32.mrb[119].mxu0 }
 0x6c4   :  { %v3423_v0 = vadd.f32 %v4850_v57, %v7136_v10  ;;  %v4853_v44 = vadd.f32 %v4852_v7, %v4851_v40  ;;  %v4892_v53 = vpop.f32.mrb[119].mxu1 }
 0x6c5   :  { %v4893_v3 = vadd.f32 %v4892_v53, %v4891_v26 }
 0x6c6   :  { %v7202_v63 = vadd.f32 %v4890_v61, %v3423_v0  ;;  %v3426_v35 = vadd.f32 %v4853_v44, %v7145_v46  ;;  %4067 = vmatmul.mubr.bf16.gmra.mrb[156].mxu1 %v5283_v4 }
 0x6c8   :  { %v7208_v13 = vadd.f32 %v4893_v3, %v3426_v35  ;;  %v4854_v6 = vpop.f32.mrb[120].mxu0 }
 0x6c9   :  { %v4894_v37 = vpop.f32.mrb[120].mxu1  ;;  %v4855_v10 = vpop.f32.mrb[121].mxu0 }
 0x6ca   :  { %v4856_v62 = vadd.f32 %v4855_v10, %v4854_v6  ;;  %v4895_v12 = vpop.f32.mrb[121].mxu1  ;;  %v4857_v56 = vpop.f32.mrb[122].mxu0 }
 0x6cb   :  { %v4896_v38 = vadd.f32 %v4895_v12, %v4894_v37  ;;  %v4897_v50 = vpop.f32.mrb[122].mxu1  ;;  %v4858_v9 = vpop.f32.mrb[123].mxu0 }
 0x6cc   :  { %v3431_v46 = vadd.f32 %v4856_v62, %v7156_v60  ;;  %v4859_v33 = vadd.f32 %v4858_v9, %v4857_v56  ;;  %v4898_v27 = vpop.f32.mrb[123].mxu1 }
 0x6cd   :  { %v4899_v28 = vadd.f32 %v4898_v27, %v4897_v50 }
 0x6ce   :  { %v7215_v22 = vadd.f32 %v4896_v38, %v3431_v46  ;;  %v3434_v5 = vadd.f32 %v4859_v33, %v7162_v18 }
 0x6d0   :  { %v7221_v23 = vadd.f32 %v4899_v28, %v3434_v5  ;;  %v4860_v8 = vpop.f32.mrb[124].mxu0 }
 0x6d1   :  { %v4900_v59 = vpop.f32.mrb[124].mxu1  ;;  %v4861_v60 = vpop.f32.mrb[125].mxu0 }
 0x6d2   :  { %v4862_v49 = vadd.f32 %v4861_v60, %v4860_v8  ;;  %v4901_v39 = vpop.f32.mrb[125].mxu1  ;;  %v4863_v30 = vpop.f32.mrb[126].mxu0 }
 0x6d3   :  { %v4902_v19 = vadd.f32 %v4901_v39, %v4900_v59  ;;  %v4903_v21 = vpop.f32.mrb[126].mxu1  ;;  %v4864_v17 = vpop.f32.mrb[127].mxu0 }
 0x6d4   :  { %v3439_v18 = vadd.f32 %v4862_v49, %v7172_v58  ;;  %v4865_v52 = vadd.f32 %v4864_v17, %v4863_v30  ;;  %v4904_v16 = vpop.f32.mrb[127].mxu1 }
 0x6d5   :  { %v4905_v43 = vadd.f32 %v4904_v16, %v4903_v21 }
 0x6d6   :  { %v3504_v45 = vadd.f32 %v4902_v19, %v3439_v18  ;;  %v3442_v42 = vadd.f32 %v4865_v52, %v7181_v54 }
 0x6d8   :  { %v7229_v31 = vadd.f32 %v4905_v43, %v3442_v42  ;;  %v4922_v48 = vpop.f32.mrb[128].mxu0 }
 0x6d9   :  { %v4962_v55 = vpop.f32.mrb[128].mxu1  ;;  %v4923_v57 = vpop.f32.mrb[129].mxu0 }
 0x6da   :  { %v4924_v41 = vadd.f32 %v4923_v57, %v4922_v48  ;;  %v4963_v40 = vpop.f32.mrb[129].mxu1  ;;  %v4925_v61 = vpop.f32.mrb[130].mxu0 }
 0x6db   :  { %v4964_v58 = vadd.f32 %v4963_v40, %v4962_v55  ;;  %v4965_v26 = vpop.f32.mrb[130].mxu1  ;;  %v4926_v7 = vpop.f32.mrb[131].mxu0 }
 0x6dc   :  { %v3545_v0 = vadd.f32 %v4924_v41, %v7189_v1  ;;  %v4927_v44 = vadd.f32 %v4926_v7, %v4925_v61  ;;  %v4966_v53 = vpop.f32.mrb[131].mxu1 }
 0x6dd   :  { %v4967_v3 = vadd.f32 %v4966_v53, %v4965_v26 }
 0x6de   :  { %v3610_v29 = vadd.f32 %v4964_v58, %v3545_v0  ;;  %v3548_v54 = vadd.f32 %v4927_v44, %v7195_v14 }
 0x6e0   :  { %v3613_v35 = vadd.f32 %v4967_v3, %v3548_v54  ;;  %v4928_v24 = vpop.f32.mrb[132].mxu0 }
 0x6e1   :  { %v4968_v6 = vpop.f32.mrb[132].mxu1  ;;  %v4929_v37 = vpop.f32.mrb[133].mxu0 }
 0x6e2   :  { %v4930_v10 = vadd.f32 %v4929_v37, %v4928_v24  ;;  %v4969_v62 = vpop.f32.mrb[133].mxu1  ;;  %v4931_v12 = vpop.f32.mrb[134].mxu0 }
 0x6e3   :  { %v4970_v56 = vadd.f32 %v4969_v62, %v4968_v6  ;;  %v4971_v38 = vpop.f32.mrb[134].mxu1  ;;  %v4932_v50 = vpop.f32.mrb[135].mxu0 }
 0x6e4   :  { %v3553_v9 = vadd.f32 %v4930_v10, %v7202_v63  ;;  %v4933_v46 = vadd.f32 %v4932_v50, %v4931_v12  ;;  %v4972_v1 = vpop.f32.mrb[135].mxu1 }
 0x6e5   :  { %v4973_v33 = vadd.f32 %v4972_v1, %v4971_v38 }
 0x6e6   :  { %v3618_v27 = vadd.f32 %v4970_v56, %v3553_v9  ;;  %v3556_v28 = vadd.f32 %v4933_v46, %v7208_v13 }
 0x6e8   :  { %v3621_v2 = vadd.f32 %v4973_v33, %v3556_v28  ;;  %v4934_v14 = vpop.f32.mrb[136].mxu0 }
 0x6e9   :  { %v4974_v5 = vpop.f32.mrb[136].mxu1  ;;  %v4935_v20 = vpop.f32.mrb[137].mxu0 }
 0x6ea   :  { %v4936_v8 = vadd.f32 %v4935_v20, %v4934_v14  ;;  %v4975_v59 = vpop.f32.mrb[137].mxu1  ;;  %v4937_v60 = vpop.f32.mrb[138].mxu0 }
 0x6eb   :  { %v4976_v49 = vadd.f32 %v4975_v59, %v4974_v5  ;;  %v4977_v39 = vpop.f32.mrb[138].mxu1  ;;  %v4938_v30 = vpop.f32.mrb[139].mxu0 }
 0x6ec   :  { %v3561_v19 = vadd.f32 %v4936_v8, %v7215_v22  ;;  %v4939_v21 = vadd.f32 %v4938_v30, %v4937_v60  ;;  %v4978_v63 = vpop.f32.mrb[139].mxu1 }
 0x6ed   :  { %v4979_v17 = vadd.f32 %v4978_v63, %v4977_v39 }
 0x6ee   :  { %v3626_v18 = vadd.f32 %v4976_v49, %v3561_v19  ;;  %v3564_v52 = vadd.f32 %v4939_v21, %v7221_v23 }
 0x6f0   :  { %v3629_v16 = vadd.f32 %v4979_v17, %v3564_v52  ;;  %v4940_v13 = vpop.f32.mrb[140].mxu0 }
 0x6f1   :  { %v4980_v43 = vpop.f32.mrb[140].mxu1  ;;  %v4941_v4 = vpop.f32.mrb[141].mxu0 }
 0x6f2   :  { %v4942_v42 = vadd.f32 %v4941_v4, %v4940_v13  ;;  %v4981_v48 = vpop.f32.mrb[141].mxu1  ;;  %v4943_v55 = vpop.f32.mrb[142].mxu0 }
 0x6f3   :  { %v4982_v57 = vadd.f32 %v4981_v48, %v4980_v43  ;;  %v4983_v41 = vpop.f32.mrb[142].mxu1  ;;  %v4944_v40 = vpop.f32.mrb[143].mxu0 }
 0x6f4   :  { %v3569_v61 = vadd.f32 %v4942_v42, %v3504_v45  ;;  %v4945_v58 = vadd.f32 %v4944_v40, %v4943_v55  ;;  %v4984_v26 = vpop.f32.mrb[143].mxu1 }
 0x6f5   :  { %v4985_v22 = vadd.f32 %v4984_v26, %v4983_v41 }
 0x6f6   :  { %v3634_v7 = vadd.f32 %v4982_v57, %v3569_v61  ;;  %v3572_v0 = vadd.f32 %v4945_v58, %v7229_v31 }
 0x6f8   :  { %v3637_v44 = vadd.f32 %v4985_v22, %v3572_v0  ;;  %v5002_v53 = vpop.f32.mrb[144].mxu0 }
 0x6f9   :  { %v5003_v23 = vpop.f32.mrb[145].mxu0 }
 0x6fa   :  { %v5004_v3 = vadd.f32 %v5003_v23, %v5002_v53  ;;  %v5005_v54 = vpop.f32.mrb[146].mxu0 }
 0x6fb   :  { %v5006_v24 = vpop.f32.mrb[147].mxu0 }
 0x6fc   :  { %v3675_v6 = vadd.f32 %v5004_v3, %v3610_v29  ;;  %v5007_v37 = vadd.f32 %v5006_v24, %v5005_v54 }
 0x6fe   :  { %v3678_v10 = vadd.f32 %v5007_v37, %v3613_v35  ;;  %v3705_v62 = vadd.f32 %v3675_v6, %v6203_v51 }
 0x700   :  { %v5008_v12 = vpop.f32.mrb[148].mxu0  ;;  %v3715_v45 = vsel %vm94_vm1, %v3705_v62, 0.0  ;;  %v3706_v56 = vadd.f32 %v3678_v10, %v6206_v36 }
 0x701   :  { %v5009_v38 = vpop.f32.mrb[149].mxu0  ;;  %3716 = vadd.xlane.f32.xlu1 %v3715_v45 }
 0x702   :  { %v5010_v50 = vadd.f32 %v5009_v38, %v5008_v12  ;;  %v5011_v31 = vpop.f32.mrb[150].mxu0  ;;  %v3718_v9 = vsel %vm94_vm1, %v3706_v56, 0.0 }
 0x703   :  { %v5012_v46 = vpop.f32.mrb[151].mxu0  ;;  %3719 = vadd.xlane.f32.xlu0 %v3718_v9 }
 0x704   :  { %v3683_v1 = vadd.f32 %v5010_v50, %v3618_v27  ;;  %v5013_v33 = vadd.f32 %v5012_v46, %v5011_v31 }
 0x706   :  { %v3686_v29 = vadd.f32 %v5013_v33, %v3621_v2  ;;  %v3707_v35 = vadd.f32 %v3683_v1, %v6256_v15 }
 0x708   :  { %v5014_v28 = vpop.f32.mrb[152].mxu0  ;;  %v3721_v51 = vsel %vm94_vm1, %v3707_v35, 0.0  ;;  %v3708_v14 = vadd.f32 %v3686_v29, %v6236_v32 }
 0x709   :  { %v5015_v5 = vpop.f32.mrb[153].mxu0  ;;  %3722 = vadd.xlane.f32.xlu1 %v3721_v51 }
 0x70a   :  { %v5016_v36 = vadd.f32 %v5015_v5, %v5014_v28  ;;  %v5017_v20 = vpop.f32.mrb[154].mxu0  ;;  %v3724_v8 = vsel %vm94_vm1, %v3708_v14, 0.0 }
 0x70b   :  { %v5018_v59 = vpop.f32.mrb[155].mxu0  ;;  %3725 = vadd.xlane.f32.xlu0 %v3724_v8 }
 0x70c   :  { %v3691_v60 = vadd.f32 %v5016_v36, %v3626_v18  ;;  %v5019_v49 = vadd.f32 %v5018_v59, %v5017_v20 }
 0x70e   :  { %v3694_v27 = vadd.f32 %v5019_v49, %v3629_v16  ;;  %v3709_v2 = vadd.f32 %v3691_v60, %v6278_v34 }
 0x710   :  { %v5020_v39 = vpop.f32.mrb[156].mxu0  ;;  %v3727_v15 = vsel %vm94_vm1, %v3709_v2, 0.0  ;;  %v3710_v30 = vadd.f32 %v3694_v27, %v6281_v11 }
 0x711   :  { %v5021_v19 = vpop.f32.mrb[157].mxu0  ;;  %3728 = vadd.xlane.f32.xlu1 %v3727_v15 }
 0x712   :  { %v5022_v32 = vadd.f32 %v5021_v19, %v5020_v39  ;;  %v5023_v21 = vpop.f32.mrb[158].mxu0  ;;  %v3730_v63 = vsel %vm94_vm1, %v3710_v30, 0.0 }
 0x713   :  { %v5024_v17 = vpop.f32.mrb[159].mxu0  ;;  %3731 = vadd.xlane.f32.xlu0 %v3730_v63 }
 0x714   :  { %v3699_v52 = vadd.f32 %v5022_v32, %v3634_v7  ;;  %v5025_v13 = vadd.f32 %v5024_v17, %v5023_v21 }
 0x716   :  { %v3702_v18 = vadd.f32 %v5025_v13, %v3637_v44  ;;  %v3711_v16 = vadd.f32 %v3699_v52, %v6300_v47 }
 0x718   :  { %v3733_v34 = vsel %vm94_vm1, %v3711_v16, 0.0  ;;  %v3712_v43 = vadd.f32 %v3702_v18, %v6297_v25 }
 0x719   :  { %3734 = vadd.xlane.f32.xlu1 %v3733_v34 }
 0x71a   :  { %v3736_v11 = vsel %vm94_vm1, %v3712_v43, 0.0 }
 0x71b   :  { %3737 = vadd.xlane.f32.xlu0 %v3736_v11 }
 0x781   :  { %v4044_v5 = vpop.f32.mrb[144].mxu1 }
 0x782   :  { %v4046_v36 = vpop.f32.mrb[145].mxu1 }
 0x783   :  { %v4047_v20 = vpop.f32.mrb[146].mxu1 }
 0x784   :  { %v4049_v8 = vpop.f32.mrb[147].mxu1 }
 0x789   :  { %v4052_v59 = vpop.f32.mrb[148].mxu1 }
 0x78a   :  { %v4054_v60 = vpop.f32.mrb[149].mxu1 }
 0x78b   :  { %v4055_v49 = vpop.f32.mrb[150].mxu1 }
 0x78c   :  { %v4057_v27 = vpop.f32.mrb[151].mxu1 }
 0x78e   :  { %v3717_v4 = vpop.xlane.xlu1 %3716 }
 0x78f   :  { %v3739_v42 = vmul.f32 0.05, %v3717_v4 }
 0x790   :  { %v3720_v48 = vpop.xlane.xlu0 %3719 }
 0x791   :  { %v7254_v55 = vsub.f32 %v3705_v62, %v3739_v42  ;;  %v3740_v57 = vmul.f32 0.05, %v3720_v48 }
 0x793   :  { %v7256_v41 = vsub.f32 %v3706_v56, %v3740_v57  ;;  %v3755_v40 = vmul.f32 %v7254_v55, %v7254_v55  ;;  %v7305_v57 = vld [vmem:[%s7479_s16] ss:$0 sm:$0xff] }
 0x795   :  { %v3763_v47 = vsel %vm94_vm1, %v3755_v40, 0.0  ;;  %v3756_v25 = vmul.f32 %v7256_v41, %v7256_v41 }
 0x796   :  { %v3723_v61 = vpop.xlane.xlu1 %3722  ;;  %3764 = vadd.xlane.f32.xlu1 %v3763_v47  ;;  %v4045_v47 = vadd.f32 %v7305_v57, %v4044_v5 }
 0x797   :  { %v3741_v58 = vmul.f32 0.05, %v3723_v61  ;;  %v3766_v26 = vsel %vm94_vm1, %v3756_v25, 0.0  ;;  %v4048_v25 = vadd.f32 %v7305_v57, %v4047_v20 }
 0x798   :  { %v3726_v22 = vpop.xlane.xlu0 %3725  ;;  %3767 = vadd.xlane.f32.xlu0 %v3766_v26  ;;  %vm4075_vm4 = vcmp.ge.f32.partialorder %v4045_v47, 0.0 }
 0x799   :  { %v7264_v7 = vsub.f32 %v3707_v35, %v3741_v58  ;;  %v3742_v0 = vmul.f32 0.05, %v3726_v22  ;;  %v7312_v58 = vld [vmem:[%s7480_s13] ss:$0 sm:$0xff]  ;;  %vm4076_vm5 = vcmp.ge.f32.partialorder %v4048_v25, 0.0  ;;  %s5412_s13 = smov 40  }
 0x79b   :  { %v7266_v44 = vsub.f32 %v3708_v14, %v3742_v0  ;;  %v3757_v53 = vmul.f32 %v7264_v7, %v7264_v7 }
 0x79d   :  { %v3769_v23 = vsel %vm94_vm1, %v3757_v53, 0.0  ;;  %v3758_v3 = vmul.f32 %v7266_v44, %v7266_v44 }
 0x79e   :  { %v3729_v54 = vpop.xlane.xlu1 %3728  ;;  %3770 = vadd.xlane.f32.xlu1 %v3769_v23  ;;  %v7318_v23 = vld [vmem:[%s7481_s14] ss:$0 sm:$0xff]  ;;  %s5413_s14 = smov 20  }
 0x79f   :  { %v3743_v24 = vmul.f32 0.05, %v3729_v54  ;;  %v3772_v6 = vsel %vm94_vm1, %v3758_v3, 0.0  ;;  %v4083_v54 = vmul.f32 0.1, %v4045_v47 }
 0x7a0   :  { %v3732_v37 = vpop.xlane.xlu0 %3731  ;;  %3773 = vadd.xlane.f32.xlu0 %v3772_v6 }
 0x7a1   :  { %v7274_v10 = vsub.f32 %v3709_v2, %v3743_v24  ;;  %v3744_v62 = vmul.f32 0.05, %v3732_v37  ;;  %v7294_v2 = vpop.f32.mrb[152].mxu1  ;;  %v4084_v24 = vmul.f32 0.1, %v4048_v25 }
 0x7a2   :  { %v4062_v39 = vpop.f32.mrb[153].mxu1 }
 0x7a3   :  { %v7276_v12 = vsub.f32 %v3710_v30, %v3744_v62  ;;  %v3759_v45 = vmul.f32 %v7274_v10, %v7274_v10  ;;  %v7296_v15 = vpop.f32.mrb[154].mxu1 }
 0x7a4   :  { %v4065_v30 = vpop.f32.mrb[155].mxu1 }
 0x7a5   :  { %v3775_v56 = vsel %vm94_vm1, %v3759_v45, 0.0  ;;  %v3760_v38 = vmul.f32 %v7276_v12, %v7276_v12  ;;  %v7298_v19 = vpop.f32.mrb[156].mxu1 }
 0x7a6   :  { %3776 = vadd.xlane.f32.xlu1 %v3775_v56  ;;  %v3735_v50 = vpop.xlane.xlu1 %3734  ;;  %v4070_v32 = vpop.f32.mrb[157].mxu1  ;;  %v4053_v56 = vadd.f32 %v7305_v57, %v4052_v59 }
 0x7a7   :  { %v3745_v31 = vmul.f32 0.05, %v3735_v50  ;;  %v3778_v9 = vsel %vm94_vm1, %v3760_v38, 0.0  ;;  %v7300_v21 = vpop.f32.mrb[158].mxu1 }
 0x7a8   :  { %3779 = vadd.xlane.f32.xlu0 %v3778_v9  ;;  %v3738_v46 = vpop.xlane.xlu0 %3737  ;;  %v4073_v63 = vpop.f32.mrb[159].mxu1  ;;  %vm4077_vm8 = vcmp.ge.f32.partialorder %v4053_v56, 0.0 }
 0x7a9   :  { %v7284_v1 = vsub.f32 %v3711_v16, %v3745_v31  ;;  %v3746_v33 = vmul.f32 0.05, %v3738_v46  ;;  %v4056_v31 = vadd.f32 %v7305_v57, %v4055_v49  ;;  %v4061_v63 = vadd.f32 %v7305_v57, %v7294_v2 }
 0x7ab   :  { %v7286_v29 = vsub.f32 %v3712_v43, %v3746_v33  ;;  %v3761_v35 = vmul.f32 %v7284_v1, %v7284_v1  ;;  %v7327_v33 = vsel %vm4075_vm4, %v4045_v47, %v4083_v54  ;;  %v4086_v49 = vmul.f32 0.1, %v4056_v31 }
 0x7ac   :  { %vm4078_vm9 = vcmp.ge.f32.partialorder %v4056_v31, 0.0  ;;  %vm4079_vm12 = vcmp.ge.f32.partialorder %v4061_v63, 0.0 }
 0x7ad   :  { %v3781_v28 = vsel %vm94_vm1, %v3761_v35, 0.0  ;;  %v3762_v51 = vmul.f32 %v7286_v29, %v7286_v29  ;;  %v4085_v35 = vmul.f32 0.1, %v4053_v56 }
 0x7ae   :  { %3782 = vadd.xlane.f32.xlu1 %v3781_v28  ;;  %v7329_v28 = vsel %vm4076_vm5, %v4048_v25, %v4084_v24 }
 0x7af   :  { %v3784_v14 = vsel %vm94_vm1, %v3762_v51, 0.0 }
 0x7b0   :  { %3785 = vadd.xlane.f32.xlu0 %v3784_v14 }
 0x823   :  { %v3765_v17 = vpop.xlane.xlu1 %3764 }
 0x824   :  { %v3787_v52 = vmul.f32 0.05, %v3765_v17 }
 0x825   :  { %v3768_v13 = vpop.xlane.xlu0 %3767 }
 0x826   :  { %v3795_v18 = vadd.f32 1e-05, %v3787_v52  ;;  %v3788_v16 = vmul.f32 0.05, %v3768_v13 }
 0x828   :  { %5384 = vrsqrt.f32 %v3795_v18  ;;  %v3796_v34 = vadd.f32 1e-05, %v3788_v16  ;;  %v7342_v18 = vsel %vm4077_vm8, %v4053_v56, %v4085_v35  ;;  %vm5415_vm8 = vmmov 0  }
 0x82a   :  { %5386 = vrsqrt.f32 %v3796_v34 }
 0x82b   :  { %v3771_v43 = vpop.xlane.xlu1 %3770 }
 0x82c   :  { %v3789_v11 = vmul.f32 0.05, %v3771_v43 }
 0x82d   :  { %v3774_v4 = vpop.xlane.xlu0 %3773 }
 0x82e   :  { %v3797_v42 = vadd.f32 1e-05, %v3789_v11  ;;  %v3790_v48 = vmul.f32 0.05, %v3774_v4 }
 0x830   :  { %5388 = vrsqrt.f32 %v3797_v42  ;;  %v3798_v40 = vadd.f32 1e-05, %v3790_v48  ;;  %v4064_v42 = vadd.f32 %v7305_v57, %v7296_v15  ;;  %v7351_v48 = vsel %vm4078_vm9, %v4056_v31, %v4086_v49 }
 0x831   :  { %vm4297_vm9 = vcmask 1043459  }
 0x832   :  { %v5385_v61 = vpop.eup %5384  ;;  %5390 = vrsqrt.f32 %v3798_v40  ;;  %v4088_v54 = vmul.f32 0.1, %v4064_v42  ;;  %vm4080_vm13 = vcmp.ge.f32.partialorder %v4064_v42, 0.0 }
 0x833   :  { %v3777_v26 = vpop.xlane.xlu1 %3776  ;;  %v3811_v22 = vmul.f32 %v5385_v61, %v7254_v55 }
 0x834   :  { %v5387_v0 = vpop.eup %5386  ;;  %v3791_v53 = vmul.f32 0.05, %v3777_v26  ;;  %v4087_v26 = vmul.f32 0.1, %v4061_v63 }
 0x835   :  { %v3780_v3 = vpop.xlane.xlu0 %3779  ;;  %v3825_v6 = vmul.f32 %v7312_v58, %v3811_v22  ;;  %v3812_v37 = vmul.f32 %v5387_v0, %v7256_v41 }
 0x836   :  { %v3799_v62 = vadd.f32 1e-05, %v3791_v53  ;;  %v3792_v45 = vmul.f32 0.05, %v3780_v3 }
 0x837   :  { %v3839_v55 = vadd.f32 %v7318_v23, %v3825_v6  ;;  %v3826_v38 = vmul.f32 %v7312_v58, %v3812_v37 }
 0x838   :  { %5392 = vrsqrt.f32 %v3799_v62  ;;  %v3800_v50 = vadd.f32 1e-05, %v3792_v45  ;;  %v4069_v62 = vadd.f32 %v7305_v57, %v7298_v19 }
 0x839   :  { %vm3847_vm6 = vcmp.ge.f32.partialorder %v3839_v55, 0.0  ;;  %v3855_v9 = vmul.f32 0.1, %v3839_v55  ;;  %v3840_v46 = vadd.f32 %v7318_v23, %v3826_v38 }
 0x83a   :  { %v5389_v41 = vpop.eup %5388  ;;  %5394 = vrsqrt.f32 %v3800_v50  ;;  %vm4081_vm0 = vcmp.ge.f32.partialorder %v4069_v62, 0.0 }
 0x83b   :  { %v3783_v51 = vpop.xlane.xlu1 %3782  ;;  %v3863_v14 = vsel %vm3847_vm6, %v3839_v55, %v3855_v9  ;;  %vm3848_vm7 = vcmp.ge.f32.partialorder %v3840_v46, 0.0  ;;  %v3856_v5 = vmul.f32 0.1, %v3840_v46  ;;  %v3813_v36 = vmul.f32 %v5389_v41, %v7264_v7 }
 0x83c   :  { %v5391_v20 = vpop.eup %5390  ;;  %v3793_v8 = vmul.f32 0.05, %v3783_v51  ;;  %4220 = vrot.lane.b32.xlu0 %v3863_v14, %s5412_s13  ;;  %4151 = vrot.lane.b32.xlu1 %v3863_v14, %s5413_s14  ;;  %v4099_v59 = vmul.f32 %v7327_v33, %v3863_v14  ;;  %v4072_v9 = vadd.f32 %v7305_v57, %v7300_v21  ;;  %v7372_v41 = vsel %vm4080_vm13, %v4064_v42, %v4088_v54 }
 0x83d   :  { %v3786_v60 = vpop.xlane.xlu0 %3785  ;;  %v3864_v27 = vsel %vm3848_vm7, %v3840_v46, %v3856_v5  ;;  %v3827_v39 = vmul.f32 %v7312_v58, %v3813_v36  ;;  %v3814_v30 = vmul.f32 %v5391_v20, %v7266_v44  ;;  %v4089_v5 = vmul.f32 0.1, %v4069_v62 }
 0x83e   :  { %v3801_v32 = vadd.f32 1e-05, %v3793_v8  ;;  %v3794_v7 = vmul.f32 0.05, %v3786_v60  ;;  %v4100_v17 = vmul.f32 %v7329_v28, %v3864_v27  ;;  %v4107_v44 = vsel %vm94_vm1, %v4099_v59, -inf }
 0x83f   :  { %v3841_v52 = vadd.f32 %v7318_v23, %v3827_v39  ;;  %v3828_v13 = vmul.f32 %v7312_v58, %v3814_v30  ;;  %v4090_v59 = vmul.f32 0.1, %v4072_v9  ;;  %vm4082_vm2 = vcmp.ge.f32.partialorder %v4072_v9, 0.0 }
 0x840   :  { %5396 = vrsqrt.f32 %v3801_v32  ;;  %v3802_v16 = vadd.f32 1e-05, %v3794_v7  ;;  %4153 = vrot.lane.b32.xlu0 %v3864_v27, %s5413_s14  ;;  %4222 = vrot.lane.b32.xlu1 %v3864_v27, %s5412_s13  ;;  %v4108_v34 = vsel %vm94_vm1, %v4100_v17, -inf  ;;  %v7387_v7 = vsel %vm4081_vm0, %v4069_v62, %v4089_v5 }
 0x841   :  { %vm3849_vm10 = vcmp.ge.f32.partialorder %v3841_v52, 0.0  ;;  %v3857_v2 = vmul.f32 0.1, %v3841_v52  ;;  %v3842_v43 = vadd.f32 %v7318_v23, %v3828_v13  ;;  %v4109_v11 = vmax.f32 %v4107_v44, %v4108_v34 }
 0x842   :  { %v5393_v4 = vpop.eup %5392  ;;  %5398 = vrsqrt.f32 %v3802_v16  ;;  %vm4293_vm6 = vcmask 1041409   ;;  %vm4295_vm7 = vcmask 1042434   ;;  %vm4405_vm13 = vcmask 11264  }
 0x843   :  { %v3865_v40 = vsel %vm3849_vm10, %v3841_v52, %v3857_v2  ;;  %vm3850_vm11 = vcmp.ge.f32.partialorder %v3842_v43, 0.0  ;;  %v3858_v47 = vmul.f32 0.1, %v3842_v43  ;;  %v3815_v25 = vmul.f32 %v5393_v4, %v7274_v10 }
 0x844   :  { %v5395_v61 = vpop.eup %5394  ;;  %4224 = vrot.lane.b32.xlu0 %v3865_v40, %s5412_s13  ;;  %4155 = vrot.lane.b32.xlu1 %v3865_v40, %s5413_s14  ;;  %v4110_v22 = vrot.slane %v4109_v11, 4  ;;  %v4101_v0 = vmul.f32 %v7342_v18, %v3865_v40  ;;  %v5284_v40 = vld [vmem:[%s7482_s17] sm:$0xff]   ;;  %vm4252_vm10 = vcmask 490816  }
 0x845   :  { %v3866_v53 = vsel %vm3850_vm11, %v3842_v43, %v3858_v47  ;;  %v3829_v3 = vmul.f32 %v7312_v58, %v3815_v25  ;;  %v3816_v15 = vmul.f32 %v5395_v61, %v7276_v12  ;;  %v7367_v12 = vsel %vm4079_vm12, %v4061_v63, %v4087_v26 }
 0x846   :  { %v4111_v24 = vmax.f32 %v4109_v11, %v4110_v22  ;;  %v4102_v6 = vmul.f32 %v7351_v48, %v3866_v53  ;;  %v4116_v45 = vsel %vm94_vm1, %v4101_v0, -inf  ;;  %vm4183_vm11 = vcmask 326816  }
 0x847   :  { %v3843_v10 = vadd.f32 %v7318_v23, %v3829_v3  ;;  %v3830_v37 = vmul.f32 %v7312_v58, %v3816_v15  ;;  %vm4358_vm12 = vcmask 490496  }
 0x848   :  { %4157 = vrot.lane.b32.xlu1 %v3866_v53, %s5413_s14  ;;  %v4117_v56 = vsel %vm94_vm1, %v4102_v6, -inf  ;;  %v4112_v46 = vrot.slane %v4111_v24, 2 }
 0x849   :  { %vm3851_vm14 = vcmp.ge.f32.partialorder %v3843_v10, 0.0  ;;  %v3859_v55 = vmul.f32 0.1, %v3843_v10  ;;  %v3844_v38 = vadd.f32 %v7318_v23, %v3830_v37  ;;  %v4118_v50 = vmax.f32 %v4116_v45, %v4117_v56  ;;  %v5285_v37 = vld [vmem:[%s7482_s17 + $0x8] sm:$0xff]  }
 0x84a   :  { %v5397_v31 = vpop.eup %5396  ;;  %v4113_v60 = vmax.f32 %v4111_v24, %v4112_v46 }
 0x84b   :  { %v3867_v35 = vsel %vm3851_vm14, %v3843_v10, %v3859_v55  ;;  %vm3852_vm15 = vcmp.ge.f32.partialorder %v3844_v38, 0.0  ;;  %v3860_v19 = vmul.f32 0.1, %v3844_v38  ;;  %v3817_v51 = vmul.f32 %v5397_v31, %v7284_v1  ;;  %v5286_v55 = vld [vmem:[%s7482_s17 + $0x10] sm:$0xff]  }
 0x84c   :  { %v5399_v14 = vpop.eup %5398  ;;  %4226 = vrot.lane.b32.xlu1 %v3866_v53, %s5412_s13  ;;  %4159 = vrot.lane.b32.xlu0 %v3867_v35, %s5413_s14  ;;  %v4119_v36 = vrot.slane %v4118_v50, 4  ;;  %v4103_v20 = vmul.f32 %v7367_v12, %v3867_v35  ;;  %v4114_v13 = vrot.slane %v4113_v60, 1 }
 0x84d   :  { %v3868_v8 = vsel %vm3852_vm15, %v3844_v38, %v3860_v19  ;;  %v3831_v21 = vmul.f32 %v7312_v58, %v3817_v51  ;;  %v3818_v57 = vmul.f32 %v5399_v14, %v7286_v29  ;;  %v5287_v38 = vld [vmem:[%s7482_s17 + $0x18] sm:$0x3f]  }
 0x84e   :  { %v4120_v49 = vmax.f32 %v4118_v50, %v4119_v36  ;;  %v4104_v1 = vmul.f32 %v7372_v41, %v3868_v8  ;;  %v4125_v32 = vsel %vm94_vm1, %v4103_v20, -inf  ;;  %v4115_v47 = vmax.f32 %v4113_v60, %v4114_v13 }
 0x84f   :  { %v3845_v27 = vadd.f32 %v7318_v23, %v3831_v21  ;;  %v3832_v39 = vmul.f32 %v7312_v58, %v3818_v57  ;;  %v7390_v58 = vsel %vm4082_vm2, %v4072_v9, %v4090_v59  ;;  %v4363_v9 = vsel %vm4006_vm3, %v5287_v38, 0 }
 0x850   :  { %4161 = vrot.lane.b32.xlu1 %v3868_v8, %s5413_s14  ;;  %4228 = vrot.lane.b32.xlu0 %v3867_v35, %s5412_s13  ;;  %v4121_v30 = vrot.slane %v4120_v49, 2  ;;  %v4126_v29 = vsel %vm94_vm1, %v4104_v1, -inf  ;;  %vm4317_vm3 = vcmask 326656  }
 0x851   :  { %vm3853_vm4 = vcmp.ge.f32.partialorder %v3845_v27, 0.0  ;;  %v3861_v63 = vmul.f32 0.1, %v3845_v27  ;;  %v3846_v17 = vadd.f32 %v7318_v23, %v3832_v39  ;;  %v4127_v52 = vmax.f32 %v4125_v32, %v4126_v29 }
 0x852   :  { %v4122_v16 = vmax.f32 %v4120_v49, %v4121_v30  ;;  %v5414_v23 = vmov 0.0  }
 0x853   :  { %v3869_v44 = vsel %vm3853_vm4, %v3845_v27, %v3861_v63  ;;  %vm3854_vm5 = vcmp.ge.f32.partialorder %v3846_v17, 0.0  ;;  %v3862_v34 = vmul.f32 0.1, %v3846_v17  ;;  %v4128_v2 = vrot.slane %v4127_v52, 4  ;;  %5091 = vmatprep.subr.bf16.mxu0 %v5414_v23  ;;  %5099 = vmatprep.mubr.msk.bf16.mxu0 %vm5415_vm8, %v5414_v23 }
 0x854   :  { %4230 = vrot.lane.b32.xlu1 %v3868_v8, %s5412_s13  ;;  %4163 = vrot.lane.b32.xlu0 %v3869_v44, %s5413_s14  ;;  %v4123_v43 = vrot.slane %v4122_v16, 1  ;;  %v4105_v11 = vmul.f32 %v7387_v7, %v3869_v44 }
 0x855   :  { %v3870_v4 = vsel %vm3854_vm5, %v3846_v17, %v3862_v34  ;;  %v4129_v42 = vmax.f32 %v4127_v52, %v4128_v2  ;;  %5092 = vmatpush3.bf16.msra.mxu0 %v5284_v40 }
 0x856   :  { %v4124_v25 = vmax.f32 %v4122_v16, %v4123_v43  ;;  %v4106_v61 = vmul.f32 %v7390_v58, %v3870_v4  ;;  %v4134_v0 = vsel %vm94_vm1, %v4105_v11, -inf  ;;  %5093 = vmatprep.subr.bf16.mxu0 %v5414_v23 }
 0x857   :  { %v4130_v26 = vrot.slane %v4129_v42, 2 }
 0x858   :  { %4165 = vrot.lane.b32.xlu1 %v3870_v4, %s5413_s14  ;;  %4232 = vrot.lane.b32.xlu0 %v3869_v44, %s5412_s13  ;;  %v4294_v22 = vsel %vm4293_vm6, %v4124_v25, %v4115_v47  ;;  %v4135_v53 = vsel %vm94_vm1, %v4106_v61, -inf }
 0x859   :  { %v4131_v3 = vmax.f32 %v4129_v42, %v4130_v26  ;;  %v4136_v15 = vmax.f32 %v4134_v0, %v4135_v53  ;;  %5094 = vmatpush3.bf16.msra.mxu0 %v5285_v37 }
 0x85a   :  { %5095 = vmatprep.subr.bf16.mxu0 %v5414_v23 }
 0x85b   :  { %v4132_v54 = vrot.slane %v4131_v3, 1  ;;  %v4137_v24 = vrot.slane %v4136_v15, 4 }
 0x85c   :  { %4234 = vrot.lane.b32.xlu1 %v3870_v4, %s5412_s13 }
 0x85d   :  { %v4133_v6 = vmax.f32 %v4131_v3, %v4132_v54  ;;  %v4138_v10 = vmax.f32 %v4136_v15, %v4137_v24  ;;  %5096 = vmatpush3.bf16.msra.mxu0 %v5286_v55 }
 0x85e   :  { %5097 = vmatprep.subr.bf16.mxu0 %v5414_v23 }
 0x85f   :  { %v4296_v62 = vsel %vm4295_vm7, %v4133_v6, %v4294_v22  ;;  %v4139_v45 = vrot.slane %v4138_v10, 2 }
 0x861   :  { %v4140_v56 = vmax.f32 %v4138_v10, %v4139_v45  ;;  %5098 = vmatpush3.bf16.msra.mxu0 %v4363_v9 }
 0x863   :  { %v4141_v50 = vrot.slane %v4140_v56, 1 }
 0x865   :  { %v4142_v31 = vmax.f32 %v4140_v56, %v4141_v50 }
 0x867   :  { %v7417_v46 = vsel %vm4297_vm9, %v4142_v31, %v4296_v62 }
 0x8ae   :  { %v4221_v35 = vpop.permute.xlu0 %4220  ;;  %v4152_v19 = vpop.permute.xlu1 %4151 }
 0x8af   :  { %v4244_v51 = vmul.f32 %v4221_v35, %v7327_v33  ;;  %v4175_v14 = vmul.f32 %v4152_v19, %v7327_v33 }
 0x8b1   :  { %v4253_v21 = vsel %vm4252_vm10, %v4244_v51, -inf  ;;  %v4184_v57 = vsel %vm4183_vm11, %v4175_v14, -inf }
 0x8b2   :  { %v4154_v5 = vpop.permute.xlu0 %4153  ;;  %v4223_v36 = vpop.permute.xlu1 %4222 }
 0x8b3   :  { %v4176_v20 = vmul.f32 %v4154_v5, %v7329_v28  ;;  %v4245_v8 = vmul.f32 %v4223_v36, %v7329_v28 }
 0x8b5   :  { %v4185_v59 = vsel %vm4183_vm11, %v4176_v20, -inf  ;;  %v4254_v60 = vsel %vm4252_vm10, %v4245_v8, -inf }
 0x8b6   :  { %v4186_v49 = vmax.f32 %v4184_v57, %v4185_v59  ;;  %v4255_v1 = vmax.f32 %v4253_v21, %v4254_v60  ;;  %v4156_v27 = vpop.permute.xlu1 %4155  ;;  %v4225_v29 = vpop.permute.xlu0 %4224 }
 0x8b7   :  { %v4177_v30 = vmul.f32 %v4156_v27, %v7342_v18  ;;  %v4246_v13 = vmul.f32 %v4225_v29, %v7342_v18 }
 0x8b8   :  { %v4187_v33 = vrot.slane %v4186_v49, 4  ;;  %v4256_v39 = vrot.slane %v4255_v1, 4 }
 0x8b9   :  { %v4193_v16 = vsel %vm4183_vm11, %v4177_v30, -inf  ;;  %v4262_v40 = vsel %vm4252_vm10, %v4246_v13, -inf }
 0x8ba   :  { %v4188_v32 = vmax.f32 %v4186_v49, %v4187_v33  ;;  %v4158_v63 = vpop.permute.xlu1 %4157  ;;  %v4257_v17 = vmax.f32 %v4255_v1, %v4256_v39 }
 0x8bb   :  { %v4178_v28 = vmul.f32 %v4158_v63, %v7351_v48 }
 0x8bc   :  { %v4189_v52 = vrot.slane %v4188_v32, 2  ;;  %v4258_v4 = vrot.slane %v4257_v17, 2 }
 0x8bd   :  { %v4194_v44 = vsel %vm4183_vm11, %v4178_v28, -inf }
 0x8be   :  { %v4195_v34 = vmax.f32 %v4193_v16, %v4194_v44  ;;  %v4160_v2 = vpop.permute.xlu0 %4159  ;;  %v4227_v43 = vpop.permute.xlu1 %4226  ;;  %v4190_v23 = vmax.f32 %v4188_v32, %v4189_v52  ;;  %v4259_v53 = vmax.f32 %v4257_v17, %v4258_v4 }
 0x8bf   :  { %v4247_v11 = vmul.f32 %v4227_v43, %v7351_v48  ;;  %v4179_v47 = vmul.f32 %v4160_v2, %v7367_v12 }
 0x8c0   :  { %v4196_v42 = vrot.slane %v4195_v34, 4  ;;  %v4191_v54 = vrot.slane %v4190_v23, 1  ;;  %v4260_v38 = vrot.slane %v4259_v53, 1 }
 0x8c1   :  { %v4263_v25 = vsel %vm4252_vm10, %v4247_v11, -inf  ;;  %v4202_v48 = vsel %vm4183_vm11, %v4179_v47, -inf }
 0x8c2   :  { %v4197_v61 = vmax.f32 %v4195_v34, %v4196_v42  ;;  %v4264_v18 = vmax.f32 %v4262_v40, %v4263_v25  ;;  %v4229_v26 = vpop.permute.xlu0 %4228  ;;  %v4162_v22 = vpop.permute.xlu1 %4161  ;;  %v4192_v35 = vmax.f32 %v4190_v23, %v4191_v54  ;;  %v4261_v1 = vmax.f32 %v4259_v53, %v4260_v38 }
 0x8c3   :  { %v4180_v0 = vmul.f32 %v4162_v22, %v7372_v41  ;;  %v4248_v24 = vmul.f32 %v4229_v26, %v7367_v12 }
 0x8c4   :  { %v4198_v3 = vrot.slane %v4197_v61, 2  ;;  %v4265_v15 = vrot.slane %v4264_v18, 4 }
 0x8c5   :  { %v4203_v6 = vsel %vm4183_vm11, %v4180_v0, -inf  ;;  %v4271_v19 = vsel %vm4252_vm10, %v4248_v24, -inf }
 0x8c6   :  { %v4199_v10 = vmax.f32 %v4197_v61, %v4198_v3  ;;  %v4266_v37 = vmax.f32 %v4264_v18, %v4265_v15  ;;  %v4204_v62 = vmax.f32 %v4202_v48, %v4203_v6  ;;  %v4164_v45 = vpop.permute.xlu0 %4163  ;;  %v4231_v56 = vpop.permute.xlu1 %4230 }
 0x8c7   :  { %v4249_v55 = vmul.f32 %v4231_v56, %v7372_v41  ;;  %v4181_v51 = vmul.f32 %v4164_v45, %v7387_v7 }
 0x8c8   :  { %v4200_v50 = vrot.slane %v4199_v10, 1  ;;  %v4267_v31 = vrot.slane %v4266_v37, 2  ;;  %v4205_v9 = vrot.slane %v4204_v62, 4 }
 0x8c9   :  { %v4272_v12 = vsel %vm4252_vm10, %v4249_v55, -inf  ;;  %v4211_v27 = vsel %vm4183_vm11, %v4181_v51, -inf }
 0x8ca   :  { %v4201_v14 = vmax.f32 %v4199_v10, %v4200_v50  ;;  %v4268_v5 = vmax.f32 %v4266_v37, %v4267_v31  ;;  %v4206_v36 = vmax.f32 %v4204_v62, %v4205_v9  ;;  %v4273_v20 = vmax.f32 %v4271_v19, %v4272_v12  ;;  %v4233_v8 = vpop.permute.xlu0 %4232  ;;  %v4166_v21 = vpop.permute.xlu1 %4165  ;;  %v4670_v37 = vld [vmem:[%s7483_s18] ss:$0 sm:$0xff] }
 0x8cb   :  { %v4182_v57 = vmul.f32 %v4166_v21, %v7390_v58  ;;  %v4250_v33 = vmul.f32 %v4233_v8, %v7387_v7 }
 0x8cc   :  { %v4304_v41 = vsel %vm4293_vm6, %v4201_v14, %v4192_v35  ;;  %v4269_v59 = vrot.slane %v4268_v5, 1  ;;  %v4207_v60 = vrot.slane %v4206_v36, 2  ;;  %v4274_v49 = vrot.slane %v4273_v20, 4 }
 0x8cd   :  { %v4212_v39 = vsel %vm4183_vm11, %v4182_v57, -inf  ;;  %v4280_v34 = vsel %vm4252_vm10, %v4250_v33, -inf }
 0x8ce   :  { %v4270_v30 = vmax.f32 %v4268_v5, %v4269_v59  ;;  %v4208_v32 = vmax.f32 %v4206_v36, %v4207_v60  ;;  %v4275_v29 = vmax.f32 %v4273_v20, %v4274_v49  ;;  %v4213_v63 = vmax.f32 %v4211_v27, %v4212_v39  ;;  %v4235_v28 = vpop.permute.xlu1 %4234 }
 0x8cf   :  { %v4251_v17 = vmul.f32 %v4235_v28, %v7390_v58 }
 0x8d0   :  { %v4312_v52 = vsel %vm4293_vm6, %v4270_v30, %v4261_v1  ;;  %v4209_v13 = vrot.slane %v4208_v32, 1  ;;  %v4276_v16 = vrot.slane %v4275_v29, 2  ;;  %v4214_v44 = vrot.slane %v4213_v63, 4 }
 0x8d1   :  { %v4281_v2 = vsel %vm4252_vm10, %v4251_v17, -inf }
 0x8d2   :  { %v4210_v43 = vmax.f32 %v4208_v32, %v4209_v13  ;;  %v4277_v7 = vmax.f32 %v4275_v29, %v4276_v16  ;;  %v4215_v11 = vmax.f32 %v4213_v63, %v4214_v44  ;;  %v4282_v4 = vmax.f32 %v4280_v34, %v4281_v2 }
 0x8d4   :  { %v4305_v42 = vsel %vm4295_vm7, %v4210_v43, %v4304_v41  ;;  %v4278_v23 = vrot.slane %v4277_v7, 1  ;;  %v4216_v40 = vrot.slane %v4215_v11, 2  ;;  %v4283_v47 = vrot.slane %v4282_v4, 4 }
 0x8d6   :  { %v4279_v25 = vmax.f32 %v4277_v7, %v4278_v23  ;;  %v4217_v58 = vmax.f32 %v4215_v11, %v4216_v40  ;;  %v4284_v61 = vmax.f32 %v4282_v4, %v4283_v47 }
 0x8d8   :  { %v4313_v18 = vsel %vm4295_vm7, %v4279_v25, %v4312_v52  ;;  %v4218_v26 = vrot.slane %v4217_v58, 1  ;;  %v4285_v22 = vrot.slane %v4284_v61, 2 }
 0x8da   :  { %v4219_v0 = vmax.f32 %v4217_v58, %v4218_v26  ;;  %v4286_v53 = vmax.f32 %v4284_v61, %v4285_v22 }
 0x8dc   :  { %v4306_v3 = vsel %vm4297_vm9, %v4219_v0, %v4305_v42  ;;  %v4287_v15 = vrot.slane %v4286_v53, 1 }
 0x8dd   :  { %v4316_v54 = vsel %vm94_vm1, %v7417_v46, %v4306_v3 }
 0x8de   :  { %v4288_v48 = vmax.f32 %v4286_v53, %v4287_v15 }
 0x8e0   :  { %v4314_v24 = vsel %vm4297_vm9, %v4288_v48, %v4313_v18 }
 0x8e1   :  { %v4318_v6 = vsel %vm4317_vm3, %v4316_v54, %v4314_v24 }
 0x8e2   :  { %v4319_v10 = vpack.c.bf16 %v4318_v6, %v4318_v6 }
 0x8e4   :  { %5100 = vmatmul.mubr.msk.bf16.vlgmr.msra.gmra.mrb[160].mxu0 %vm4358_vm12, %v4319_v10 }
 0x9b7   :  { %v4399_v62 = vpop.f32.mrb[160].mxu0 }
 0x9b8   :  { %v4400_v45 = vadd.f32 %v4670_v37, %v4399_v62  ;;  %v5101_v56 = vpop.f32.mrb[161].mxu0 }
 0x9b9   :  { %v4402_v55 = vpop.f32.mrb[162].mxu0 }
 0x9ba   :  { %4406 = vst.msk [vmem:[%s7484_s19] sm:$0xf] %vm4405_vm13, %v4400_v45  ;;  %v5102_v46 = vpop.f32.mrb[163].mxu0 }

</bundles_post_ra>
